<compile_context>
chip_gen: v7x
topology: tpu7x:2x2x1
jax: 0.10.0
libtpu: 0.0.40
codegen_flags: <defaults>
</compile_context>

<pallas_src>
import math
from functools import partial

import numpy as np
import jax
import jax.numpy as jnp
from jax.experimental import pallas as pl
from jax.experimental.pallas import tpu as pltpu


# ----------------------------------------------------------------------------
# Pallas kernel
# ----------------------------------------------------------------------------

def _vmem():
    return pl.BlockSpec(memory_space=pltpu.MemorySpace.VMEM)


def _lstm_cell(gates, h_prev, c_prev, m, H):
    """gates: (B, 4H), gate order [i, f, o, g]; m: (B, H) bool (valid mask)."""
    sg = jax.nn.sigmoid(gates[:, :3 * H])       # one EUP push for i, f, o
    i = sg[:, :H]
    f = sg[:, H:2 * H]
    o = sg[:, 2 * H:3 * H]
    g = jnp.tanh(gates[:, 3 * H:])
    c_new = f * c_prev + i * g
    h_new = o * jnp.tanh(c_new)
    h = jnp.where(m, h_new, h_prev)             # freeze state on padded steps
    c = jnp.where(m, c_new, c_prev)
    out = jnp.where(m, h_new, 0.0)              # pad positions emit zeros
    return h, c, out


def _bidi_lstm_layer(x, mask_h, wih, whh, b, hid_ref, *, S, B, H):
    """One bidirectional LSTM layer.

    x:      (S*B, Din)  time-major-flattened inputs (row t*B+b = batch b, time t)
    mask_h: (S*B, H)    bool, True at valid positions
    wih:    (Din, 8H)   fused input weights, cols [fwd i,f,o,g | bwd i,f,o,g]
    whh:    (H, 8H)     fused recurrent weights, same column layout
    b:      (1, 8H)     fused bias (b_ih + b_hh)
    hid_ref:(S*B, 2H)   VMEM scratch the layer output is written into
    returns (S*B, 2H)   [fwd hidden | bwd hidden], zeros at padded positions
    """
    G = 4 * H
    # Hoisted input projection for both directions at once (one 256-wide matmul).
    xp = jnp.dot(x, wih, preferred_element_type=jnp.float32) + b     # (S*B, 8H)
    whh_f = whh[:, :G]
    whh_b = whh[:, G:]

    h_f = jnp.zeros((B, H), jnp.float32)
    c_f = jnp.zeros((B, H), jnp.float32)
    h_b = jnp.zeros((B, H), jnp.float32)
    c_b = jnp.zeros((B, H), jnp.float32)

    # Fully unrolled time loop; forward step t and backward step S-1-t are
    # data-independent and processed together so they can co-issue.
    for t in range(S):
        tb = S - 1 - t
        m_f = mask_h[t * B:(t + 1) * B]
        m_b = mask_h[tb * B:(tb + 1) * B]

        g_f = (jnp.dot(h_f, whh_f, preferred_element_type=jnp.float32)
               + xp[t * B:(t + 1) * B, :G])
        g_b = (jnp.dot(h_b, whh_b, preferred_element_type=jnp.float32)
               + xp[tb * B:(tb + 1) * B, G:])

        h_f, c_f, o_f = _lstm_cell(g_f, h_f, c_f, m_f, H)
        h_b, c_b, o_b = _lstm_cell(g_b, h_b, c_b, m_b, H)

        hid_ref[t * B:(t + 1) * B, :H] = o_f
        hid_ref[tb * B:(tb + 1) * B, H:] = o_b

    return hid_ref[...]


def fused_forward_kernel(*refs, S, B, H, num_layers):
    """Whole forward pass, everything resident in VMEM.

    refs layout:
      [0] ids     (S*B, 1) int32   time-major-flattened word ids
      [1] emb     (Vpad, E)        embedding table, vocab padded to 128
      [2 + 3l .. ] per layer: wih (Din, 8H), whh (H, 8H), b (1, 8H)
      [-4] wout   (2H, Lpad)       output weights, labels padded to 128
      [-3] bout   (1, Lpad)
      [-2] out    (S*B, Lpad)      output ref (lane-dense)
      [-1] hid    (S*B, 2H)        VMEM scratch reused by both LSTM layers
    """
    ids_ref = refs[0]
    emb_ref = refs[1]
    n_in = 2 + 3 * num_layers + 2
    wout_ref = refs[n_in - 2]
    bout_ref = refs[n_in - 1]
    out_ref = refs[n_in]
    hid_ref = refs[n_in + 1]

    SB = S * B
    ids = ids_ref[...]                                         # (S*B, 1) int32

    # Embedding lookup as a one-hot matmul against the VMEM-resident table.
    vpad = emb_ref.shape[0]
    vocab_iota = jax.lax.broadcasted_iota(jnp.int32, (1, vpad), 1)
    onehot = jnp.where(ids == vocab_iota, 1.0, 0.0)            # (S*B, Vpad)
    x = jnp.dot(onehot, emb_ref[...],
                preferred_element_type=jnp.float32)            # (S*B, E)
    # embedding_dropout / inter-layer dropout / output_dropout: identity (eval).

    mask_h = jnp.broadcast_to(ids, (SB, H)) > 0                # (S*B, H) bool

    for l in range(num_layers):
        wih_ref, whh_ref, b_ref = refs[2 + 3 * l:2 + 3 * l + 3]
        x = _bidi_lstm_layer(x, mask_h, wih_ref[...], whh_ref[...], b_ref[...],
                             hid_ref, S=S, B=B, H=H)           # (S*B, 2H)

    # Final per-position dense layer, lane-dense output (labels padded to 128).
    out_ref[...] = (jnp.dot(x, wout_ref[...],
                            preferred_element_type=jnp.float32)
                    + bout_ref[...])


# ----------------------------------------------------------------------------
# Wrapper (glue)
# ----------------------------------------------------------------------------

def bidi_lstm_glove_forward(words, kparams, *, H, num_labels):
    """words: (B, S) int32. Returns logits (B, S, num_labels)."""
    emb_pad, layers, wout_pad, bout_pad = kparams
    B, S = words.shape
    num_layers = len(layers)
    lpad = wout_pad.shape[1]

    # Time-major flatten of the word ids (row t*B + b  <->  words[b, t]).
    ids_tm = jnp.transpose(words).reshape(S * B, 1).astype(jnp.int32)

    flat_layer_args = [a for lp in layers for a in lp]
    args = [ids_tm, emb_pad, *flat_layer_args, wout_pad, bout_pad]

    out = pl.pallas_call(
        partial(fused_forward_kernel, S=S, B=B, H=H, num_layers=num_layers),
        out_shape=jax.ShapeDtypeStruct((S * B, lpad), jnp.float32),
        in_specs=[_vmem()] * len(args),
        out_specs=_vmem(),
        scratch_shapes=[pltpu.VMEM((S * B, 2 * H), jnp.float32)],
    )(*args)

    logits_tm = out[:, :num_labels].reshape(S, B, num_labels)   # (S, B, V)
    return jnp.transpose(logits_tm, (1, 0, 2))                  # (B, S, V)


# ----------------------------------------------------------------------------
# Deterministic parameter construction (shapes from the module's __init__)
# ----------------------------------------------------------------------------

def make_params(key, vocab, E, H, num_layers, num_labels):
    def uniform(k, shape, bound):
        return jax.random.uniform(k, shape, jnp.float32, -bound, bound)

    keys = iter(jax.random.split(key, 4 + num_layers * 2 * 4 + 2))

    emb_scale = math.sqrt(3.0 / E)
    emb = uniform(next(keys), (vocab, E), emb_scale)      # glove-style table

    lstm = []
    for l in range(num_layers):
        din = E if l == 0 else 2 * H
        bound = 1.0 / math.sqrt(H)
        layer = {}
        for d in ('f', 'b'):
            layer['W_ih_' + d] = uniform(next(keys), (4 * H, din), bound)
            layer['W_hh_' + d] = uniform(next(keys), (4 * H, H), bound)
            layer['b_ih_' + d] = uniform(next(keys), (4 * H,), bound)
            layer['b_hh_' + d] = uniform(next(keys), (4 * H,), bound)
        lstm.append(layer)

    out_bound = 1.0 / math.sqrt(2 * H)
    W_out = uniform(next(keys), (num_labels, 2 * H), out_bound)
    b_out = uniform(next(keys), (num_labels,), out_bound)
    return {'emb': emb, 'lstm': lstm, 'W_out': W_out, 'b_out': b_out}


def params_to_kernel_layout(params, H):
    """Reshape PyTorch-convention weights into the fused kernel layout.

    PyTorch gate order along 4H is (i, f, g, o); the kernel uses (i, f, o, g)
    so one sigmoid covers the first 3H lanes and one tanh the last H lanes.
    """
    def fuse_w(W):                       # (4H, Din) -> (Din, 4H) cols [i,f,o,g]
        Wi, Wf, Wg, Wo = W[:H], W[H:2 * H], W[2 * H:3 * H], W[3 * H:]
        return jnp.concatenate([Wi, Wf, Wo, Wg], axis=0).T

    def fuse_b(b_ih, b_hh):              # -> (1, 4H) in [i,f,o,g] order
        b = b_ih + b_hh
        bi, bf, bg, bo = b[:H], b[H:2 * H], b[2 * H:3 * H], b[3 * H:]
        return jnp.concatenate([bi, bf, bo, bg])[None, :]

    layers = []
    for lp in params['lstm']:
        wih = jnp.concatenate([fuse_w(lp['W_ih_f']), fuse_w(lp['W_ih_b'])],
                              axis=1)                              # (Din, 8H)
        whh = jnp.concatenate([fuse_w(lp['W_hh_f']), fuse_w(lp['W_hh_b'])],
                              axis=1)                              # (H, 8H)
        bb = jnp.concatenate([fuse_b(lp['b_ih_f'], lp['b_hh_f']),
                              fuse_b(lp['b_ih_b'], lp['b_hh_b'])],
                             axis=1)                               # (1, 8H)
        layers.append((wih, whh, bb))

    vocab, E = params['emb'].shape
    vpad = ((vocab + 127) // 128) * 128
    emb_pad = jnp.zeros((vpad, E), jnp.float32).at[:vocab].set(params['emb'])

    V = params['W_out'].shape[0]
    lpad = ((V + 127) // 128) * 128
    wout_pad = jnp.zeros((2 * H, lpad), jnp.float32).at[:, :V].set(params['W_out'].T)
    bout_pad = jnp.zeros((1, lpad), jnp.float32).at[0, :V].set(params['b_out'])
    return emb_pad, layers, wout_pad, bout_pad


# ----------------------------------------------------------------------------
# Pure numpy reference (mirrors the PyTorch pack/pad + bidi-LSTM semantics,
# with the original i,f,g,o gate order — independent of the kernel layout)
# ----------------------------------------------------------------------------

def reference_forward(words, params, H, num_layers):
    words = np.asarray(words)
    p = jax.tree_util.tree_map(lambda a: np.asarray(a, np.float64), params)
    B, S = words.shape
    lengths = (words > 0).sum(axis=1)

    def sigmoid(z):
        return 1.0 / (1.0 + np.exp(-z))

    x = p['emb'][words]                                   # (B, S, E)
    for l in range(num_layers):
        lp = p['lstm'][l]
        out = np.zeros((B, S, 2 * H), np.float64)
        for b in range(B):
            L = int(lengths[b])
            h = np.zeros(H); c = np.zeros(H)
            for t in range(L):
                g = lp['W_ih_f'] @ x[b, t] + lp['W_hh_f'] @ h + lp['b_ih_f'] + lp['b_hh_f']
                i, f = sigmoid(g[:H]), sigmoid(g[H:2 * H])
                gg, o = np.tanh(g[2 * H:3 * H]), sigmoid(g[3 * H:])
                c = f * c + i * gg
                h = o * np.tanh(c)
                out[b, t, :H] = h
            h = np.zeros(H); c = np.zeros(H)
            for t in range(L - 1, -1, -1):
                g = lp['W_ih_b'] @ x[b, t] + lp['W_hh_b'] @ h + lp['b_ih_b'] + lp['b_hh_b']
                i, f = sigmoid(g[:H]), sigmoid(g[H:2 * H])
                gg, o = np.tanh(g[2 * H:3 * H]), sigmoid(g[3 * H:])
                c = f * c + i * gg
                h = o * np.tanh(c)
                out[b, t, H:] = h
        x = out
    return x @ p['W_out'].T + p['b_out']


# ----------------------------------------------------------------------------
# Main
# ----------------------------------------------------------------------------

if __name__ == "__main__":
    B, S = 2, 8
    VOCAB, E, H = 20, 32, 32
    NUM_LAYERS, NUM_LABELS = 2, 7

    key = jax.random.PRNGKey(0)
    k_words, k_params = jax.random.split(key)

    # word ids: 0 = padding; batch 0 is full-length so max(lengths) == S.
    words = jax.random.randint(k_words, (B, S), 2, VOCAB).astype(jnp.int32)
    words = words.at[1, 5:].set(0)   # second sequence has length 5

    params = make_params(k_params, VOCAB, E, H, NUM_LAYERS, NUM_LABELS)
    kparams = params_to_kernel_layout(params, H)

    fwd = jax.jit(partial(bidi_lstm_glove_forward, H=H, num_labels=NUM_LABELS))
    logits = jax.block_until_ready(fwd(words, kparams))

    ref = reference_forward(words, params, H, NUM_LAYERS)
    np.testing.assert_allclose(np.asarray(logits), ref, atol=2e-3, rtol=2e-3)

    assert logits.shape == (B, S, NUM_LABELS)
    print("KERNEL_OK")
</pallas_src>

<mosaic_0001>
module attributes {stable_mosaic.version = 11 : i64} {
  func.func @fused_forward_kernel(%arg0: memref<16x1xi32, #tpu.memory_space<vmem>>, %arg1: memref<128x32xf32, #tpu.memory_space<vmem>>, %arg2: memref<32x256xf32, #tpu.memory_space<vmem>>, %arg3: memref<32x256xf32, #tpu.memory_space<vmem>>, %arg4: memref<1x256xf32, #tpu.memory_space<vmem>>, %arg5: memref<64x256xf32, #tpu.memory_space<vmem>>, %arg6: memref<32x256xf32, #tpu.memory_space<vmem>>, %arg7: memref<1x256xf32, #tpu.memory_space<vmem>>, %arg8: memref<64x128xf32, #tpu.memory_space<vmem>>, %arg9: memref<1x128xf32, #tpu.memory_space<vmem>>, %arg10: memref<16x128xf32, #tpu.memory_space<vmem>>, %arg11: memref<16x64xf32, #tpu.memory_space<vmem>>) attributes {dimension_semantics = [], scalar_prefetch = 0 : i64, scratch_operands = 1 : i64, tpu.core_type = #tpu.core_type<tc>} {
    %c0 = arith.constant 0 : index
    %c0_0 = arith.constant 0 : index
    %0 = vector.load %arg0[%c0, %c0_0] : memref<16x1xi32, #tpu.memory_space<vmem>>, vector<16x1xi32>
    %1 = tpu.iota {dimensions = array<i32: 1>} : vector<1x128xi32>
    %2 = vector.broadcast %0 : vector<16x1xi32> to vector<16x128xi32>
    %3 = vector.broadcast %1 : vector<1x128xi32> to vector<16x128xi32>
    %4 = arith.cmpi eq, %2, %3 : vector<16x128xi32>
    %cst = arith.constant 1.000000e+00 : f32
    %cst_1 = arith.constant 0.000000e+00 : f32
    %5 = vector.broadcast %cst : f32 to vector<16x128xf32>
    %6 = vector.broadcast %cst_1 : f32 to vector<16x128xf32>
    %7 = arith.select %4, %5, %6 : vector<16x128xi1>, vector<16x128xf32>
    %c0_2 = arith.constant 0 : index
    %c0_3 = arith.constant 0 : index
    %8 = vector.load %arg1[%c0_2, %c0_3] : memref<128x32xf32, #tpu.memory_space<vmem>>, vector<128x32xf32>
    %cst_4 = arith.constant dense<0.000000e+00> : vector<16x32xf32>
    %9 = tpu.matmul %7, %8, %cst_4 {dimension_numbers = #tpu.dot_dimension_numbers<[1], [0], [0], [1], [0, 0, 1, 1], [], []>} : vector<16x128xf32>, vector<128x32xf32>, vector<16x32xf32> -> vector<16x32xf32>
    %10 = vector.shape_cast %0 : vector<16x1xi32> to vector<16x1xi32>
    %11 = vector.broadcast %10 : vector<16x1xi32> to vector<16x32xi32>
    %c0_i32 = arith.constant 0 : i32
    %12 = vector.broadcast %c0_i32 : i32 to vector<16x32xi32>
    %13 = arith.cmpi sgt, %11, %12 : vector<16x32xi32>
    %c0_5 = arith.constant 0 : index
    %c0_6 = arith.constant 0 : index
    %14 = vector.load %arg2[%c0_5, %c0_6] : memref<32x256xf32, #tpu.memory_space<vmem>>, vector<32x256xf32>
    %c0_7 = arith.constant 0 : index
    %c0_8 = arith.constant 0 : index
    %15 = vector.load %arg3[%c0_7, %c0_8] : memref<32x256xf32, #tpu.memory_space<vmem>>, vector<32x256xf32>
    %c0_9 = arith.constant 0 : index
    %c0_10 = arith.constant 0 : index
    %16 = vector.load %arg4[%c0_9, %c0_10] : memref<1x256xf32, #tpu.memory_space<vmem>>, vector<1x256xf32>
    %cst_11 = arith.constant dense<0.000000e+00> : vector<16x256xf32>
    %17 = tpu.matmul %9, %14, %cst_11 {dimension_numbers = #tpu.dot_dimension_numbers<[1], [0], [0], [1], [0, 0, 1, 1], [], []>} : vector<16x32xf32>, vector<32x256xf32>, vector<16x256xf32> -> vector<16x256xf32>
    %18 = vector.broadcast %16 : vector<1x256xf32> to vector<16x256xf32>
    %19 = arith.addf %17, %18 : vector<16x256xf32>
    %20 = vector.extract_strided_slice %15 {offsets = [0, 0], sizes = [32, 128], strides = [1, 1]} : vector<32x256xf32> to vector<32x128xf32>
    %21 = vector.extract_strided_slice %15 {offsets = [0, 128], sizes = [32, 128], strides = [1, 1]} : vector<32x256xf32> to vector<32x128xf32>
    %cst_12 = arith.constant 0.000000e+00 : f32
    %22 = vector.broadcast %cst_12 : f32 to vector<2x32xf32>
    %cst_13 = arith.constant 0.000000e+00 : f32
    %23 = vector.broadcast %cst_13 : f32 to vector<2x32xf32>
    %cst_14 = arith.constant 0.000000e+00 : f32
    %24 = vector.broadcast %cst_14 : f32 to vector<2x32xf32>
    %cst_15 = arith.constant 0.000000e+00 : f32
    %25 = vector.broadcast %cst_15 : f32 to vector<2x32xf32>
    %26 = vector.extract_strided_slice %13 {offsets = [0, 0], sizes = [2, 32], strides = [1, 1]} : vector<16x32xi1> to vector<2x32xi1>
    %27 = vector.extract_strided_slice %13 {offsets = [14, 0], sizes = [2, 32], strides = [1, 1]} : vector<16x32xi1> to vector<2x32xi1>
    %cst_16 = arith.constant dense<0.000000e+00> : vector<2x128xf32>
    %28 = tpu.matmul %22, %20, %cst_16 {dimension_numbers = #tpu.dot_dimension_numbers<[1], [0], [0], [1], [0, 0, 1, 1], [], []>} : vector<2x32xf32>, vector<32x128xf32>, vector<2x128xf32> -> vector<2x128xf32>
    %29 = vector.extract_strided_slice %19 {offsets = [0, 0], sizes = [2, 128], strides = [1, 1]} : vector<16x256xf32> to vector<2x128xf32>
    %30 = arith.addf %28, %29 : vector<2x128xf32>
    %cst_17 = arith.constant dense<0.000000e+00> : vector<2x128xf32>
    %31 = tpu.matmul %24, %21, %cst_17 {dimension_numbers = #tpu.dot_dimension_numbers<[1], [0], [0], [1], [0, 0, 1, 1], [], []>} : vector<2x32xf32>, vector<32x128xf32>, vector<2x128xf32> -> vector<2x128xf32>
    %32 = vector.extract_strided_slice %19 {offsets = [14, 128], sizes = [2, 128], strides = [1, 1]} : vector<16x256xf32> to vector<2x128xf32>
    %33 = arith.addf %31, %32 : vector<2x128xf32>
    %34 = vector.extract_strided_slice %30 {offsets = [0, 0], sizes = [2, 96], strides = [1, 1]} : vector<2x128xf32> to vector<2x96xf32>
    %35 = arith.negf %34 : vector<2x96xf32>
    %36 = math.exp %35 : vector<2x96xf32>
    %cst_18 = arith.constant 1.000000e+00 : f32
    %37 = vector.broadcast %cst_18 : f32 to vector<2x96xf32>
    %38 = arith.addf %37, %36 : vector<2x96xf32>
    %39 = arith.divf %37, %38 : vector<2x96xf32>
    %40 = vector.extract_strided_slice %39 {offsets = [0, 0], sizes = [2, 32], strides = [1, 1]} : vector<2x96xf32> to vector<2x32xf32>
    %41 = vector.extract_strided_slice %39 {offsets = [0, 32], sizes = [2, 32], strides = [1, 1]} : vector<2x96xf32> to vector<2x32xf32>
    %42 = vector.extract_strided_slice %39 {offsets = [0, 64], sizes = [2, 32], strides = [1, 1]} : vector<2x96xf32> to vector<2x32xf32>
    %43 = vector.extract_strided_slice %30 {offsets = [0, 96], sizes = [2, 32], strides = [1, 1]} : vector<2x128xf32> to vector<2x32xf32>
    %44 = math.tanh %43 : vector<2x32xf32>
    %45 = arith.mulf %41, %23 : vector<2x32xf32>
    %46 = arith.mulf %40, %44 : vector<2x32xf32>
    %47 = arith.addf %45, %46 : vector<2x32xf32>
    %48 = math.tanh %47 : vector<2x32xf32>
    %49 = arith.mulf %42, %48 : vector<2x32xf32>
    %50 = arith.select %26, %49, %22 : vector<2x32xi1>, vector<2x32xf32>
    %51 = arith.select %26, %47, %23 : vector<2x32xi1>, vector<2x32xf32>
    %cst_19 = arith.constant 0.000000e+00 : f32
    %52 = vector.broadcast %cst_19 : f32 to vector<2x32xf32>
    %53 = arith.select %26, %49, %52 : vector<2x32xi1>, vector<2x32xf32>
    %54 = vector.extract_strided_slice %33 {offsets = [0, 0], sizes = [2, 96], strides = [1, 1]} : vector<2x128xf32> to vector<2x96xf32>
    %55 = arith.negf %54 : vector<2x96xf32>
    %56 = math.exp %55 : vector<2x96xf32>
    %cst_20 = arith.constant 1.000000e+00 : f32
    %57 = vector.broadcast %cst_20 : f32 to vector<2x96xf32>
    %58 = arith.addf %57, %56 : vector<2x96xf32>
    %59 = arith.divf %57, %58 : vector<2x96xf32>
    %60 = vector.extract_strided_slice %59 {offsets = [0, 0], sizes = [2, 32], strides = [1, 1]} : vector<2x96xf32> to vector<2x32xf32>
    %61 = vector.extract_strided_slice %59 {offsets = [0, 32], sizes = [2, 32], strides = [1, 1]} : vector<2x96xf32> to vector<2x32xf32>
    %62 = vector.extract_strided_slice %59 {offsets = [0, 64], sizes = [2, 32], strides = [1, 1]} : vector<2x96xf32> to vector<2x32xf32>
    %63 = vector.extract_strided_slice %33 {offsets = [0, 96], sizes = [2, 32], strides = [1, 1]} : vector<2x128xf32> to vector<2x32xf32>
    %64 = math.tanh %63 : vector<2x32xf32>
    %65 = arith.mulf %61, %25 : vector<2x32xf32>
    %66 = arith.mulf %60, %64 : vector<2x32xf32>
    %67 = arith.addf %65, %66 : vector<2x32xf32>
    %68 = math.tanh %67 : vector<2x32xf32>
    %69 = arith.mulf %62, %68 : vector<2x32xf32>
    %70 = arith.select %27, %69, %24 : vector<2x32xi1>, vector<2x32xf32>
    %71 = arith.select %27, %67, %25 : vector<2x32xi1>, vector<2x32xf32>
    %cst_21 = arith.constant 0.000000e+00 : f32
    %72 = vector.broadcast %cst_21 : f32 to vector<2x32xf32>
    %73 = arith.select %27, %69, %72 : vector<2x32xi1>, vector<2x32xf32>
    %c0_22 = arith.constant 0 : index
    %c0_23 = arith.constant 0 : index
    %74 = vector.load %arg11[%c0_22, %c0_23] : memref<16x64xf32, #tpu.memory_space<vmem>>, vector<2x32xf32>
    tpu.vector_store %arg11[%c0_22, %c0_23], %53 {strides = array<i32>} : memref<16x64xf32, #tpu.memory_space<vmem>>, vector<2x32xf32>,
    %c14 = arith.constant 14 : index
    %c32 = arith.constant 32 : index
    %75 = vector.load %arg11[%c14, %c32] : memref<16x64xf32, #tpu.memory_space<vmem>>, vector<2x32xf32>
    tpu.vector_store %arg11[%c14, %c32], %73 {strides = array<i32>} : memref<16x64xf32, #tpu.memory_space<vmem>>, vector<2x32xf32>,
    %76 = vector.extract_strided_slice %13 {offsets = [2, 0], sizes = [2, 32], strides = [1, 1]} : vector<16x32xi1> to vector<2x32xi1>
    %77 = vector.extract_strided_slice %13 {offsets = [12, 0], sizes = [2, 32], strides = [1, 1]} : vector<16x32xi1> to vector<2x32xi1>
    %cst_24 = arith.constant dense<0.000000e+00> : vector<2x128xf32>
    %78 = tpu.matmul %50, %20, %cst_24 {dimension_numbers = #tpu.dot_dimension_numbers<[1], [0], [0], [1], [0, 0, 1, 1], [], []>} : vector<2x32xf32>, vector<32x128xf32>, vector<2x128xf32> -> vector<2x128xf32>
    %79 = vector.extract_strided_slice %19 {offsets = [2, 0], sizes = [2, 128], strides = [1, 1]} : vector<16x256xf32> to vector<2x128xf32>
    %80 = arith.addf %78, %79 : vector<2x128xf32>
    %cst_25 = arith.constant dense<0.000000e+00> : vector<2x128xf32>
    %81 = tpu.matmul %70, %21, %cst_25 {dimension_numbers = #tpu.dot_dimension_numbers<[1], [0], [0], [1], [0, 0, 1, 1], [], []>} : vector<2x32xf32>, vector<32x128xf32>, vector<2x128xf32> -> vector<2x128xf32>
    %82 = vector.extract_strided_slice %19 {offsets = [12, 128], sizes = [2, 128], strides = [1, 1]} : vector<16x256xf32> to vector<2x128xf32>
    %83 = arith.addf %81, %82 : vector<2x128xf32>
    %84 = vector.extract_strided_slice %80 {offsets = [0, 0], sizes = [2, 96], strides = [1, 1]} : vector<2x128xf32> to vector<2x96xf32>
    %85 = arith.negf %84 : vector<2x96xf32>
    %86 = math.exp %85 : vector<2x96xf32>
    %cst_26 = arith.constant 1.000000e+00 : f32
    %87 = vector.broadcast %cst_26 : f32 to vector<2x96xf32>
    %88 = arith.addf %87, %86 : vector<2x96xf32>
    %89 = arith.divf %87, %88 : vector<2x96xf32>
    %90 = vector.extract_strided_slice %89 {offsets = [0, 0], sizes = [2, 32], strides = [1, 1]} : vector<2x96xf32> to vector<2x32xf32>
    %91 = vector.extract_strided_slice %89 {offsets = [0, 32], sizes = [2, 32], strides = [1, 1]} : vector<2x96xf32> to vector<2x32xf32>
    %92 = vector.extract_strided_slice %89 {offsets = [0, 64], sizes = [2, 32], strides = [1, 1]} : vector<2x96xf32> to vector<2x32xf32>
    %93 = vector.extract_strided_slice %80 {offsets = [0, 96], sizes = [2, 32], strides = [1, 1]} : vector<2x128xf32> to vector<2x32xf32>
    %94 = math.tanh %93 : vector<2x32xf32>
    %95 = arith.mulf %91, %51 : vector<2x32xf32>
    %96 = arith.mulf %90, %94 : vector<2x32xf32>
    %97 = arith.addf %95, %96 : vector<2x32xf32>
    %98 = math.tanh %97 : vector<2x32xf32>
    %99 = arith.mulf %92, %98 : vector<2x32xf32>
    %100 = arith.select %76, %99, %50 : vector<2x32xi1>, vector<2x32xf32>
    %101 = arith.select %76, %97, %51 : vector<2x32xi1>, vector<2x32xf32>
    %cst_27 = arith.constant 0.000000e+00 : f32
    %102 = vector.broadcast %cst_27 : f32 to vector<2x32xf32>
    %103 = arith.select %76, %99, %102 : vector<2x32xi1>, vector<2x32xf32>
    %104 = vector.extract_strided_slice %83 {offsets = [0, 0], sizes = [2, 96], strides = [1, 1]} : vector<2x128xf32> to vector<2x96xf32>
    %105 = arith.negf %104 : vector<2x96xf32>
    %106 = math.exp %105 : vector<2x96xf32>
    %cst_28 = arith.constant 1.000000e+00 : f32
    %107 = vector.broadcast %cst_28 : f32 to vector<2x96xf32>
    %108 = arith.addf %107, %106 : vector<2x96xf32>
    %109 = arith.divf %107, %108 : vector<2x96xf32>
    %110 = vector.extract_strided_slice %109 {offsets = [0, 0], sizes = [2, 32], strides = [1, 1]} : vector<2x96xf32> to vector<2x32xf32>
    %111 = vector.extract_strided_slice %109 {offsets = [0, 32], sizes = [2, 32], strides = [1, 1]} : vector<2x96xf32> to vector<2x32xf32>
    %112 = vector.extract_strided_slice %109 {offsets = [0, 64], sizes = [2, 32], strides = [1, 1]} : vector<2x96xf32> to vector<2x32xf32>
    %113 = vector.extract_strided_slice %83 {offsets = [0, 96], sizes = [2, 32], strides = [1, 1]} : vector<2x128xf32> to vector<2x32xf32>
    %114 = math.tanh %113 : vector<2x32xf32>
    %115 = arith.mulf %111, %71 : vector<2x32xf32>
    %116 = arith.mulf %110, %114 : vector<2x32xf32>
    %117 = arith.addf %115, %116 : vector<2x32xf32>
    %118 = math.tanh %117 : vector<2x32xf32>
    %119 = arith.mulf %112, %118 : vector<2x32xf32>
    %120 = arith.select %77, %119, %70 : vector<2x32xi1>, vector<2x32xf32>
    %121 = arith.select %77, %117, %71 : vector<2x32xi1>, vector<2x32xf32>
    %cst_29 = arith.constant 0.000000e+00 : f32
    %122 = vector.broadcast %cst_29 : f32 to vector<2x32xf32>
    %123 = arith.select %77, %119, %122 : vector<2x32xi1>, vector<2x32xf32>
    %c2 = arith.constant 2 : index
    %c0_30 = arith.constant 0 : index
    %124 = vector.load %arg11[%c2, %c0_30] : memref<16x64xf32, #tpu.memory_space<vmem>>, vector<2x32xf32>
    tpu.vector_store %arg11[%c2, %c0_30], %103 {strides = array<i32>} : memref<16x64xf32, #tpu.memory_space<vmem>>, vector<2x32xf32>,
    %c12 = arith.constant 12 : index
    %c32_31 = arith.constant 32 : index
    %125 = vector.load %arg11[%c12, %c32_31] : memref<16x64xf32, #tpu.memory_space<vmem>>, vector<2x32xf32>
    tpu.vector_store %arg11[%c12, %c32_31], %123 {strides = array<i32>} : memref<16x64xf32, #tpu.memory_space<vmem>>, vector<2x32xf32>,
    %126 = vector.extract_strided_slice %13 {offsets = [4, 0], sizes = [2, 32], strides = [1, 1]} : vector<16x32xi1> to vector<2x32xi1>
    %127 = vector.extract_strided_slice %13 {offsets = [10, 0], sizes = [2, 32], strides = [1, 1]} : vector<16x32xi1> to vector<2x32xi1>
    %cst_32 = arith.constant dense<0.000000e+00> : vector<2x128xf32>
    %128 = tpu.matmul %100, %20, %cst_32 {dimension_numbers = #tpu.dot_dimension_numbers<[1], [0], [0], [1], [0, 0, 1, 1], [], []>} : vector<2x32xf32>, vector<32x128xf32>, vector<2x128xf32> -> vector<2x128xf32>
    %129 = vector.extract_strided_slice %19 {offsets = [4, 0], sizes = [2, 128], strides = [1, 1]} : vector<16x256xf32> to vector<2x128xf32>
    %130 = arith.addf %128, %129 : vector<2x128xf32>
    %cst_33 = arith.constant dense<0.000000e+00> : vector<2x128xf32>
    %131 = tpu.matmul %120, %21, %cst_33 {dimension_numbers = #tpu.dot_dimension_numbers<[1], [0], [0], [1], [0, 0, 1, 1], [], []>} : vector<2x32xf32>, vector<32x128xf32>, vector<2x128xf32> -> vector<2x128xf32>
    %132 = vector.extract_strided_slice %19 {offsets = [10, 128], sizes = [2, 128], strides = [1, 1]} : vector<16x256xf32> to vector<2x128xf32>
    %133 = arith.addf %131, %132 : vector<2x128xf32>
    %134 = vector.extract_strided_slice %130 {offsets = [0, 0], sizes = [2, 96], strides = [1, 1]} : vector<2x128xf32> to vector<2x96xf32>
    %135 = arith.negf %134 : vector<2x96xf32>
    %136 = math.exp %135 : vector<2x96xf32>
    %cst_34 = arith.constant 1.000000e+00 : f32
    %137 = vector.broadcast %cst_34 : f32 to vector<2x96xf32>
    %138 = arith.addf %137, %136 : vector<2x96xf32>
    %139 = arith.divf %137, %138 : vector<2x96xf32>
    %140 = vector.extract_strided_slice %139 {offsets = [0, 0], sizes = [2, 32], strides = [1, 1]} : vector<2x96xf32> to vector<2x32xf32>
    %141 = vector.extract_strided_slice %139 {offsets = [0, 32], sizes = [2, 32], strides = [1, 1]} : vector<2x96xf32> to vector<2x32xf32>
    %142 = vector.extract_strided_slice %139 {offsets = [0, 64], sizes = [2, 32], strides = [1, 1]} : vector<2x96xf32> to vector<2x32xf32>
    %143 = vector.extract_strided_slice %130 {offsets = [0, 96], sizes = [2, 32], strides = [1, 1]} : vector<2x128xf32> to vector<2x32xf32>
    %144 = math.tanh %143 : vector<2x32xf32>
    %145 = arith.mulf %141, %101 : vector<2x32xf32>
    %146 = arith.mulf %140, %144 : vector<2x32xf32>
    %147 = arith.addf %145, %146 : vector<2x32xf32>
    %148 = math.tanh %147 : vector<2x32xf32>
    %149 = arith.mulf %142, %148 : vector<2x32xf32>
    %150 = arith.select %126, %149, %100 : vector<2x32xi1>, vector<2x32xf32>
    %151 = arith.select %126, %147, %101 : vector<2x32xi1>, vector<2x32xf32>
    %cst_35 = arith.constant 0.000000e+00 : f32
    %152 = vector.broadcast %cst_35 : f32 to vector<2x32xf32>
    %153 = arith.select %126, %149, %152 : vector<2x32xi1>, vector<2x32xf32>
    %154 = vector.extract_strided_slice %133 {offsets = [0, 0], sizes = [2, 96], strides = [1, 1]} : vector<2x128xf32> to vector<2x96xf32>
    %155 = arith.negf %154 : vector<2x96xf32>
    %156 = math.exp %155 : vector<2x96xf32>
    %cst_36 = arith.constant 1.000000e+00 : f32
    %157 = vector.broadcast %cst_36 : f32 to vector<2x96xf32>
    %158 = arith.addf %157, %156 : vector<2x96xf32>
    %159 = arith.divf %157, %158 : vector<2x96xf32>
    %160 = vector.extract_strided_slice %159 {offsets = [0, 0], sizes = [2, 32], strides = [1, 1]} : vector<2x96xf32> to vector<2x32xf32>
    %161 = vector.extract_strided_slice %159 {offsets = [0, 32], sizes = [2, 32], strides = [1, 1]} : vector<2x96xf32> to vector<2x32xf32>
    %162 = vector.extract_strided_slice %159 {offsets = [0, 64], sizes = [2, 32], strides = [1, 1]} : vector<2x96xf32> to vector<2x32xf32>
    %163 = vector.extract_strided_slice %133 {offsets = [0, 96], sizes = [2, 32], strides = [1, 1]} : vector<2x128xf32> to vector<2x32xf32>
    %164 = math.tanh %163 : vector<2x32xf32>
    %165 = arith.mulf %161, %121 : vector<2x32xf32>
    %166 = arith.mulf %160, %164 : vector<2x32xf32>
    %167 = arith.addf %165, %166 : vector<2x32xf32>
    %168 = math.tanh %167 : vector<2x32xf32>
    %169 = arith.mulf %162, %168 : vector<2x32xf32>
    %170 = arith.select %127, %169, %120 : vector<2x32xi1>, vector<2x32xf32>
    %171 = arith.select %127, %167, %121 : vector<2x32xi1>, vector<2x32xf32>
    %cst_37 = arith.constant 0.000000e+00 : f32
    %172 = vector.broadcast %cst_37 : f32 to vector<2x32xf32>
    %173 = arith.select %127, %169, %172 : vector<2x32xi1>, vector<2x32xf32>
    %c4 = arith.constant 4 : index
    %c0_38 = arith.constant 0 : index
    %174 = vector.load %arg11[%c4, %c0_38] : memref<16x64xf32, #tpu.memory_space<vmem>>, vector<2x32xf32>
    tpu.vector_store %arg11[%c4, %c0_38], %153 {strides = array<i32>} : memref<16x64xf32, #tpu.memory_space<vmem>>, vector<2x32xf32>,
    %c10 = arith.constant 10 : index
    %c32_39 = arith.constant 32 : index
    %175 = vector.load %arg11[%c10, %c32_39] : memref<16x64xf32, #tpu.memory_space<vmem>>, vector<2x32xf32>
    tpu.vector_store %arg11[%c10, %c32_39], %173 {strides = array<i32>} : memref<16x64xf32, #tpu.memory_space<vmem>>, vector<2x32xf32>,
    %176 = vector.extract_strided_slice %13 {offsets = [6, 0], sizes = [2, 32], strides = [1, 1]} : vector<16x32xi1> to vector<2x32xi1>
    %177 = vector.extract_strided_slice %13 {offsets = [8, 0], sizes = [2, 32], strides = [1, 1]} : vector<16x32xi1> to vector<2x32xi1>
    %cst_40 = arith.constant dense<0.000000e+00> : vector<2x128xf32>
    %178 = tpu.matmul %150, %20, %cst_40 {dimension_numbers = #tpu.dot_dimension_numbers<[1], [0], [0], [1], [0, 0, 1, 1], [], []>} : vector<2x32xf32>, vector<32x128xf32>, vector<2x128xf32> -> vector<2x128xf32>
    %179 = vector.extract_strided_slice %19 {offsets = [6, 0], sizes = [2, 128], strides = [1, 1]} : vector<16x256xf32> to vector<2x128xf32>
    %180 = arith.addf %178, %179 : vector<2x128xf32>
    %cst_41 = arith.constant dense<0.000000e+00> : vector<2x128xf32>
    %181 = tpu.matmul %170, %21, %cst_41 {dimension_numbers = #tpu.dot_dimension_numbers<[1], [0], [0], [1], [0, 0, 1, 1], [], []>} : vector<2x32xf32>, vector<32x128xf32>, vector<2x128xf32> -> vector<2x128xf32>
    %182 = vector.extract_strided_slice %19 {offsets = [8, 128], sizes = [2, 128], strides = [1, 1]} : vector<16x256xf32> to vector<2x128xf32>
    %183 = arith.addf %181, %182 : vector<2x128xf32>
    %184 = vector.extract_strided_slice %180 {offsets = [0, 0], sizes = [2, 96], strides = [1, 1]} : vector<2x128xf32> to vector<2x96xf32>
    %185 = arith.negf %184 : vector<2x96xf32>
    %186 = math.exp %185 : vector<2x96xf32>
    %cst_42 = arith.constant 1.000000e+00 : f32
    %187 = vector.broadcast %cst_42 : f32 to vector<2x96xf32>
    %188 = arith.addf %187, %186 : vector<2x96xf32>
    %189 = arith.divf %187, %188 : vector<2x96xf32>
    %190 = vector.extract_strided_slice %189 {offsets = [0, 0], sizes = [2, 32], strides = [1, 1]} : vector<2x96xf32> to vector<2x32xf32>
    %191 = vector.extract_strided_slice %189 {offsets = [0, 32], sizes = [2, 32], strides = [1, 1]} : vector<2x96xf32> to vector<2x32xf32>
    %192 = vector.extract_strided_slice %189 {offsets = [0, 64], sizes = [2, 32], strides = [1, 1]} : vector<2x96xf32> to vector<2x32xf32>
    %193 = vector.extract_strided_slice %180 {offsets = [0, 96], sizes = [2, 32], strides = [1, 1]} : vector<2x128xf32> to vector<2x32xf32>
    %194 = math.tanh %193 : vector<2x32xf32>
    %195 = arith.mulf %191, %151 : vector<2x32xf32>
    %196 = arith.mulf %190, %194 : vector<2x32xf32>
    %197 = arith.addf %195, %196 : vector<2x32xf32>
    %198 = math.tanh %197 : vector<2x32xf32>
    %199 = arith.mulf %192, %198 : vector<2x32xf32>
    %200 = arith.select %176, %199, %150 : vector<2x32xi1>, vector<2x32xf32>
    %201 = arith.select %176, %197, %151 : vector<2x32xi1>, vector<2x32xf32>
    %cst_43 = arith.constant 0.000000e+00 : f32
    %202 = vector.broadcast %cst_43 : f32 to vector<2x32xf32>
    %203 = arith.select %176, %199, %202 : vector<2x32xi1>, vector<2x32xf32>
    %204 = vector.extract_strided_slice %183 {offsets = [0, 0], sizes = [2, 96], strides = [1, 1]} : vector<2x128xf32> to vector<2x96xf32>
    %205 = arith.negf %204 : vector<2x96xf32>
    %206 = math.exp %205 : vector<2x96xf32>
    %cst_44 = arith.constant 1.000000e+00 : f32
    %207 = vector.broadcast %cst_44 : f32 to vector<2x96xf32>
    %208 = arith.addf %207, %206 : vector<2x96xf32>
    %209 = arith.divf %207, %208 : vector<2x96xf32>
    %210 = vector.extract_strided_slice %209 {offsets = [0, 0], sizes = [2, 32], strides = [1, 1]} : vector<2x96xf32> to vector<2x32xf32>
    %211 = vector.extract_strided_slice %209 {offsets = [0, 32], sizes = [2, 32], strides = [1, 1]} : vector<2x96xf32> to vector<2x32xf32>
    %212 = vector.extract_strided_slice %209 {offsets = [0, 64], sizes = [2, 32], strides = [1, 1]} : vector<2x96xf32> to vector<2x32xf32>
    %213 = vector.extract_strided_slice %183 {offsets = [0, 96], sizes = [2, 32], strides = [1, 1]} : vector<2x128xf32> to vector<2x32xf32>
    %214 = math.tanh %213 : vector<2x32xf32>
    %215 = arith.mulf %211, %171 : vector<2x32xf32>
    %216 = arith.mulf %210, %214 : vector<2x32xf32>
    %217 = arith.addf %215, %216 : vector<2x32xf32>
    %218 = math.tanh %217 : vector<2x32xf32>
    %219 = arith.mulf %212, %218 : vector<2x32xf32>
    %220 = arith.select %177, %219, %170 : vector<2x32xi1>, vector<2x32xf32>
    %221 = arith.select %177, %217, %171 : vector<2x32xi1>, vector<2x32xf32>
    %cst_45 = arith.constant 0.000000e+00 : f32
    %222 = vector.broadcast %cst_45 : f32 to vector<2x32xf32>
    %223 = arith.select %177, %219, %222 : vector<2x32xi1>, vector<2x32xf32>
    %c6 = arith.constant 6 : index
    %c0_46 = arith.constant 0 : index
    %224 = vector.load %arg11[%c6, %c0_46] : memref<16x64xf32, #tpu.memory_space<vmem>>, vector<2x32xf32>
    tpu.vector_store %arg11[%c6, %c0_46], %203 {strides = array<i32>} : memref<16x64xf32, #tpu.memory_space<vmem>>, vector<2x32xf32>,
    %c8 = arith.constant 8 : index
    %c32_47 = arith.constant 32 : index
    %225 = vector.load %arg11[%c8, %c32_47] : memref<16x64xf32, #tpu.memory_space<vmem>>, vector<2x32xf32>
    tpu.vector_store %arg11[%c8, %c32_47], %223 {strides = array<i32>} : memref<16x64xf32, #tpu.memory_space<vmem>>, vector<2x32xf32>,
    %226 = vector.extract_strided_slice %13 {offsets = [8, 0], sizes = [2, 32], strides = [1, 1]} : vector<16x32xi1> to vector<2x32xi1>
    %227 = vector.extract_strided_slice %13 {offsets = [6, 0], sizes = [2, 32], strides = [1, 1]} : vector<16x32xi1> to vector<2x32xi1>
    %cst_48 = arith.constant dense<0.000000e+00> : vector<2x128xf32>
    %228 = tpu.matmul %200, %20, %cst_48 {dimension_numbers = #tpu.dot_dimension_numbers<[1], [0], [0], [1], [0, 0, 1, 1], [], []>} : vector<2x32xf32>, vector<32x128xf32>, vector<2x128xf32> -> vector<2x128xf32>
    %229 = vector.extract_strided_slice %19 {offsets = [8, 0], sizes = [2, 128], strides = [1, 1]} : vector<16x256xf32> to vector<2x128xf32>
    %230 = arith.addf %228, %229 : vector<2x128xf32>
    %cst_49 = arith.constant dense<0.000000e+00> : vector<2x128xf32>
    %231 = tpu.matmul %220, %21, %cst_49 {dimension_numbers = #tpu.dot_dimension_numbers<[1], [0], [0], [1], [0, 0, 1, 1], [], []>} : vector<2x32xf32>, vector<32x128xf32>, vector<2x128xf32> -> vector<2x128xf32>
    %232 = vector.extract_strided_slice %19 {offsets = [6, 128], sizes = [2, 128], strides = [1, 1]} : vector<16x256xf32> to vector<2x128xf32>
    %233 = arith.addf %231, %232 : vector<2x128xf32>
    %234 = vector.extract_strided_slice %230 {offsets = [0, 0], sizes = [2, 96], strides = [1, 1]} : vector<2x128xf32> to vector<2x96xf32>
    %235 = arith.negf %234 : vector<2x96xf32>
    %236 = math.exp %235 : vector<2x96xf32>
    %cst_50 = arith.constant 1.000000e+00 : f32
    %237 = vector.broadcast %cst_50 : f32 to vector<2x96xf32>
    %238 = arith.addf %237, %236 : vector<2x96xf32>
    %239 = arith.divf %237, %238 : vector<2x96xf32>
    %240 = vector.extract_strided_slice %239 {offsets = [0, 0], sizes = [2, 32], strides = [1, 1]} : vector<2x96xf32> to vector<2x32xf32>
    %241 = vector.extract_strided_slice %239 {offsets = [0, 32], sizes = [2, 32], strides = [1, 1]} : vector<2x96xf32> to vector<2x32xf32>
    %242 = vector.extract_strided_slice %239 {offsets = [0, 64], sizes = [2, 32], strides = [1, 1]} : vector<2x96xf32> to vector<2x32xf32>
    %243 = vector.extract_strided_slice %230 {offsets = [0, 96], sizes = [2, 32], strides = [1, 1]} : vector<2x128xf32> to vector<2x32xf32>
    %244 = math.tanh %243 : vector<2x32xf32>
    %245 = arith.mulf %241, %201 : vector<2x32xf32>
    %246 = arith.mulf %240, %244 : vector<2x32xf32>
    %247 = arith.addf %245, %246 : vector<2x32xf32>
    %248 = math.tanh %247 : vector<2x32xf32>
    %249 = arith.mulf %242, %248 : vector<2x32xf32>
    %250 = arith.select %226, %249, %200 : vector<2x32xi1>, vector<2x32xf32>
    %251 = arith.select %226, %247, %201 : vector<2x32xi1>, vector<2x32xf32>
    %cst_51 = arith.constant 0.000000e+00 : f32
    %252 = vector.broadcast %cst_51 : f32 to vector<2x32xf32>
    %253 = arith.select %226, %249, %252 : vector<2x32xi1>, vector<2x32xf32>
    %254 = vector.extract_strided_slice %233 {offsets = [0, 0], sizes = [2, 96], strides = [1, 1]} : vector<2x128xf32> to vector<2x96xf32>
    %255 = arith.negf %254 : vector<2x96xf32>
    %256 = math.exp %255 : vector<2x96xf32>
    %cst_52 = arith.constant 1.000000e+00 : f32
    %257 = vector.broadcast %cst_52 : f32 to vector<2x96xf32>
    %258 = arith.addf %257, %256 : vector<2x96xf32>
    %259 = arith.divf %257, %258 : vector<2x96xf32>
    %260 = vector.extract_strided_slice %259 {offsets = [0, 0], sizes = [2, 32], strides = [1, 1]} : vector<2x96xf32> to vector<2x32xf32>
    %261 = vector.extract_strided_slice %259 {offsets = [0, 32], sizes = [2, 32], strides = [1, 1]} : vector<2x96xf32> to vector<2x32xf32>
    %262 = vector.extract_strided_slice %259 {offsets = [0, 64], sizes = [2, 32], strides = [1, 1]} : vector<2x96xf32> to vector<2x32xf32>
    %263 = vector.extract_strided_slice %233 {offsets = [0, 96], sizes = [2, 32], strides = [1, 1]} : vector<2x128xf32> to vector<2x32xf32>
    %264 = math.tanh %263 : vector<2x32xf32>
    %265 = arith.mulf %261, %221 : vector<2x32xf32>
    %266 = arith.mulf %260, %264 : vector<2x32xf32>
    %267 = arith.addf %265, %266 : vector<2x32xf32>
    %268 = math.tanh %267 : vector<2x32xf32>
    %269 = arith.mulf %262, %268 : vector<2x32xf32>
    %270 = arith.select %227, %269, %220 : vector<2x32xi1>, vector<2x32xf32>
    %271 = arith.select %227, %267, %221 : vector<2x32xi1>, vector<2x32xf32>
    %cst_53 = arith.constant 0.000000e+00 : f32
    %272 = vector.broadcast %cst_53 : f32 to vector<2x32xf32>
    %273 = arith.select %227, %269, %272 : vector<2x32xi1>, vector<2x32xf32>
    %c8_54 = arith.constant 8 : index
    %c0_55 = arith.constant 0 : index
    %274 = vector.load %arg11[%c8_54, %c0_55] : memref<16x64xf32, #tpu.memory_space<vmem>>, vector<2x32xf32>
    tpu.vector_store %arg11[%c8_54, %c0_55], %253 {strides = array<i32>} : memref<16x64xf32, #tpu.memory_space<vmem>>, vector<2x32xf32>,
    %c6_56 = arith.constant 6 : index
    %c32_57 = arith.constant 32 : index
    %275 = vector.load %arg11[%c6_56, %c32_57] : memref<16x64xf32, #tpu.memory_space<vmem>>, vector<2x32xf32>
    tpu.vector_store %arg11[%c6_56, %c32_57], %273 {strides = array<i32>} : memref<16x64xf32, #tpu.memory_space<vmem>>, vector<2x32xf32>,
    %276 = vector.extract_strided_slice %13 {offsets = [10, 0], sizes = [2, 32], strides = [1, 1]} : vector<16x32xi1> to vector<2x32xi1>
    %277 = vector.extract_strided_slice %13 {offsets = [4, 0], sizes = [2, 32], strides = [1, 1]} : vector<16x32xi1> to vector<2x32xi1>
    %cst_58 = arith.constant dense<0.000000e+00> : vector<2x128xf32>
    %278 = tpu.matmul %250, %20, %cst_58 {dimension_numbers = #tpu.dot_dimension_numbers<[1], [0], [0], [1], [0, 0, 1, 1], [], []>} : vector<2x32xf32>, vector<32x128xf32>, vector<2x128xf32> -> vector<2x128xf32>
    %279 = vector.extract_strided_slice %19 {offsets = [10, 0], sizes = [2, 128], strides = [1, 1]} : vector<16x256xf32> to vector<2x128xf32>
    %280 = arith.addf %278, %279 : vector<2x128xf32>
    %cst_59 = arith.constant dense<0.000000e+00> : vector<2x128xf32>
    %281 = tpu.matmul %270, %21, %cst_59 {dimension_numbers = #tpu.dot_dimension_numbers<[1], [0], [0], [1], [0, 0, 1, 1], [], []>} : vector<2x32xf32>, vector<32x128xf32>, vector<2x128xf32> -> vector<2x128xf32>
    %282 = vector.extract_strided_slice %19 {offsets = [4, 128], sizes = [2, 128], strides = [1, 1]} : vector<16x256xf32> to vector<2x128xf32>
    %283 = arith.addf %281, %282 : vector<2x128xf32>
    %284 = vector.extract_strided_slice %280 {offsets = [0, 0], sizes = [2, 96], strides = [1, 1]} : vector<2x128xf32> to vector<2x96xf32>
    %285 = arith.negf %284 : vector<2x96xf32>
    %286 = math.exp %285 : vector<2x96xf32>
    %cst_60 = arith.constant 1.000000e+00 : f32
    %287 = vector.broadcast %cst_60 : f32 to vector<2x96xf32>
    %288 = arith.addf %287, %286 : vector<2x96xf32>
    %289 = arith.divf %287, %288 : vector<2x96xf32>
    %290 = vector.extract_strided_slice %289 {offsets = [0, 0], sizes = [2, 32], strides = [1, 1]} : vector<2x96xf32> to vector<2x32xf32>
    %291 = vector.extract_strided_slice %289 {offsets = [0, 32], sizes = [2, 32], strides = [1, 1]} : vector<2x96xf32> to vector<2x32xf32>
    %292 = vector.extract_strided_slice %289 {offsets = [0, 64], sizes = [2, 32], strides = [1, 1]} : vector<2x96xf32> to vector<2x32xf32>
    %293 = vector.extract_strided_slice %280 {offsets = [0, 96], sizes = [2, 32], strides = [1, 1]} : vector<2x128xf32> to vector<2x32xf32>
    %294 = math.tanh %293 : vector<2x32xf32>
    %295 = arith.mulf %291, %251 : vector<2x32xf32>
    %296 = arith.mulf %290, %294 : vector<2x32xf32>
    %297 = arith.addf %295, %296 : vector<2x32xf32>
    %298 = math.tanh %297 : vector<2x32xf32>
    %299 = arith.mulf %292, %298 : vector<2x32xf32>
    %300 = arith.select %276, %299, %250 : vector<2x32xi1>, vector<2x32xf32>
    %301 = arith.select %276, %297, %251 : vector<2x32xi1>, vector<2x32xf32>
    %cst_61 = arith.constant 0.000000e+00 : f32
    %302 = vector.broadcast %cst_61 : f32 to vector<2x32xf32>
    %303 = arith.select %276, %299, %302 : vector<2x32xi1>, vector<2x32xf32>
    %304 = vector.extract_strided_slice %283 {offsets = [0, 0], sizes = [2, 96], strides = [1, 1]} : vector<2x128xf32> to vector<2x96xf32>
    %305 = arith.negf %304 : vector<2x96xf32>
    %306 = math.exp %305 : vector<2x96xf32>
    %cst_62 = arith.constant 1.000000e+00 : f32
    %307 = vector.broadcast %cst_62 : f32 to vector<2x96xf32>
    %308 = arith.addf %307, %306 : vector<2x96xf32>
    %309 = arith.divf %307, %308 : vector<2x96xf32>
    %310 = vector.extract_strided_slice %309 {offsets = [0, 0], sizes = [2, 32], strides = [1, 1]} : vector<2x96xf32> to vector<2x32xf32>
    %311 = vector.extract_strided_slice %309 {offsets = [0, 32], sizes = [2, 32], strides = [1, 1]} : vector<2x96xf32> to vector<2x32xf32>
    %312 = vector.extract_strided_slice %309 {offsets = [0, 64], sizes = [2, 32], strides = [1, 1]} : vector<2x96xf32> to vector<2x32xf32>
    %313 = vector.extract_strided_slice %283 {offsets = [0, 96], sizes = [2, 32], strides = [1, 1]} : vector<2x128xf32> to vector<2x32xf32>
    %314 = math.tanh %313 : vector<2x32xf32>
    %315 = arith.mulf %311, %271 : vector<2x32xf32>
    %316 = arith.mulf %310, %314 : vector<2x32xf32>
    %317 = arith.addf %315, %316 : vector<2x32xf32>
    %318 = math.tanh %317 : vector<2x32xf32>
    %319 = arith.mulf %312, %318 : vector<2x32xf32>
    %320 = arith.select %277, %319, %270 : vector<2x32xi1>, vector<2x32xf32>
    %321 = arith.select %277, %317, %271 : vector<2x32xi1>, vector<2x32xf32>
    %cst_63 = arith.constant 0.000000e+00 : f32
    %322 = vector.broadcast %cst_63 : f32 to vector<2x32xf32>
    %323 = arith.select %277, %319, %322 : vector<2x32xi1>, vector<2x32xf32>
    %c10_64 = arith.constant 10 : index
    %c0_65 = arith.constant 0 : index
    %324 = vector.load %arg11[%c10_64, %c0_65] : memref<16x64xf32, #tpu.memory_space<vmem>>, vector<2x32xf32>
    tpu.vector_store %arg11[%c10_64, %c0_65], %303 {strides = array<i32>} : memref<16x64xf32, #tpu.memory_space<vmem>>, vector<2x32xf32>,
    %c4_66 = arith.constant 4 : index
    %c32_67 = arith.constant 32 : index
    %325 = vector.load %arg11[%c4_66, %c32_67] : memref<16x64xf32, #tpu.memory_space<vmem>>, vector<2x32xf32>
    tpu.vector_store %arg11[%c4_66, %c32_67], %323 {strides = array<i32>} : memref<16x64xf32, #tpu.memory_space<vmem>>, vector<2x32xf32>,
    %326 = vector.extract_strided_slice %13 {offsets = [12, 0], sizes = [2, 32], strides = [1, 1]} : vector<16x32xi1> to vector<2x32xi1>
    %327 = vector.extract_strided_slice %13 {offsets = [2, 0], sizes = [2, 32], strides = [1, 1]} : vector<16x32xi1> to vector<2x32xi1>
    %cst_68 = arith.constant dense<0.000000e+00> : vector<2x128xf32>
    %328 = tpu.matmul %300, %20, %cst_68 {dimension_numbers = #tpu.dot_dimension_numbers<[1], [0], [0], [1], [0, 0, 1, 1], [], []>} : vector<2x32xf32>, vector<32x128xf32>, vector<2x128xf32> -> vector<2x128xf32>
    %329 = vector.extract_strided_slice %19 {offsets = [12, 0], sizes = [2, 128], strides = [1, 1]} : vector<16x256xf32> to vector<2x128xf32>
    %330 = arith.addf %328, %329 : vector<2x128xf32>
    %cst_69 = arith.constant dense<0.000000e+00> : vector<2x128xf32>
    %331 = tpu.matmul %320, %21, %cst_69 {dimension_numbers = #tpu.dot_dimension_numbers<[1], [0], [0], [1], [0, 0, 1, 1], [], []>} : vector<2x32xf32>, vector<32x128xf32>, vector<2x128xf32> -> vector<2x128xf32>
    %332 = vector.extract_strided_slice %19 {offsets = [2, 128], sizes = [2, 128], strides = [1, 1]} : vector<16x256xf32> to vector<2x128xf32>
    %333 = arith.addf %331, %332 : vector<2x128xf32>
    %334 = vector.extract_strided_slice %330 {offsets = [0, 0], sizes = [2, 96], strides = [1, 1]} : vector<2x128xf32> to vector<2x96xf32>
    %335 = arith.negf %334 : vector<2x96xf32>
    %336 = math.exp %335 : vector<2x96xf32>
    %cst_70 = arith.constant 1.000000e+00 : f32
    %337 = vector.broadcast %cst_70 : f32 to vector<2x96xf32>
    %338 = arith.addf %337, %336 : vector<2x96xf32>
    %339 = arith.divf %337, %338 : vector<2x96xf32>
    %340 = vector.extract_strided_slice %339 {offsets = [0, 0], sizes = [2, 32], strides = [1, 1]} : vector<2x96xf32> to vector<2x32xf32>
    %341 = vector.extract_strided_slice %339 {offsets = [0, 32], sizes = [2, 32], strides = [1, 1]} : vector<2x96xf32> to vector<2x32xf32>
    %342 = vector.extract_strided_slice %339 {offsets = [0, 64], sizes = [2, 32], strides = [1, 1]} : vector<2x96xf32> to vector<2x32xf32>
    %343 = vector.extract_strided_slice %330 {offsets = [0, 96], sizes = [2, 32], strides = [1, 1]} : vector<2x128xf32> to vector<2x32xf32>
    %344 = math.tanh %343 : vector<2x32xf32>
    %345 = arith.mulf %341, %301 : vector<2x32xf32>
    %346 = arith.mulf %340, %344 : vector<2x32xf32>
    %347 = arith.addf %345, %346 : vector<2x32xf32>
    %348 = math.tanh %347 : vector<2x32xf32>
    %349 = arith.mulf %342, %348 : vector<2x32xf32>
    %350 = arith.select %326, %349, %300 : vector<2x32xi1>, vector<2x32xf32>
    %351 = arith.select %326, %347, %301 : vector<2x32xi1>, vector<2x32xf32>
    %cst_71 = arith.constant 0.000000e+00 : f32
    %352 = vector.broadcast %cst_71 : f32 to vector<2x32xf32>
    %353 = arith.select %326, %349, %352 : vector<2x32xi1>, vector<2x32xf32>
    %354 = vector.extract_strided_slice %333 {offsets = [0, 0], sizes = [2, 96], strides = [1, 1]} : vector<2x128xf32> to vector<2x96xf32>
    %355 = arith.negf %354 : vector<2x96xf32>
    %356 = math.exp %355 : vector<2x96xf32>
    %cst_72 = arith.constant 1.000000e+00 : f32
    %357 = vector.broadcast %cst_72 : f32 to vector<2x96xf32>
    %358 = arith.addf %357, %356 : vector<2x96xf32>
    %359 = arith.divf %357, %358 : vector<2x96xf32>
    %360 = vector.extract_strided_slice %359 {offsets = [0, 0], sizes = [2, 32], strides = [1, 1]} : vector<2x96xf32> to vector<2x32xf32>
    %361 = vector.extract_strided_slice %359 {offsets = [0, 32], sizes = [2, 32], strides = [1, 1]} : vector<2x96xf32> to vector<2x32xf32>
    %362 = vector.extract_strided_slice %359 {offsets = [0, 64], sizes = [2, 32], strides = [1, 1]} : vector<2x96xf32> to vector<2x32xf32>
    %363 = vector.extract_strided_slice %333 {offsets = [0, 96], sizes = [2, 32], strides = [1, 1]} : vector<2x128xf32> to vector<2x32xf32>
    %364 = math.tanh %363 : vector<2x32xf32>
    %365 = arith.mulf %361, %321 : vector<2x32xf32>
    %366 = arith.mulf %360, %364 : vector<2x32xf32>
    %367 = arith.addf %365, %366 : vector<2x32xf32>
    %368 = math.tanh %367 : vector<2x32xf32>
    %369 = arith.mulf %362, %368 : vector<2x32xf32>
    %370 = arith.select %327, %369, %320 : vector<2x32xi1>, vector<2x32xf32>
    %371 = arith.select %327, %367, %321 : vector<2x32xi1>, vector<2x32xf32>
    %cst_73 = arith.constant 0.000000e+00 : f32
    %372 = vector.broadcast %cst_73 : f32 to vector<2x32xf32>
    %373 = arith.select %327, %369, %372 : vector<2x32xi1>, vector<2x32xf32>
    %c12_74 = arith.constant 12 : index
    %c0_75 = arith.constant 0 : index
    %374 = vector.load %arg11[%c12_74, %c0_75] : memref<16x64xf32, #tpu.memory_space<vmem>>, vector<2x32xf32>
    tpu.vector_store %arg11[%c12_74, %c0_75], %353 {strides = array<i32>} : memref<16x64xf32, #tpu.memory_space<vmem>>, vector<2x32xf32>,
    %c2_76 = arith.constant 2 : index
    %c32_77 = arith.constant 32 : index
    %375 = vector.load %arg11[%c2_76, %c32_77] : memref<16x64xf32, #tpu.memory_space<vmem>>, vector<2x32xf32>
    tpu.vector_store %arg11[%c2_76, %c32_77], %373 {strides = array<i32>} : memref<16x64xf32, #tpu.memory_space<vmem>>, vector<2x32xf32>,
    %376 = vector.extract_strided_slice %13 {offsets = [14, 0], sizes = [2, 32], strides = [1, 1]} : vector<16x32xi1> to vector<2x32xi1>
    %377 = vector.extract_strided_slice %13 {offsets = [0, 0], sizes = [2, 32], strides = [1, 1]} : vector<16x32xi1> to vector<2x32xi1>
    %cst_78 = arith.constant dense<0.000000e+00> : vector<2x128xf32>
    %378 = tpu.matmul %350, %20, %cst_78 {dimension_numbers = #tpu.dot_dimension_numbers<[1], [0], [0], [1], [0, 0, 1, 1], [], []>} : vector<2x32xf32>, vector<32x128xf32>, vector<2x128xf32> -> vector<2x128xf32>
    %379 = vector.extract_strided_slice %19 {offsets = [14, 0], sizes = [2, 128], strides = [1, 1]} : vector<16x256xf32> to vector<2x128xf32>
    %380 = arith.addf %378, %379 : vector<2x128xf32>
    %cst_79 = arith.constant dense<0.000000e+00> : vector<2x128xf32>
    %381 = tpu.matmul %370, %21, %cst_79 {dimension_numbers = #tpu.dot_dimension_numbers<[1], [0], [0], [1], [0, 0, 1, 1], [], []>} : vector<2x32xf32>, vector<32x128xf32>, vector<2x128xf32> -> vector<2x128xf32>
    %382 = vector.extract_strided_slice %19 {offsets = [0, 128], sizes = [2, 128], strides = [1, 1]} : vector<16x256xf32> to vector<2x128xf32>
    %383 = arith.addf %381, %382 : vector<2x128xf32>
    %384 = vector.extract_strided_slice %380 {offsets = [0, 0], sizes = [2, 96], strides = [1, 1]} : vector<2x128xf32> to vector<2x96xf32>
    %385 = arith.negf %384 : vector<2x96xf32>
    %386 = math.exp %385 : vector<2x96xf32>
    %cst_80 = arith.constant 1.000000e+00 : f32
    %387 = vector.broadcast %cst_80 : f32 to vector<2x96xf32>
    %388 = arith.addf %387, %386 : vector<2x96xf32>
    %389 = arith.divf %387, %388 : vector<2x96xf32>
    %390 = vector.extract_strided_slice %389 {offsets = [0, 0], sizes = [2, 32], strides = [1, 1]} : vector<2x96xf32> to vector<2x32xf32>
    %391 = vector.extract_strided_slice %389 {offsets = [0, 32], sizes = [2, 32], strides = [1, 1]} : vector<2x96xf32> to vector<2x32xf32>
    %392 = vector.extract_strided_slice %389 {offsets = [0, 64], sizes = [2, 32], strides = [1, 1]} : vector<2x96xf32> to vector<2x32xf32>
    %393 = vector.extract_strided_slice %380 {offsets = [0, 96], sizes = [2, 32], strides = [1, 1]} : vector<2x128xf32> to vector<2x32xf32>
    %394 = math.tanh %393 : vector<2x32xf32>
    %395 = arith.mulf %391, %351 : vector<2x32xf32>
    %396 = arith.mulf %390, %394 : vector<2x32xf32>
    %397 = arith.addf %395, %396 : vector<2x32xf32>
    %398 = math.tanh %397 : vector<2x32xf32>
    %399 = arith.mulf %392, %398 : vector<2x32xf32>
    %cst_81 = arith.constant 0.000000e+00 : f32
    %400 = vector.broadcast %cst_81 : f32 to vector<2x32xf32>
    %401 = arith.select %376, %399, %400 : vector<2x32xi1>, vector<2x32xf32>
    %402 = vector.extract_strided_slice %383 {offsets = [0, 0], sizes = [2, 96], strides = [1, 1]} : vector<2x128xf32> to vector<2x96xf32>
    %403 = arith.negf %402 : vector<2x96xf32>
    %404 = math.exp %403 : vector<2x96xf32>
    %cst_82 = arith.constant 1.000000e+00 : f32
    %405 = vector.broadcast %cst_82 : f32 to vector<2x96xf32>
    %406 = arith.addf %405, %404 : vector<2x96xf32>
    %407 = arith.divf %405, %406 : vector<2x96xf32>
    %408 = vector.extract_strided_slice %407 {offsets = [0, 0], sizes = [2, 32], strides = [1, 1]} : vector<2x96xf32> to vector<2x32xf32>
    %409 = vector.extract_strided_slice %407 {offsets = [0, 32], sizes = [2, 32], strides = [1, 1]} : vector<2x96xf32> to vector<2x32xf32>
    %410 = vector.extract_strided_slice %407 {offsets = [0, 64], sizes = [2, 32], strides = [1, 1]} : vector<2x96xf32> to vector<2x32xf32>
    %411 = vector.extract_strided_slice %383 {offsets = [0, 96], sizes = [2, 32], strides = [1, 1]} : vector<2x128xf32> to vector<2x32xf32>
    %412 = math.tanh %411 : vector<2x32xf32>
    %413 = arith.mulf %409, %371 : vector<2x32xf32>
    %414 = arith.mulf %408, %412 : vector<2x32xf32>
    %415 = arith.addf %413, %414 : vector<2x32xf32>
    %416 = math.tanh %415 : vector<2x32xf32>
    %417 = arith.mulf %410, %416 : vector<2x32xf32>
    %cst_83 = arith.constant 0.000000e+00 : f32
    %418 = vector.broadcast %cst_83 : f32 to vector<2x32xf32>
    %419 = arith.select %377, %417, %418 : vector<2x32xi1>, vector<2x32xf32>
    %c14_84 = arith.constant 14 : index
    %c0_85 = arith.constant 0 : index
    %420 = vector.load %arg11[%c14_84, %c0_85] : memref<16x64xf32, #tpu.memory_space<vmem>>, vector<2x32xf32>
    tpu.vector_store %arg11[%c14_84, %c0_85], %401 {strides = array<i32>} : memref<16x64xf32, #tpu.memory_space<vmem>>, vector<2x32xf32>,
    %c0_86 = arith.constant 0 : index
    %c32_87 = arith.constant 32 : index
    %421 = vector.load %arg11[%c0_86, %c32_87] : memref<16x64xf32, #tpu.memory_space<vmem>>, vector<2x32xf32>
    tpu.vector_store %arg11[%c0_86, %c32_87], %419 {strides = array<i32>} : memref<16x64xf32, #tpu.memory_space<vmem>>, vector<2x32xf32>,
    %c0_88 = arith.constant 0 : index
    %c0_89 = arith.constant 0 : index
    %422 = vector.load %arg11[%c0_88, %c0_89] : memref<16x64xf32, #tpu.memory_space<vmem>>, vector<16x64xf32>
    %c0_90 = arith.constant 0 : index
    %c0_91 = arith.constant 0 : index
    %423 = vector.load %arg5[%c0_90, %c0_91] : memref<64x256xf32, #tpu.memory_space<vmem>>, vector<64x256xf32>
    %c0_92 = arith.constant 0 : index
    %c0_93 = arith.constant 0 : index
    %424 = vector.load %arg6[%c0_92, %c0_93] : memref<32x256xf32, #tpu.memory_space<vmem>>, vector<32x256xf32>
    %c0_94 = arith.constant 0 : index
    %c0_95 = arith.constant 0 : index
    %425 = vector.load %arg7[%c0_94, %c0_95] : memref<1x256xf32, #tpu.memory_space<vmem>>, vector<1x256xf32>
    %cst_96 = arith.constant dense<0.000000e+00> : vector<16x256xf32>
    %426 = tpu.matmul %422, %423, %cst_96 {dimension_numbers = #tpu.dot_dimension_numbers<[1], [0], [0], [1], [0, 0, 1, 1], [], []>} : vector<16x64xf32>, vector<64x256xf32>, vector<16x256xf32> -> vector<16x256xf32>
    %427 = vector.broadcast %425 : vector<1x256xf32> to vector<16x256xf32>
    %428 = arith.addf %426, %427 : vector<16x256xf32>
    %429 = vector.extract_strided_slice %424 {offsets = [0, 0], sizes = [32, 128], strides = [1, 1]} : vector<32x256xf32> to vector<32x128xf32>
    %430 = vector.extract_strided_slice %424 {offsets = [0, 128], sizes = [32, 128], strides = [1, 1]} : vector<32x256xf32> to vector<32x128xf32>
    %cst_97 = arith.constant 0.000000e+00 : f32
    %431 = vector.broadcast %cst_97 : f32 to vector<2x32xf32>
    %cst_98 = arith.constant 0.000000e+00 : f32
    %432 = vector.broadcast %cst_98 : f32 to vector<2x32xf32>
    %cst_99 = arith.constant 0.000000e+00 : f32
    %433 = vector.broadcast %cst_99 : f32 to vector<2x32xf32>
    %cst_100 = arith.constant 0.000000e+00 : f32
    %434 = vector.broadcast %cst_100 : f32 to vector<2x32xf32>
    %435 = vector.extract_strided_slice %13 {offsets = [0, 0], sizes = [2, 32], strides = [1, 1]} : vector<16x32xi1> to vector<2x32xi1>
    %436 = vector.extract_strided_slice %13 {offsets = [14, 0], sizes = [2, 32], strides = [1, 1]} : vector<16x32xi1> to vector<2x32xi1>
    %cst_101 = arith.constant dense<0.000000e+00> : vector<2x128xf32>
    %437 = tpu.matmul %431, %429, %cst_101 {dimension_numbers = #tpu.dot_dimension_numbers<[1], [0], [0], [1], [0, 0, 1, 1], [], []>} : vector<2x32xf32>, vector<32x128xf32>, vector<2x128xf32> -> vector<2x128xf32>
    %438 = vector.extract_strided_slice %428 {offsets = [0, 0], sizes = [2, 128], strides = [1, 1]} : vector<16x256xf32> to vector<2x128xf32>
    %439 = arith.addf %437, %438 : vector<2x128xf32>
    %cst_102 = arith.constant dense<0.000000e+00> : vector<2x128xf32>
    %440 = tpu.matmul %433, %430, %cst_102 {dimension_numbers = #tpu.dot_dimension_numbers<[1], [0], [0], [1], [0, 0, 1, 1], [], []>} : vector<2x32xf32>, vector<32x128xf32>, vector<2x128xf32> -> vector<2x128xf32>
    %441 = vector.extract_strided_slice %428 {offsets = [14, 128], sizes = [2, 128], strides = [1, 1]} : vector<16x256xf32> to vector<2x128xf32>
    %442 = arith.addf %440, %441 : vector<2x128xf32>
    %443 = vector.extract_strided_slice %439 {offsets = [0, 0], sizes = [2, 96], strides = [1, 1]} : vector<2x128xf32> to vector<2x96xf32>
    %444 = arith.negf %443 : vector<2x96xf32>
    %445 = math.exp %444 : vector<2x96xf32>
    %cst_103 = arith.constant 1.000000e+00 : f32
    %446 = vector.broadcast %cst_103 : f32 to vector<2x96xf32>
    %447 = arith.addf %446, %445 : vector<2x96xf32>
    %448 = arith.divf %446, %447 : vector<2x96xf32>
    %449 = vector.extract_strided_slice %448 {offsets = [0, 0], sizes = [2, 32], strides = [1, 1]} : vector<2x96xf32> to vector<2x32xf32>
    %450 = vector.extract_strided_slice %448 {offsets = [0, 32], sizes = [2, 32], strides = [1, 1]} : vector<2x96xf32> to vector<2x32xf32>
    %451 = vector.extract_strided_slice %448 {offsets = [0, 64], sizes = [2, 32], strides = [1, 1]} : vector<2x96xf32> to vector<2x32xf32>
    %452 = vector.extract_strided_slice %439 {offsets = [0, 96], sizes = [2, 32], strides = [1, 1]} : vector<2x128xf32> to vector<2x32xf32>
    %453 = math.tanh %452 : vector<2x32xf32>
    %454 = arith.mulf %450, %432 : vector<2x32xf32>
    %455 = arith.mulf %449, %453 : vector<2x32xf32>
    %456 = arith.addf %454, %455 : vector<2x32xf32>
    %457 = math.tanh %456 : vector<2x32xf32>
    %458 = arith.mulf %451, %457 : vector<2x32xf32>
    %459 = arith.select %435, %458, %431 : vector<2x32xi1>, vector<2x32xf32>
    %460 = arith.select %435, %456, %432 : vector<2x32xi1>, vector<2x32xf32>
    %cst_104 = arith.constant 0.000000e+00 : f32
    %461 = vector.broadcast %cst_104 : f32 to vector<2x32xf32>
    %462 = arith.select %435, %458, %461 : vector<2x32xi1>, vector<2x32xf32>
    %463 = vector.extract_strided_slice %442 {offsets = [0, 0], sizes = [2, 96], strides = [1, 1]} : vector<2x128xf32> to vector<2x96xf32>
    %464 = arith.negf %463 : vector<2x96xf32>
    %465 = math.exp %464 : vector<2x96xf32>
    %cst_105 = arith.constant 1.000000e+00 : f32
    %466 = vector.broadcast %cst_105 : f32 to vector<2x96xf32>
    %467 = arith.addf %466, %465 : vector<2x96xf32>
    %468 = arith.divf %466, %467 : vector<2x96xf32>
    %469 = vector.extract_strided_slice %468 {offsets = [0, 0], sizes = [2, 32], strides = [1, 1]} : vector<2x96xf32> to vector<2x32xf32>
    %470 = vector.extract_strided_slice %468 {offsets = [0, 32], sizes = [2, 32], strides = [1, 1]} : vector<2x96xf32> to vector<2x32xf32>
    %471 = vector.extract_strided_slice %468 {offsets = [0, 64], sizes = [2, 32], strides = [1, 1]} : vector<2x96xf32> to vector<2x32xf32>
    %472 = vector.extract_strided_slice %442 {offsets = [0, 96], sizes = [2, 32], strides = [1, 1]} : vector<2x128xf32> to vector<2x32xf32>
    %473 = math.tanh %472 : vector<2x32xf32>
    %474 = arith.mulf %470, %434 : vector<2x32xf32>
    %475 = arith.mulf %469, %473 : vector<2x32xf32>
    %476 = arith.addf %474, %475 : vector<2x32xf32>
    %477 = math.tanh %476 : vector<2x32xf32>
    %478 = arith.mulf %471, %477 : vector<2x32xf32>
    %479 = arith.select %436, %478, %433 : vector<2x32xi1>, vector<2x32xf32>
    %480 = arith.select %436, %476, %434 : vector<2x32xi1>, vector<2x32xf32>
    %cst_106 = arith.constant 0.000000e+00 : f32
    %481 = vector.broadcast %cst_106 : f32 to vector<2x32xf32>
    %482 = arith.select %436, %478, %481 : vector<2x32xi1>, vector<2x32xf32>
    %c0_107 = arith.constant 0 : index
    %c0_108 = arith.constant 0 : index
    %483 = vector.load %arg11[%c0_107, %c0_108] : memref<16x64xf32, #tpu.memory_space<vmem>>, vector<2x32xf32>
    tpu.vector_store %arg11[%c0_107, %c0_108], %462 {strides = array<i32>} : memref<16x64xf32, #tpu.memory_space<vmem>>, vector<2x32xf32>,
    %c14_109 = arith.constant 14 : index
    %c32_110 = arith.constant 32 : index
    %484 = vector.load %arg11[%c14_109, %c32_110] : memref<16x64xf32, #tpu.memory_space<vmem>>, vector<2x32xf32>
    tpu.vector_store %arg11[%c14_109, %c32_110], %482 {strides = array<i32>} : memref<16x64xf32, #tpu.memory_space<vmem>>, vector<2x32xf32>,
    %485 = vector.extract_strided_slice %13 {offsets = [2, 0], sizes = [2, 32], strides = [1, 1]} : vector<16x32xi1> to vector<2x32xi1>
    %486 = vector.extract_strided_slice %13 {offsets = [12, 0], sizes = [2, 32], strides = [1, 1]} : vector<16x32xi1> to vector<2x32xi1>
    %cst_111 = arith.constant dense<0.000000e+00> : vector<2x128xf32>
    %487 = tpu.matmul %459, %429, %cst_111 {dimension_numbers = #tpu.dot_dimension_numbers<[1], [0], [0], [1], [0, 0, 1, 1], [], []>} : vector<2x32xf32>, vector<32x128xf32>, vector<2x128xf32> -> vector<2x128xf32>
    %488 = vector.extract_strided_slice %428 {offsets = [2, 0], sizes = [2, 128], strides = [1, 1]} : vector<16x256xf32> to vector<2x128xf32>
    %489 = arith.addf %487, %488 : vector<2x128xf32>
    %cst_112 = arith.constant dense<0.000000e+00> : vector<2x128xf32>
    %490 = tpu.matmul %479, %430, %cst_112 {dimension_numbers = #tpu.dot_dimension_numbers<[1], [0], [0], [1], [0, 0, 1, 1], [], []>} : vector<2x32xf32>, vector<32x128xf32>, vector<2x128xf32> -> vector<2x128xf32>
    %491 = vector.extract_strided_slice %428 {offsets = [12, 128], sizes = [2, 128], strides = [1, 1]} : vector<16x256xf32> to vector<2x128xf32>
    %492 = arith.addf %490, %491 : vector<2x128xf32>
    %493 = vector.extract_strided_slice %489 {offsets = [0, 0], sizes = [2, 96], strides = [1, 1]} : vector<2x128xf32> to vector<2x96xf32>
    %494 = arith.negf %493 : vector<2x96xf32>
    %495 = math.exp %494 : vector<2x96xf32>
    %cst_113 = arith.constant 1.000000e+00 : f32
    %496 = vector.broadcast %cst_113 : f32 to vector<2x96xf32>
    %497 = arith.addf %496, %495 : vector<2x96xf32>
    %498 = arith.divf %496, %497 : vector<2x96xf32>
    %499 = vector.extract_strided_slice %498 {offsets = [0, 0], sizes = [2, 32], strides = [1, 1]} : vector<2x96xf32> to vector<2x32xf32>
    %500 = vector.extract_strided_slice %498 {offsets = [0, 32], sizes = [2, 32], strides = [1, 1]} : vector<2x96xf32> to vector<2x32xf32>
    %501 = vector.extract_strided_slice %498 {offsets = [0, 64], sizes = [2, 32], strides = [1, 1]} : vector<2x96xf32> to vector<2x32xf32>
    %502 = vector.extract_strided_slice %489 {offsets = [0, 96], sizes = [2, 32], strides = [1, 1]} : vector<2x128xf32> to vector<2x32xf32>
    %503 = math.tanh %502 : vector<2x32xf32>
    %504 = arith.mulf %500, %460 : vector<2x32xf32>
    %505 = arith.mulf %499, %503 : vector<2x32xf32>
    %506 = arith.addf %504, %505 : vector<2x32xf32>
    %507 = math.tanh %506 : vector<2x32xf32>
    %508 = arith.mulf %501, %507 : vector<2x32xf32>
    %509 = arith.select %485, %508, %459 : vector<2x32xi1>, vector<2x32xf32>
    %510 = arith.select %485, %506, %460 : vector<2x32xi1>, vector<2x32xf32>
    %cst_114 = arith.constant 0.000000e+00 : f32
    %511 = vector.broadcast %cst_114 : f32 to vector<2x32xf32>
    %512 = arith.select %485, %508, %511 : vector<2x32xi1>, vector<2x32xf32>
    %513 = vector.extract_strided_slice %492 {offsets = [0, 0], sizes = [2, 96], strides = [1, 1]} : vector<2x128xf32> to vector<2x96xf32>
    %514 = arith.negf %513 : vector<2x96xf32>
    %515 = math.exp %514 : vector<2x96xf32>
    %cst_115 = arith.constant 1.000000e+00 : f32
    %516 = vector.broadcast %cst_115 : f32 to vector<2x96xf32>
    %517 = arith.addf %516, %515 : vector<2x96xf32>
    %518 = arith.divf %516, %517 : vector<2x96xf32>
    %519 = vector.extract_strided_slice %518 {offsets = [0, 0], sizes = [2, 32], strides = [1, 1]} : vector<2x96xf32> to vector<2x32xf32>
    %520 = vector.extract_strided_slice %518 {offsets = [0, 32], sizes = [2, 32], strides = [1, 1]} : vector<2x96xf32> to vector<2x32xf32>
    %521 = vector.extract_strided_slice %518 {offsets = [0, 64], sizes = [2, 32], strides = [1, 1]} : vector<2x96xf32> to vector<2x32xf32>
    %522 = vector.extract_strided_slice %492 {offsets = [0, 96], sizes = [2, 32], strides = [1, 1]} : vector<2x128xf32> to vector<2x32xf32>
    %523 = math.tanh %522 : vector<2x32xf32>
    %524 = arith.mulf %520, %480 : vector<2x32xf32>
    %525 = arith.mulf %519, %523 : vector<2x32xf32>
    %526 = arith.addf %524, %525 : vector<2x32xf32>
    %527 = math.tanh %526 : vector<2x32xf32>
    %528 = arith.mulf %521, %527 : vector<2x32xf32>
    %529 = arith.select %486, %528, %479 : vector<2x32xi1>, vector<2x32xf32>
    %530 = arith.select %486, %526, %480 : vector<2x32xi1>, vector<2x32xf32>
    %cst_116 = arith.constant 0.000000e+00 : f32
    %531 = vector.broadcast %cst_116 : f32 to vector<2x32xf32>
    %532 = arith.select %486, %528, %531 : vector<2x32xi1>, vector<2x32xf32>
    %c2_117 = arith.constant 2 : index
    %c0_118 = arith.constant 0 : index
    %533 = vector.load %arg11[%c2_117, %c0_118] : memref<16x64xf32, #tpu.memory_space<vmem>>, vector<2x32xf32>
    tpu.vector_store %arg11[%c2_117, %c0_118], %512 {strides = array<i32>} : memref<16x64xf32, #tpu.memory_space<vmem>>, vector<2x32xf32>,
    %c12_119 = arith.constant 12 : index
    %c32_120 = arith.constant 32 : index
    %534 = vector.load %arg11[%c12_119, %c32_120] : memref<16x64xf32, #tpu.memory_space<vmem>>, vector<2x32xf32>
    tpu.vector_store %arg11[%c12_119, %c32_120], %532 {strides = array<i32>} : memref<16x64xf32, #tpu.memory_space<vmem>>, vector<2x32xf32>,
    %535 = vector.extract_strided_slice %13 {offsets = [4, 0], sizes = [2, 32], strides = [1, 1]} : vector<16x32xi1> to vector<2x32xi1>
    %536 = vector.extract_strided_slice %13 {offsets = [10, 0], sizes = [2, 32], strides = [1, 1]} : vector<16x32xi1> to vector<2x32xi1>
    %cst_121 = arith.constant dense<0.000000e+00> : vector<2x128xf32>
    %537 = tpu.matmul %509, %429, %cst_121 {dimension_numbers = #tpu.dot_dimension_numbers<[1], [0], [0], [1], [0, 0, 1, 1], [], []>} : vector<2x32xf32>, vector<32x128xf32>, vector<2x128xf32> -> vector<2x128xf32>
    %538 = vector.extract_strided_slice %428 {offsets = [4, 0], sizes = [2, 128], strides = [1, 1]} : vector<16x256xf32> to vector<2x128xf32>
    %539 = arith.addf %537, %538 : vector<2x128xf32>
    %cst_122 = arith.constant dense<0.000000e+00> : vector<2x128xf32>
    %540 = tpu.matmul %529, %430, %cst_122 {dimension_numbers = #tpu.dot_dimension_numbers<[1], [0], [0], [1], [0, 0, 1, 1], [], []>} : vector<2x32xf32>, vector<32x128xf32>, vector<2x128xf32> -> vector<2x128xf32>
    %541 = vector.extract_strided_slice %428 {offsets = [10, 128], sizes = [2, 128], strides = [1, 1]} : vector<16x256xf32> to vector<2x128xf32>
    %542 = arith.addf %540, %541 : vector<2x128xf32>
    %543 = vector.extract_strided_slice %539 {offsets = [0, 0], sizes = [2, 96], strides = [1, 1]} : vector<2x128xf32> to vector<2x96xf32>
    %544 = arith.negf %543 : vector<2x96xf32>
    %545 = math.exp %544 : vector<2x96xf32>
    %cst_123 = arith.constant 1.000000e+00 : f32
    %546 = vector.broadcast %cst_123 : f32 to vector<2x96xf32>
    %547 = arith.addf %546, %545 : vector<2x96xf32>
    %548 = arith.divf %546, %547 : vector<2x96xf32>
    %549 = vector.extract_strided_slice %548 {offsets = [0, 0], sizes = [2, 32], strides = [1, 1]} : vector<2x96xf32> to vector<2x32xf32>
    %550 = vector.extract_strided_slice %548 {offsets = [0, 32], sizes = [2, 32], strides = [1, 1]} : vector<2x96xf32> to vector<2x32xf32>
    %551 = vector.extract_strided_slice %548 {offsets = [0, 64], sizes = [2, 32], strides = [1, 1]} : vector<2x96xf32> to vector<2x32xf32>
    %552 = vector.extract_strided_slice %539 {offsets = [0, 96], sizes = [2, 32], strides = [1, 1]} : vector<2x128xf32> to vector<2x32xf32>
    %553 = math.tanh %552 : vector<2x32xf32>
    %554 = arith.mulf %550, %510 : vector<2x32xf32>
    %555 = arith.mulf %549, %553 : vector<2x32xf32>
    %556 = arith.addf %554, %555 : vector<2x32xf32>
    %557 = math.tanh %556 : vector<2x32xf32>
    %558 = arith.mulf %551, %557 : vector<2x32xf32>
    %559 = arith.select %535, %558, %509 : vector<2x32xi1>, vector<2x32xf32>
    %560 = arith.select %535, %556, %510 : vector<2x32xi1>, vector<2x32xf32>
    %cst_124 = arith.constant 0.000000e+00 : f32
    %561 = vector.broadcast %cst_124 : f32 to vector<2x32xf32>
    %562 = arith.select %535, %558, %561 : vector<2x32xi1>, vector<2x32xf32>
    %563 = vector.extract_strided_slice %542 {offsets = [0, 0], sizes = [2, 96], strides = [1, 1]} : vector<2x128xf32> to vector<2x96xf32>
    %564 = arith.negf %563 : vector<2x96xf32>
    %565 = math.exp %564 : vector<2x96xf32>
    %cst_125 = arith.constant 1.000000e+00 : f32
    %566 = vector.broadcast %cst_125 : f32 to vector<2x96xf32>
    %567 = arith.addf %566, %565 : vector<2x96xf32>
    %568 = arith.divf %566, %567 : vector<2x96xf32>
    %569 = vector.extract_strided_slice %568 {offsets = [0, 0], sizes = [2, 32], strides = [1, 1]} : vector<2x96xf32> to vector<2x32xf32>
    %570 = vector.extract_strided_slice %568 {offsets = [0, 32], sizes = [2, 32], strides = [1, 1]} : vector<2x96xf32> to vector<2x32xf32>
    %571 = vector.extract_strided_slice %568 {offsets = [0, 64], sizes = [2, 32], strides = [1, 1]} : vector<2x96xf32> to vector<2x32xf32>
    %572 = vector.extract_strided_slice %542 {offsets = [0, 96], sizes = [2, 32], strides = [1, 1]} : vector<2x128xf32> to vector<2x32xf32>
    %573 = math.tanh %572 : vector<2x32xf32>
    %574 = arith.mulf %570, %530 : vector<2x32xf32>
    %575 = arith.mulf %569, %573 : vector<2x32xf32>
    %576 = arith.addf %574, %575 : vector<2x32xf32>
    %577 = math.tanh %576 : vector<2x32xf32>
    %578 = arith.mulf %571, %577 : vector<2x32xf32>
    %579 = arith.select %536, %578, %529 : vector<2x32xi1>, vector<2x32xf32>
    %580 = arith.select %536, %576, %530 : vector<2x32xi1>, vector<2x32xf32>
    %cst_126 = arith.constant 0.000000e+00 : f32
    %581 = vector.broadcast %cst_126 : f32 to vector<2x32xf32>
    %582 = arith.select %536, %578, %581 : vector<2x32xi1>, vector<2x32xf32>
    %c4_127 = arith.constant 4 : index
    %c0_128 = arith.constant 0 : index
    %583 = vector.load %arg11[%c4_127, %c0_128] : memref<16x64xf32, #tpu.memory_space<vmem>>, vector<2x32xf32>
    tpu.vector_store %arg11[%c4_127, %c0_128], %562 {strides = array<i32>} : memref<16x64xf32, #tpu.memory_space<vmem>>, vector<2x32xf32>,
    %c10_129 = arith.constant 10 : index
    %c32_130 = arith.constant 32 : index
    %584 = vector.load %arg11[%c10_129, %c32_130] : memref<16x64xf32, #tpu.memory_space<vmem>>, vector<2x32xf32>
    tpu.vector_store %arg11[%c10_129, %c32_130], %582 {strides = array<i32>} : memref<16x64xf32, #tpu.memory_space<vmem>>, vector<2x32xf32>,
    %585 = vector.extract_strided_slice %13 {offsets = [6, 0], sizes = [2, 32], strides = [1, 1]} : vector<16x32xi1> to vector<2x32xi1>
    %586 = vector.extract_strided_slice %13 {offsets = [8, 0], sizes = [2, 32], strides = [1, 1]} : vector<16x32xi1> to vector<2x32xi1>
    %cst_131 = arith.constant dense<0.000000e+00> : vector<2x128xf32>
    %587 = tpu.matmul %559, %429, %cst_131 {dimension_numbers = #tpu.dot_dimension_numbers<[1], [0], [0], [1], [0, 0, 1, 1], [], []>} : vector<2x32xf32>, vector<32x128xf32>, vector<2x128xf32> -> vector<2x128xf32>
    %588 = vector.extract_strided_slice %428 {offsets = [6, 0], sizes = [2, 128], strides = [1, 1]} : vector<16x256xf32> to vector<2x128xf32>
    %589 = arith.addf %587, %588 : vector<2x128xf32>
    %cst_132 = arith.constant dense<0.000000e+00> : vector<2x128xf32>
    %590 = tpu.matmul %579, %430, %cst_132 {dimension_numbers = #tpu.dot_dimension_numbers<[1], [0], [0], [1], [0, 0, 1, 1], [], []>} : vector<2x32xf32>, vector<32x128xf32>, vector<2x128xf32> -> vector<2x128xf32>
    %591 = vector.extract_strided_slice %428 {offsets = [8, 128], sizes = [2, 128], strides = [1, 1]} : vector<16x256xf32> to vector<2x128xf32>
    %592 = arith.addf %590, %591 : vector<2x128xf32>
    %593 = vector.extract_strided_slice %589 {offsets = [0, 0], sizes = [2, 96], strides = [1, 1]} : vector<2x128xf32> to vector<2x96xf32>
    %594 = arith.negf %593 : vector<2x96xf32>
    %595 = math.exp %594 : vector<2x96xf32>
    %cst_133 = arith.constant 1.000000e+00 : f32
    %596 = vector.broadcast %cst_133 : f32 to vector<2x96xf32>
    %597 = arith.addf %596, %595 : vector<2x96xf32>
    %598 = arith.divf %596, %597 : vector<2x96xf32>
    %599 = vector.extract_strided_slice %598 {offsets = [0, 0], sizes = [2, 32], strides = [1, 1]} : vector<2x96xf32> to vector<2x32xf32>
    %600 = vector.extract_strided_slice %598 {offsets = [0, 32], sizes = [2, 32], strides = [1, 1]} : vector<2x96xf32> to vector<2x32xf32>
    %601 = vector.extract_strided_slice %598 {offsets = [0, 64], sizes = [2, 32], strides = [1, 1]} : vector<2x96xf32> to vector<2x32xf32>
    %602 = vector.extract_strided_slice %589 {offsets = [0, 96], sizes = [2, 32], strides = [1, 1]} : vector<2x128xf32> to vector<2x32xf32>
    %603 = math.tanh %602 : vector<2x32xf32>
    %604 = arith.mulf %600, %560 : vector<2x32xf32>
    %605 = arith.mulf %599, %603 : vector<2x32xf32>
    %606 = arith.addf %604, %605 : vector<2x32xf32>
    %607 = math.tanh %606 : vector<2x32xf32>
    %608 = arith.mulf %601, %607 : vector<2x32xf32>
    %609 = arith.select %585, %608, %559 : vector<2x32xi1>, vector<2x32xf32>
    %610 = arith.select %585, %606, %560 : vector<2x32xi1>, vector<2x32xf32>
    %cst_134 = arith.constant 0.000000e+00 : f32
    %611 = vector.broadcast %cst_134 : f32 to vector<2x32xf32>
    %612 = arith.select %585, %608, %611 : vector<2x32xi1>, vector<2x32xf32>
    %613 = vector.extract_strided_slice %592 {offsets = [0, 0], sizes = [2, 96], strides = [1, 1]} : vector<2x128xf32> to vector<2x96xf32>
    %614 = arith.negf %613 : vector<2x96xf32>
    %615 = math.exp %614 : vector<2x96xf32>
    %cst_135 = arith.constant 1.000000e+00 : f32
    %616 = vector.broadcast %cst_135 : f32 to vector<2x96xf32>
    %617 = arith.addf %616, %615 : vector<2x96xf32>
    %618 = arith.divf %616, %617 : vector<2x96xf32>
    %619 = vector.extract_strided_slice %618 {offsets = [0, 0], sizes = [2, 32], strides = [1, 1]} : vector<2x96xf32> to vector<2x32xf32>
    %620 = vector.extract_strided_slice %618 {offsets = [0, 32], sizes = [2, 32], strides = [1, 1]} : vector<2x96xf32> to vector<2x32xf32>
    %621 = vector.extract_strided_slice %618 {offsets = [0, 64], sizes = [2, 32], strides = [1, 1]} : vector<2x96xf32> to vector<2x32xf32>
    %622 = vector.extract_strided_slice %592 {offsets = [0, 96], sizes = [2, 32], strides = [1, 1]} : vector<2x128xf32> to vector<2x32xf32>
    %623 = math.tanh %622 : vector<2x32xf32>
    %624 = arith.mulf %620, %580 : vector<2x32xf32>
    %625 = arith.mulf %619, %623 : vector<2x32xf32>
    %626 = arith.addf %624, %625 : vector<2x32xf32>
    %627 = math.tanh %626 : vector<2x32xf32>
    %628 = arith.mulf %621, %627 : vector<2x32xf32>
    %629 = arith.select %586, %628, %579 : vector<2x32xi1>, vector<2x32xf32>
    %630 = arith.select %586, %626, %580 : vector<2x32xi1>, vector<2x32xf32>
    %cst_136 = arith.constant 0.000000e+00 : f32
    %631 = vector.broadcast %cst_136 : f32 to vector<2x32xf32>
    %632 = arith.select %586, %628, %631 : vector<2x32xi1>, vector<2x32xf32>
    %c6_137 = arith.constant 6 : index
    %c0_138 = arith.constant 0 : index
    %633 = vector.load %arg11[%c6_137, %c0_138] : memref<16x64xf32, #tpu.memory_space<vmem>>, vector<2x32xf32>
    tpu.vector_store %arg11[%c6_137, %c0_138], %612 {strides = array<i32>} : memref<16x64xf32, #tpu.memory_space<vmem>>, vector<2x32xf32>,
    %c8_139 = arith.constant 8 : index
    %c32_140 = arith.constant 32 : index
    %634 = vector.load %arg11[%c8_139, %c32_140] : memref<16x64xf32, #tpu.memory_space<vmem>>, vector<2x32xf32>
    tpu.vector_store %arg11[%c8_139, %c32_140], %632 {strides = array<i32>} : memref<16x64xf32, #tpu.memory_space<vmem>>, vector<2x32xf32>,
    %635 = vector.extract_strided_slice %13 {offsets = [8, 0], sizes = [2, 32], strides = [1, 1]} : vector<16x32xi1> to vector<2x32xi1>
    %636 = vector.extract_strided_slice %13 {offsets = [6, 0], sizes = [2, 32], strides = [1, 1]} : vector<16x32xi1> to vector<2x32xi1>
    %cst_141 = arith.constant dense<0.000000e+00> : vector<2x128xf32>
    %637 = tpu.matmul %609, %429, %cst_141 {dimension_numbers = #tpu.dot_dimension_numbers<[1], [0], [0], [1], [0, 0, 1, 1], [], []>} : vector<2x32xf32>, vector<32x128xf32>, vector<2x128xf32> -> vector<2x128xf32>
    %638 = vector.extract_strided_slice %428 {offsets = [8, 0], sizes = [2, 128], strides = [1, 1]} : vector<16x256xf32> to vector<2x128xf32>
    %639 = arith.addf %637, %638 : vector<2x128xf32>
    %cst_142 = arith.constant dense<0.000000e+00> : vector<2x128xf32>
    %640 = tpu.matmul %629, %430, %cst_142 {dimension_numbers = #tpu.dot_dimension_numbers<[1], [0], [0], [1], [0, 0, 1, 1], [], []>} : vector<2x32xf32>, vector<32x128xf32>, vector<2x128xf32> -> vector<2x128xf32>
    %641 = vector.extract_strided_slice %428 {offsets = [6, 128], sizes = [2, 128], strides = [1, 1]} : vector<16x256xf32> to vector<2x128xf32>
    %642 = arith.addf %640, %641 : vector<2x128xf32>
    %643 = vector.extract_strided_slice %639 {offsets = [0, 0], sizes = [2, 96], strides = [1, 1]} : vector<2x128xf32> to vector<2x96xf32>
    %644 = arith.negf %643 : vector<2x96xf32>
    %645 = math.exp %644 : vector<2x96xf32>
    %cst_143 = arith.constant 1.000000e+00 : f32
    %646 = vector.broadcast %cst_143 : f32 to vector<2x96xf32>
    %647 = arith.addf %646, %645 : vector<2x96xf32>
    %648 = arith.divf %646, %647 : vector<2x96xf32>
    %649 = vector.extract_strided_slice %648 {offsets = [0, 0], sizes = [2, 32], strides = [1, 1]} : vector<2x96xf32> to vector<2x32xf32>
    %650 = vector.extract_strided_slice %648 {offsets = [0, 32], sizes = [2, 32], strides = [1, 1]} : vector<2x96xf32> to vector<2x32xf32>
    %651 = vector.extract_strided_slice %648 {offsets = [0, 64], sizes = [2, 32], strides = [1, 1]} : vector<2x96xf32> to vector<2x32xf32>
    %652 = vector.extract_strided_slice %639 {offsets = [0, 96], sizes = [2, 32], strides = [1, 1]} : vector<2x128xf32> to vector<2x32xf32>
    %653 = math.tanh %652 : vector<2x32xf32>
    %654 = arith.mulf %650, %610 : vector<2x32xf32>
    %655 = arith.mulf %649, %653 : vector<2x32xf32>
    %656 = arith.addf %654, %655 : vector<2x32xf32>
    %657 = math.tanh %656 : vector<2x32xf32>
    %658 = arith.mulf %651, %657 : vector<2x32xf32>
    %659 = arith.select %635, %658, %609 : vector<2x32xi1>, vector<2x32xf32>
    %660 = arith.select %635, %656, %610 : vector<2x32xi1>, vector<2x32xf32>
    %cst_144 = arith.constant 0.000000e+00 : f32
    %661 = vector.broadcast %cst_144 : f32 to vector<2x32xf32>
    %662 = arith.select %635, %658, %661 : vector<2x32xi1>, vector<2x32xf32>
    %663 = vector.extract_strided_slice %642 {offsets = [0, 0], sizes = [2, 96], strides = [1, 1]} : vector<2x128xf32> to vector<2x96xf32>
    %664 = arith.negf %663 : vector<2x96xf32>
    %665 = math.exp %664 : vector<2x96xf32>
    %cst_145 = arith.constant 1.000000e+00 : f32
    %666 = vector.broadcast %cst_145 : f32 to vector<2x96xf32>
    %667 = arith.addf %666, %665 : vector<2x96xf32>
    %668 = arith.divf %666, %667 : vector<2x96xf32>
    %669 = vector.extract_strided_slice %668 {offsets = [0, 0], sizes = [2, 32], strides = [1, 1]} : vector<2x96xf32> to vector<2x32xf32>
    %670 = vector.extract_strided_slice %668 {offsets = [0, 32], sizes = [2, 32], strides = [1, 1]} : vector<2x96xf32> to vector<2x32xf32>
    %671 = vector.extract_strided_slice %668 {offsets = [0, 64], sizes = [2, 32], strides = [1, 1]} : vector<2x96xf32> to vector<2x32xf32>
    %672 = vector.extract_strided_slice %642 {offsets = [0, 96], sizes = [2, 32], strides = [1, 1]} : vector<2x128xf32> to vector<2x32xf32>
    %673 = math.tanh %672 : vector<2x32xf32>
    %674 = arith.mulf %670, %630 : vector<2x32xf32>
    %675 = arith.mulf %669, %673 : vector<2x32xf32>
    %676 = arith.addf %674, %675 : vector<2x32xf32>
    %677 = math.tanh %676 : vector<2x32xf32>
    %678 = arith.mulf %671, %677 : vector<2x32xf32>
    %679 = arith.select %636, %678, %629 : vector<2x32xi1>, vector<2x32xf32>
    %680 = arith.select %636, %676, %630 : vector<2x32xi1>, vector<2x32xf32>
    %cst_146 = arith.constant 0.000000e+00 : f32
    %681 = vector.broadcast %cst_146 : f32 to vector<2x32xf32>
    %682 = arith.select %636, %678, %681 : vector<2x32xi1>, vector<2x32xf32>
    %c8_147 = arith.constant 8 : index
    %c0_148 = arith.constant 0 : index
    %683 = vector.load %arg11[%c8_147, %c0_148] : memref<16x64xf32, #tpu.memory_space<vmem>>, vector<2x32xf32>
    tpu.vector_store %arg11[%c8_147, %c0_148], %662 {strides = array<i32>} : memref<16x64xf32, #tpu.memory_space<vmem>>, vector<2x32xf32>,
    %c6_149 = arith.constant 6 : index
    %c32_150 = arith.constant 32 : index
    %684 = vector.load %arg11[%c6_149, %c32_150] : memref<16x64xf32, #tpu.memory_space<vmem>>, vector<2x32xf32>
    tpu.vector_store %arg11[%c6_149, %c32_150], %682 {strides = array<i32>} : memref<16x64xf32, #tpu.memory_space<vmem>>, vector<2x32xf32>,
    %685 = vector.extract_strided_slice %13 {offsets = [10, 0], sizes = [2, 32], strides = [1, 1]} : vector<16x32xi1> to vector<2x32xi1>
    %686 = vector.extract_strided_slice %13 {offsets = [4, 0], sizes = [2, 32], strides = [1, 1]} : vector<16x32xi1> to vector<2x32xi1>
    %cst_151 = arith.constant dense<0.000000e+00> : vector<2x128xf32>
    %687 = tpu.matmul %659, %429, %cst_151 {dimension_numbers = #tpu.dot_dimension_numbers<[1], [0], [0], [1], [0, 0, 1, 1], [], []>} : vector<2x32xf32>, vector<32x128xf32>, vector<2x128xf32> -> vector<2x128xf32>
    %688 = vector.extract_strided_slice %428 {offsets = [10, 0], sizes = [2, 128], strides = [1, 1]} : vector<16x256xf32> to vector<2x128xf32>
    %689 = arith.addf %687, %688 : vector<2x128xf32>
    %cst_152 = arith.constant dense<0.000000e+00> : vector<2x128xf32>
    %690 = tpu.matmul %679, %430, %cst_152 {dimension_numbers = #tpu.dot_dimension_numbers<[1], [0], [0], [1], [0, 0, 1, 1], [], []>} : vector<2x32xf32>, vector<32x128xf32>, vector<2x128xf32> -> vector<2x128xf32>
    %691 = vector.extract_strided_slice %428 {offsets = [4, 128], sizes = [2, 128], strides = [1, 1]} : vector<16x256xf32> to vector<2x128xf32>
    %692 = arith.addf %690, %691 : vector<2x128xf32>
    %693 = vector.extract_strided_slice %689 {offsets = [0, 0], sizes = [2, 96], strides = [1, 1]} : vector<2x128xf32> to vector<2x96xf32>
    %694 = arith.negf %693 : vector<2x96xf32>
    %695 = math.exp %694 : vector<2x96xf32>
    %cst_153 = arith.constant 1.000000e+00 : f32
    %696 = vector.broadcast %cst_153 : f32 to vector<2x96xf32>
    %697 = arith.addf %696, %695 : vector<2x96xf32>
    %698 = arith.divf %696, %697 : vector<2x96xf32>
    %699 = vector.extract_strided_slice %698 {offsets = [0, 0], sizes = [2, 32], strides = [1, 1]} : vector<2x96xf32> to vector<2x32xf32>
    %700 = vector.extract_strided_slice %698 {offsets = [0, 32], sizes = [2, 32], strides = [1, 1]} : vector<2x96xf32> to vector<2x32xf32>
    %701 = vector.extract_strided_slice %698 {offsets = [0, 64], sizes = [2, 32], strides = [1, 1]} : vector<2x96xf32> to vector<2x32xf32>
    %702 = vector.extract_strided_slice %689 {offsets = [0, 96], sizes = [2, 32], strides = [1, 1]} : vector<2x128xf32> to vector<2x32xf32>
    %703 = math.tanh %702 : vector<2x32xf32>
    %704 = arith.mulf %700, %660 : vector<2x32xf32>
    %705 = arith.mulf %699, %703 : vector<2x32xf32>
    %706 = arith.addf %704, %705 : vector<2x32xf32>
    %707 = math.tanh %706 : vector<2x32xf32>
    %708 = arith.mulf %701, %707 : vector<2x32xf32>
    %709 = arith.select %685, %708, %659 : vector<2x32xi1>, vector<2x32xf32>
    %710 = arith.select %685, %706, %660 : vector<2x32xi1>, vector<2x32xf32>
    %cst_154 = arith.constant 0.000000e+00 : f32
    %711 = vector.broadcast %cst_154 : f32 to vector<2x32xf32>
    %712 = arith.select %685, %708, %711 : vector<2x32xi1>, vector<2x32xf32>
    %713 = vector.extract_strided_slice %692 {offsets = [0, 0], sizes = [2, 96], strides = [1, 1]} : vector<2x128xf32> to vector<2x96xf32>
    %714 = arith.negf %713 : vector<2x96xf32>
    %715 = math.exp %714 : vector<2x96xf32>
    %cst_155 = arith.constant 1.000000e+00 : f32
    %716 = vector.broadcast %cst_155 : f32 to vector<2x96xf32>
    %717 = arith.addf %716, %715 : vector<2x96xf32>
    %718 = arith.divf %716, %717 : vector<2x96xf32>
    %719 = vector.extract_strided_slice %718 {offsets = [0, 0], sizes = [2, 32], strides = [1, 1]} : vector<2x96xf32> to vector<2x32xf32>
    %720 = vector.extract_strided_slice %718 {offsets = [0, 32], sizes = [2, 32], strides = [1, 1]} : vector<2x96xf32> to vector<2x32xf32>
    %721 = vector.extract_strided_slice %718 {offsets = [0, 64], sizes = [2, 32], strides = [1, 1]} : vector<2x96xf32> to vector<2x32xf32>
    %722 = vector.extract_strided_slice %692 {offsets = [0, 96], sizes = [2, 32], strides = [1, 1]} : vector<2x128xf32> to vector<2x32xf32>
    %723 = math.tanh %722 : vector<2x32xf32>
    %724 = arith.mulf %720, %680 : vector<2x32xf32>
    %725 = arith.mulf %719, %723 : vector<2x32xf32>
    %726 = arith.addf %724, %725 : vector<2x32xf32>
    %727 = math.tanh %726 : vector<2x32xf32>
    %728 = arith.mulf %721, %727 : vector<2x32xf32>
    %729 = arith.select %686, %728, %679 : vector<2x32xi1>, vector<2x32xf32>
    %730 = arith.select %686, %726, %680 : vector<2x32xi1>, vector<2x32xf32>
    %cst_156 = arith.constant 0.000000e+00 : f32
    %731 = vector.broadcast %cst_156 : f32 to vector<2x32xf32>
    %732 = arith.select %686, %728, %731 : vector<2x32xi1>, vector<2x32xf32>
    %c10_157 = arith.constant 10 : index
    %c0_158 = arith.constant 0 : index
    %733 = vector.load %arg11[%c10_157, %c0_158] : memref<16x64xf32, #tpu.memory_space<vmem>>, vector<2x32xf32>
    tpu.vector_store %arg11[%c10_157, %c0_158], %712 {strides = array<i32>} : memref<16x64xf32, #tpu.memory_space<vmem>>, vector<2x32xf32>,
    %c4_159 = arith.constant 4 : index
    %c32_160 = arith.constant 32 : index
    %734 = vector.load %arg11[%c4_159, %c32_160] : memref<16x64xf32, #tpu.memory_space<vmem>>, vector<2x32xf32>
    tpu.vector_store %arg11[%c4_159, %c32_160], %732 {strides = array<i32>} : memref<16x64xf32, #tpu.memory_space<vmem>>, vector<2x32xf32>,
    %735 = vector.extract_strided_slice %13 {offsets = [12, 0], sizes = [2, 32], strides = [1, 1]} : vector<16x32xi1> to vector<2x32xi1>
    %736 = vector.extract_strided_slice %13 {offsets = [2, 0], sizes = [2, 32], strides = [1, 1]} : vector<16x32xi1> to vector<2x32xi1>
    %cst_161 = arith.constant dense<0.000000e+00> : vector<2x128xf32>
    %737 = tpu.matmul %709, %429, %cst_161 {dimension_numbers = #tpu.dot_dimension_numbers<[1], [0], [0], [1], [0, 0, 1, 1], [], []>} : vector<2x32xf32>, vector<32x128xf32>, vector<2x128xf32> -> vector<2x128xf32>
    %738 = vector.extract_strided_slice %428 {offsets = [12, 0], sizes = [2, 128], strides = [1, 1]} : vector<16x256xf32> to vector<2x128xf32>
    %739 = arith.addf %737, %738 : vector<2x128xf32>
    %cst_162 = arith.constant dense<0.000000e+00> : vector<2x128xf32>
    %740 = tpu.matmul %729, %430, %cst_162 {dimension_numbers = #tpu.dot_dimension_numbers<[1], [0], [0], [1], [0, 0, 1, 1], [], []>} : vector<2x32xf32>, vector<32x128xf32>, vector<2x128xf32> -> vector<2x128xf32>
    %741 = vector.extract_strided_slice %428 {offsets = [2, 128], sizes = [2, 128], strides = [1, 1]} : vector<16x256xf32> to vector<2x128xf32>
    %742 = arith.addf %740, %741 : vector<2x128xf32>
    %743 = vector.extract_strided_slice %739 {offsets = [0, 0], sizes = [2, 96], strides = [1, 1]} : vector<2x128xf32> to vector<2x96xf32>
    %744 = arith.negf %743 : vector<2x96xf32>
    %745 = math.exp %744 : vector<2x96xf32>
    %cst_163 = arith.constant 1.000000e+00 : f32
    %746 = vector.broadcast %cst_163 : f32 to vector<2x96xf32>
    %747 = arith.addf %746, %745 : vector<2x96xf32>
    %748 = arith.divf %746, %747 : vector<2x96xf32>
    %749 = vector.extract_strided_slice %748 {offsets = [0, 0], sizes = [2, 32], strides = [1, 1]} : vector<2x96xf32> to vector<2x32xf32>
    %750 = vector.extract_strided_slice %748 {offsets = [0, 32], sizes = [2, 32], strides = [1, 1]} : vector<2x96xf32> to vector<2x32xf32>
    %751 = vector.extract_strided_slice %748 {offsets = [0, 64], sizes = [2, 32], strides = [1, 1]} : vector<2x96xf32> to vector<2x32xf32>
    %752 = vector.extract_strided_slice %739 {offsets = [0, 96], sizes = [2, 32], strides = [1, 1]} : vector<2x128xf32> to vector<2x32xf32>
    %753 = math.tanh %752 : vector<2x32xf32>
    %754 = arith.mulf %750, %710 : vector<2x32xf32>
    %755 = arith.mulf %749, %753 : vector<2x32xf32>
    %756 = arith.addf %754, %755 : vector<2x32xf32>
    %757 = math.tanh %756 : vector<2x32xf32>
    %758 = arith.mulf %751, %757 : vector<2x32xf32>
    %759 = arith.select %735, %758, %709 : vector<2x32xi1>, vector<2x32xf32>
    %760 = arith.select %735, %756, %710 : vector<2x32xi1>, vector<2x32xf32>
    %cst_164 = arith.constant 0.000000e+00 : f32
    %761 = vector.broadcast %cst_164 : f32 to vector<2x32xf32>
    %762 = arith.select %735, %758, %761 : vector<2x32xi1>, vector<2x32xf32>
    %763 = vector.extract_strided_slice %742 {offsets = [0, 0], sizes = [2, 96], strides = [1, 1]} : vector<2x128xf32> to vector<2x96xf32>
    %764 = arith.negf %763 : vector<2x96xf32>
    %765 = math.exp %764 : vector<2x96xf32>
    %cst_165 = arith.constant 1.000000e+00 : f32
    %766 = vector.broadcast %cst_165 : f32 to vector<2x96xf32>
    %767 = arith.addf %766, %765 : vector<2x96xf32>
    %768 = arith.divf %766, %767 : vector<2x96xf32>
    %769 = vector.extract_strided_slice %768 {offsets = [0, 0], sizes = [2, 32], strides = [1, 1]} : vector<2x96xf32> to vector<2x32xf32>
    %770 = vector.extract_strided_slice %768 {offsets = [0, 32], sizes = [2, 32], strides = [1, 1]} : vector<2x96xf32> to vector<2x32xf32>
    %771 = vector.extract_strided_slice %768 {offsets = [0, 64], sizes = [2, 32], strides = [1, 1]} : vector<2x96xf32> to vector<2x32xf32>
    %772 = vector.extract_strided_slice %742 {offsets = [0, 96], sizes = [2, 32], strides = [1, 1]} : vector<2x128xf32> to vector<2x32xf32>
    %773 = math.tanh %772 : vector<2x32xf32>
    %774 = arith.mulf %770, %730 : vector<2x32xf32>
    %775 = arith.mulf %769, %773 : vector<2x32xf32>
    %776 = arith.addf %774, %775 : vector<2x32xf32>
    %777 = math.tanh %776 : vector<2x32xf32>
    %778 = arith.mulf %771, %777 : vector<2x32xf32>
    %779 = arith.select %736, %778, %729 : vector<2x32xi1>, vector<2x32xf32>
    %780 = arith.select %736, %776, %730 : vector<2x32xi1>, vector<2x32xf32>
    %cst_166 = arith.constant 0.000000e+00 : f32
    %781 = vector.broadcast %cst_166 : f32 to vector<2x32xf32>
    %782 = arith.select %736, %778, %781 : vector<2x32xi1>, vector<2x32xf32>
    %c12_167 = arith.constant 12 : index
    %c0_168 = arith.constant 0 : index
    %783 = vector.load %arg11[%c12_167, %c0_168] : memref<16x64xf32, #tpu.memory_space<vmem>>, vector<2x32xf32>
    tpu.vector_store %arg11[%c12_167, %c0_168], %762 {strides = array<i32>} : memref<16x64xf32, #tpu.memory_space<vmem>>, vector<2x32xf32>,
    %c2_169 = arith.constant 2 : index
    %c32_170 = arith.constant 32 : index
    %784 = vector.load %arg11[%c2_169, %c32_170] : memref<16x64xf32, #tpu.memory_space<vmem>>, vector<2x32xf32>
    tpu.vector_store %arg11[%c2_169, %c32_170], %782 {strides = array<i32>} : memref<16x64xf32, #tpu.memory_space<vmem>>, vector<2x32xf32>,
    %785 = vector.extract_strided_slice %13 {offsets = [14, 0], sizes = [2, 32], strides = [1, 1]} : vector<16x32xi1> to vector<2x32xi1>
    %786 = vector.extract_strided_slice %13 {offsets = [0, 0], sizes = [2, 32], strides = [1, 1]} : vector<16x32xi1> to vector<2x32xi1>
    %cst_171 = arith.constant dense<0.000000e+00> : vector<2x128xf32>
    %787 = tpu.matmul %759, %429, %cst_171 {dimension_numbers = #tpu.dot_dimension_numbers<[1], [0], [0], [1], [0, 0, 1, 1], [], []>} : vector<2x32xf32>, vector<32x128xf32>, vector<2x128xf32> -> vector<2x128xf32>
    %788 = vector.extract_strided_slice %428 {offsets = [14, 0], sizes = [2, 128], strides = [1, 1]} : vector<16x256xf32> to vector<2x128xf32>
    %789 = arith.addf %787, %788 : vector<2x128xf32>
    %cst_172 = arith.constant dense<0.000000e+00> : vector<2x128xf32>
    %790 = tpu.matmul %779, %430, %cst_172 {dimension_numbers = #tpu.dot_dimension_numbers<[1], [0], [0], [1], [0, 0, 1, 1], [], []>} : vector<2x32xf32>, vector<32x128xf32>, vector<2x128xf32> -> vector<2x128xf32>
    %791 = vector.extract_strided_slice %428 {offsets = [0, 128], sizes = [2, 128], strides = [1, 1]} : vector<16x256xf32> to vector<2x128xf32>
    %792 = arith.addf %790, %791 : vector<2x128xf32>
    %793 = vector.extract_strided_slice %789 {offsets = [0, 0], sizes = [2, 96], strides = [1, 1]} : vector<2x128xf32> to vector<2x96xf32>
    %794 = arith.negf %793 : vector<2x96xf32>
    %795 = math.exp %794 : vector<2x96xf32>
    %cst_173 = arith.constant 1.000000e+00 : f32
    %796 = vector.broadcast %cst_173 : f32 to vector<2x96xf32>
    %797 = arith.addf %796, %795 : vector<2x96xf32>
    %798 = arith.divf %796, %797 : vector<2x96xf32>
    %799 = vector.extract_strided_slice %798 {offsets = [0, 0], sizes = [2, 32], strides = [1, 1]} : vector<2x96xf32> to vector<2x32xf32>
    %800 = vector.extract_strided_slice %798 {offsets = [0, 32], sizes = [2, 32], strides = [1, 1]} : vector<2x96xf32> to vector<2x32xf32>
    %801 = vector.extract_strided_slice %798 {offsets = [0, 64], sizes = [2, 32], strides = [1, 1]} : vector<2x96xf32> to vector<2x32xf32>
    %802 = vector.extract_strided_slice %789 {offsets = [0, 96], sizes = [2, 32], strides = [1, 1]} : vector<2x128xf32> to vector<2x32xf32>
    %803 = math.tanh %802 : vector<2x32xf32>
    %804 = arith.mulf %800, %760 : vector<2x32xf32>
    %805 = arith.mulf %799, %803 : vector<2x32xf32>
    %806 = arith.addf %804, %805 : vector<2x32xf32>
    %807 = math.tanh %806 : vector<2x32xf32>
    %808 = arith.mulf %801, %807 : vector<2x32xf32>
    %cst_174 = arith.constant 0.000000e+00 : f32
    %809 = vector.broadcast %cst_174 : f32 to vector<2x32xf32>
    %810 = arith.select %785, %808, %809 : vector<2x32xi1>, vector<2x32xf32>
    %811 = vector.extract_strided_slice %792 {offsets = [0, 0], sizes = [2, 96], strides = [1, 1]} : vector<2x128xf32> to vector<2x96xf32>
    %812 = arith.negf %811 : vector<2x96xf32>
    %813 = math.exp %812 : vector<2x96xf32>
    %cst_175 = arith.constant 1.000000e+00 : f32
    %814 = vector.broadcast %cst_175 : f32 to vector<2x96xf32>
    %815 = arith.addf %814, %813 : vector<2x96xf32>
    %816 = arith.divf %814, %815 : vector<2x96xf32>
    %817 = vector.extract_strided_slice %816 {offsets = [0, 0], sizes = [2, 32], strides = [1, 1]} : vector<2x96xf32> to vector<2x32xf32>
    %818 = vector.extract_strided_slice %816 {offsets = [0, 32], sizes = [2, 32], strides = [1, 1]} : vector<2x96xf32> to vector<2x32xf32>
    %819 = vector.extract_strided_slice %816 {offsets = [0, 64], sizes = [2, 32], strides = [1, 1]} : vector<2x96xf32> to vector<2x32xf32>
    %820 = vector.extract_strided_slice %792 {offsets = [0, 96], sizes = [2, 32], strides = [1, 1]} : vector<2x128xf32> to vector<2x32xf32>
    %821 = math.tanh %820 : vector<2x32xf32>
    %822 = arith.mulf %818, %780 : vector<2x32xf32>
    %823 = arith.mulf %817, %821 : vector<2x32xf32>
    %824 = arith.addf %822, %823 : vector<2x32xf32>
    %825 = math.tanh %824 : vector<2x32xf32>
    %826 = arith.mulf %819, %825 : vector<2x32xf32>
    %cst_176 = arith.constant 0.000000e+00 : f32
    %827 = vector.broadcast %cst_176 : f32 to vector<2x32xf32>
    %828 = arith.select %786, %826, %827 : vector<2x32xi1>, vector<2x32xf32>
    %c14_177 = arith.constant 14 : index
    %c0_178 = arith.constant 0 : index
    %829 = vector.load %arg11[%c14_177, %c0_178] : memref<16x64xf32, #tpu.memory_space<vmem>>, vector<2x32xf32>
    tpu.vector_store %arg11[%c14_177, %c0_178], %810 {strides = array<i32>} : memref<16x64xf32, #tpu.memory_space<vmem>>, vector<2x32xf32>,
    %c0_179 = arith.constant 0 : index
    %c32_180 = arith.constant 32 : index
    %830 = vector.load %arg11[%c0_179, %c32_180] : memref<16x64xf32, #tpu.memory_space<vmem>>, vector<2x32xf32>
    tpu.vector_store %arg11[%c0_179, %c32_180], %828 {strides = array<i32>} : memref<16x64xf32, #tpu.memory_space<vmem>>, vector<2x32xf32>,
    %c0_181 = arith.constant 0 : index
    %c0_182 = arith.constant 0 : index
    %831 = vector.load %arg11[%c0_181, %c0_182] : memref<16x64xf32, #tpu.memory_space<vmem>>, vector<16x64xf32>
    %c0_183 = arith.constant 0 : index
    %c0_184 = arith.constant 0 : index
    %832 = vector.load %arg8[%c0_183, %c0_184] : memref<64x128xf32, #tpu.memory_space<vmem>>, vector<64x128xf32>
    %cst_185 = arith.constant dense<0.000000e+00> : vector<16x128xf32>
    %833 = tpu.matmul %831, %832, %cst_185 {dimension_numbers = #tpu.dot_dimension_numbers<[1], [0], [0], [1], [0, 0, 1, 1], [], []>} : vector<16x64xf32>, vector<64x128xf32>, vector<16x128xf32> -> vector<16x128xf32>
    %c0_186 = arith.constant 0 : index
    %c0_187 = arith.constant 0 : index
    %834 = vector.load %arg9[%c0_186, %c0_187] : memref<1x128xf32, #tpu.memory_space<vmem>>, vector<1x128xf32>
    %835 = vector.broadcast %834 : vector<1x128xf32> to vector<16x128xf32>
    %836 = arith.addf %833, %835 : vector<16x128xf32>
    %c0_188 = arith.constant 0 : index
    %c0_189 = arith.constant 0 : index
    %837 = vector.load %arg10[%c0_188, %c0_189] : memref<16x128xf32, #tpu.memory_space<vmem>>, vector<16x128xf32>
    tpu.vector_store %arg10[%c0_188, %c0_189], %836 {strides = array<i32>} : memref<16x128xf32, #tpu.memory_space<vmem>>, vector<16x128xf32>,
    return
  }
}

</mosaic_0001>

<bundles_post_ra>
// kernel: bidi_lstm_glove_forward.1
= control target key start
LH: loop header
LB: loop body
LE: loop exit
PB: predicated region body
PF: predicated region fallthrough
CT: control target
= control target key end

     0   :  { %15 = vsyncpa [#allocation4], 0  ;;  %s6881_s0 = inlined_call_operand.vmem [shape: s32[16,1], index: 0, kind: input, shape index: {}]   ;;  %s6882_s1 = inlined_call_operand.vmem [shape: f32[128,32], index: 1, kind: input, shape index: {}]   ;;  %s6883_s2 = inlined_call_operand.vmem [shape: f32[32,256], index: 2, kind: input, shape index: {}]   ;;  %s6884_s3 = inlined_call_operand.hbm [shape: f32[32,256], index: 3, kind: input, shape index: {}]   ;;  %s6885_s4 = inlined_call_operand.vmem [shape: f32[1,256], index: 4, kind: input, shape index: {}]   ;;  %s6886_s5 = inlined_call_operand.vmem [shape: f32[64,256], index: 5, kind: input, shape index: {}]   ;;  %s6887_s6 = inlined_call_operand.hbm [shape: f32[32,256], index: 6, kind: input, shape index: {}]   ;;  %s6888_s7 = inlined_call_operand.vmem [shape: f32[1,256], index: 7, kind: input, shape index: {}]   ;;  %s6889_s8 = inlined_call_operand.hbm [shape: f32[64,128], index: 8, kind: input, shape index: {}]   ;;  %s6890_s9 = inlined_call_operand.vmem [shape: f32[1,128], index: 9, kind: input, shape index: {}]   ;;  %s6891_s10 = inlined_call_operand.vmem [shape: f32[16,128], index: 10, kind: output, shape index: {}]  }
   0x1   :  { %16 = vsyncpa [#allocation6], 0  ;;  %s5635_s13 = smov [#allocation5]   ;;  %s5636_s15 = smov [#allocation3]  }
   0x2   :  { %s44_s14 = sshll.u32 %s5635_s13, 4  ;;  %s28_s16 = sshll.u32 %s5636_s15, 4  ;;  %s45_s14 = int_to_ptr.vmem [resolvable:$true] %s44_s14  ;;  %s5705_s16 = int_to_ptr.vmem [resolvable:$true] %s28_s16 }
   0x3   :  { %s5565_s19 = scalar_lea.hbm %s6887_s6, 1024 }
   0x4   :  { %p5566_p0 = scmp.ne.s32.totalorder %s6887_s6, %s5565_s19  ;;  %p5569_p1 = scmp.lt.u32.totalorder %s5565_s19, %s6887_s6 }
   0x6   :  { %p5571_p2 = pnand %p5569_p1, %p5566_p0 }
   0x8   :  { %5574 = shalt.err (!%p5571_p2)
}
   0x9   :  { %s5575_s24 = scalar_lea.vmem %s45_s14, 1024  ;;  %p5580_p4 = scmp.lt.s32.totalorder %s45_s14, %s45_s14 }
   0xa   :  { %p5576_p3 = scmp.ne.s32.totalorder %s45_s14, %s5575_s24  ;;  %p5581_p5 = scmp.lt.s32.totalorder %s5575_s24, %s5575_s24 }
   0xc   :  { %p5582_p6 = por %p5581_p5, %p5580_p4 }
   0xe   :  { %p5583_p7 = pnand %p5582_p6, %p5576_p3 }
  0x10   :  { %5586 = shalt.err (!%p5583_p7)
}
  0x11   :  { %s5637_s25 = smov 256   ;;  %s5638_s26 = smov 16  }
  0x12   :  { %50 = dma.hbm_to_vmem [thread:$0]  %s6887_s6, 1024, %s45_s14, [#allocation6], %s5637_s25, %s5637_s25, %s5638_s26  }
  0x13   :  { %s5587_s11 = scalar_lea.hbm %s6884_s3, 1024 }
  0x14   :  { %p5588_p8 = scmp.ne.s32.totalorder %s6884_s3, %s5587_s11  ;;  %p5591_p9 = scmp.lt.u32.totalorder %s5587_s11, %s6884_s3 }
  0x16   :  { %p5593_p10 = pnand %p5591_p9, %p5588_p8 }
  0x18   :  { %5596 = shalt.err (!%p5593_p10)
}
  0x19   :  { %s5597_s18 = scalar_lea.vmem %s5705_s16, 1024  ;;  %p5602_p12 = scmp.lt.s32.totalorder %s5705_s16, %s5705_s16 }
  0x1a   :  { %p5598_p11 = scmp.ne.s32.totalorder %s5705_s16, %s5597_s18  ;;  %p5603_p13 = scmp.lt.s32.totalorder %s5597_s18, %s5597_s18 }
  0x1c   :  { %p5604_p0 = por %p5603_p13, %p5602_p12 }
  0x1e   :  { %p5605_p1 = pnand %p5604_p0, %p5598_p11 }
  0x20   :  { %5608 = shalt.err (!%p5605_p1)
}
  0x21   :  { %34 = dma.hbm_to_vmem [thread:$0]  %s6884_s3, 1024, %s5705_s16, [#allocation4], %s5637_s25, %s5637_s25, %s5638_s26  }
  0x22   :  { %s5639_s19 = smov [#allocation7]   ;;  %s5609_s23 = scalar_lea.hbm %s6889_s8, 1024 }
  0x23   :  { %s58_s20 = sshll.u32 %s5639_s19, 4  ;;  %p5610_p2 = scmp.ne.s32.totalorder %s6889_s8, %s5609_s23  ;;  %s59_s20 = int_to_ptr.vmem [resolvable:$true] %s58_s20 }
  0x24   :  { %p5613_p3 = scmp.lt.u32.totalorder %s5609_s23, %s6889_s8 }
  0x26   :  { %p5615_p4 = pnand %p5613_p3, %p5610_p2 }
  0x28   :  { %5618 = shalt.err (!%p5615_p4)
}
  0x29   :  { %s5619_s30 = scalar_lea.vmem %s59_s20, 1024  ;;  %p5624_p6 = scmp.lt.s32.totalorder %s59_s20, %s59_s20 }
  0x2a   :  { %p5620_p5 = scmp.ne.s32.totalorder %s59_s20, %s5619_s30  ;;  %p5625_p7 = scmp.lt.s32.totalorder %s5619_s30, %s5619_s30 }
  0x2c   :  { %p5626_p8 = por %p5625_p7, %p5624_p6 }
  0x2e   :  { %p5627_p9 = pnand %p5626_p8, %p5620_p5 }
  0x30   :  { %5630 = shalt.err (!%p5627_p9)
}
  0x31   :  { %s5640_s3 = smov 128   ;;  %s5641_s16 = smov 8  }
  0x32   :  { %64 = dma.hbm_to_vmem [thread:$0]  %s6889_s8, 1024, %s59_s20, [#allocation6], %s5640_s3, %s5640_s3, %s5641_s16  }
  0x33   :  { %5631 = dma.done.wait [#allocation4], 1024  }
  0x34   :  { %5632 = vsyncadd [#allocation4], 4294966272 }
  0x35   :  { %5633 = dma.done.wait [#allocation6], 2048  }
  0x36   :  { %5634 = vsyncadd [#allocation6], 4294965248  ;;  %v5642_v0 = vmov 0   ;;  %v76_v1 = vld [vmem:[%s6881_s0] sm:$0xff]  ;;  %v91_v3 = vld [vmem:[%s6882_s1 + $0x8] sm:$0xff]  ;;  %v78_v39 = vlaneseq  ;;  %v5643_v42 = vmov 1.0  }
  0x37   :  { %5308 = vset.pattern.permute.xlu0 %v5642_v0  ;;  %v90_v2 = vld [vmem:[%s6882_s1] sm:$0xff]  ;;  %v92_v4 = vld [vmem:[%s6882_s1 + $0x10] sm:$0xff]  ;;  %v93_v5 = vld [vmem:[%s6882_s1 + $0x18] sm:$0xff]  ;;  %v5644_v44 = vmov 0.0   ;;  %v5645_v45 = vmov 0.0|0.0   ;;  %vm5646_vm2 = vmmov 0  }
  0x38   :  { %81 = vperm.xlu0 %5308, %v76_v1   ;;  %v77_v6 = vld [vmem:[%s6881_s0 + $0x8] sm:$0xff]  ;;  %v5029_v7 = vpack.c.bf16 %v91_v3, %v90_v2  ;;  %v5033_v8 = vpack.c.bf16 %v93_v5, %v92_v4  ;;  %v94_v9 = vld [vmem:[%s6882_s1 + $0x20] sm:$0xff]  ;;  %v96_v11 = vld [vmem:[%s6882_s1 + $0x30] sm:$0xff]  ;;  %v79_v40 = vand.u32 127, %v78_v39  ;;  %282 = vmatprep.mubr.f32.mxu1 %v5644_v44  ;;  %vm211_vm3 = vcmask 261120   ;;  %s5648_s17 = smov 64  }
  0x39   :  { %v95_v10 = vld [vmem:[%s6882_s1 + $0x28] sm:$0xff]  ;;  %v97_v12 = vld [vmem:[%s6882_s1 + $0x38] sm:$0xff]  ;;  %v183_v16 = vld [vmem:[%s6883_s2] sm:$0xff]  ;;  %v5872_v60 = vshrl.u32 %v78_v39, 7  ;;  %s5649_s18 = smov 96   ;;  %vm507_vm6 = vcmask 254976  }
  0x3a   :  { %5030 = vmatprep.subr.bf16.mxu0 %v5029_v7  ;;  %v5037_v13 = vpack.c.bf16 %v95_v10, %v94_v9  ;;  %v184_v14 = vld [vmem:[%s6883_s2 + $0x8] sm:$0xff]  ;;  %v186_v15 = vld [vmem:[%s6883_s2 + $0x18] sm:$0xff]  ;;  %v185_v18 = vld [vmem:[%s6883_s2 + $0x10] sm:$0xff]  ;;  %v5041_v25 = vpack.c.bf16 %v97_v12, %v96_v11  ;;  %vm757_vm7 = vcmask 257026   ;;  %vm1009_vm8 = vcmask 259076  }
  0x3b   :  { %5032 = vmatpush3.bf16.msra.mxu0 %v5029_v7  ;;  %v5061_v17 = vpack.c.bf16 %v186_v15, %v184_v14  ;;  %v188_v19 = vld [vmem:[%s6883_s2 + $0x28] sm:$0xff]  ;;  %v190_v20 = vld [vmem:[%s6883_s2 + $0x38] sm:$0xff]  ;;  %v5063_v21 = vpack.c.bf16 %v185_v18, %v183_v16  ;;  %v187_v23 = vld [vmem:[%s6883_s2 + $0x20] sm:$0xff]  ;;  %v207_v61 = vsub.s32 1, %v5872_v60  ;;  %v203_v0 = vsub.s32 0, %v5872_v60 }
  0x3c   :  { %84 = vperm.xlu0 %5308, %v77_v6   ;;  %5034 = vmatprep.subr.bf16.mxu0 %v5033_v8  ;;  %v5065_v22 = vpack.c.bf16 %v190_v20, %v188_v19  ;;  %v189_v24 = vld [vmem:[%s6883_s2 + $0x30] sm:$0xff]  ;;  %v98_v27 = vld [vmem:[%s6882_s1 + $0x40] sm:$0xff]  ;;  %v99_v28 = vld [vmem:[%s6882_s1 + $0x48] sm:$0xff]  ;;  %vm1248_vm9 = vcmask 261126   ;;  %vm513_vm10 = vcmask 523526   ;;  %vm763_vm11 = vcmask 521476  }
  0x3d   :  { %5062 = vmatprep.subr.bf16.mxu1 %v5061_v17  ;;  %v5067_v26 = vpack.c.bf16 %v189_v24, %v187_v23  ;;  %v5045_v29 = vpack.c.bf16 %v99_v28, %v98_v27  ;;  %v100_v30 = vld [vmem:[%s6882_s1 + $0x50] sm:$0xff]  ;;  %v101_v31 = vld [vmem:[%s6882_s1 + $0x58] sm:$0xff]  ;;  %v102_v33 = vld [vmem:[%s6882_s1 + $0x60] sm:$0xff]  ;;  %vm1015_vm12 = vcmask 519426   ;;  %vm1254_vm13 = vcmask 517376  }
  0x3e   :  { %5064 = vmatpush1.bf16.msra.mxu1 %v5063_v21  ;;  %v5049_v32 = vpack.c.bf16 %v101_v31, %v100_v30  ;;  %v103_v34 = vld [vmem:[%s6882_s1 + $0x68] sm:$0xff]  ;;  %v104_v36 = vld [vmem:[%s6882_s1 + $0x70] sm:$0xff]  ;;  %v105_v37 = vld [vmem:[%s6882_s1 + $0x78] sm:$0xff]  ;;  %vm2260_vm14 = vcmask 523264  }
  0x3f   :  { %5036 = vmatpush3.bf16.msra.mxu0 %v5033_v8  ;;  %5066 = vmatprep.subr.bf16.mxu1 %v5065_v22  ;;  %v5053_v35 = vpack.c.bf16 %v103_v34, %v102_v33  ;;  %v5057_v38 = vpack.c.bf16 %v105_v37, %v104_v36  ;;  %v192_v46 = vld [vmem:[#allocation3 + $0x8] sm:$0xff]  ;;  %v194_v47 = vld [vmem:[#allocation3 + $0x18] sm:$0xff]  ;;  %v191_v52 = vld [vmem:[#allocation3] sm:$0xff] }
  0x40   :  { %5038 = vmatprep.subr.bf16.mxu0 %v5037_v13  ;;  %v5837_v48 = vpack.c.bf16 %v194_v47, %v192_v46  ;;  %v196_v49 = vld [vmem:[#allocation3 + $0x28] sm:$0xff]  ;;  %v198_v50 = vld [vmem:[#allocation3 + $0x38] sm:$0xff]  ;;  %v193_v53 = vld [vmem:[#allocation3 + $0x10] sm:$0xff] }
  0x41   :  { %v5841_v51 = vpack.c.bf16 %v198_v50, %v196_v49  ;;  %v5845_v54 = vpack.c.bf16 %v193_v53, %v191_v52  ;;  %v195_v56 = vld [vmem:[#allocation3 + $0x20] sm:$0xff]  ;;  %v197_v57 = vld [vmem:[#allocation3 + $0x30] sm:$0xff] }
  0x42   :  { %5068 = vmatpush1.bf16.msra.mxu1 %v5067_v26  ;;  %v5850_v59 = vpack.c.bf16 %v197_v57, %v195_v56  ;;  %v199_v62 = vld [vmem:[%s6885_s4] sm:$0x3]  ;;  %s5647_s4 = smov 32  }
  0x43   :  { %5040 = vmatpush3.bf16.msra.mxu0 %v5037_v13  ;;  %5069 = vmatprep.subr.bf16.mxu1 %v5645_v45  ;;  %v208_v63 = vrot.slane %v199_v62, %v207_v61  ;;  %v204_v4 = vrot.slane %v199_v62, %v203_v0 }
  0x44   :  { %5042 = vmatprep.subr.bf16.mxu0 %v5041_v25 }
  0x47   :  { %5044 = vmatpush3.bf16.msra.mxu0 %v5041_v25 }
  0x48   :  { %5046 = vmatprep.subr.bf16.mxu0 %v5045_v29 }
  0x4b   :  { %5048 = vmatpush3.bf16.msra.mxu0 %v5045_v29 }
  0x4c   :  { %5050 = vmatprep.subr.bf16.mxu0 %v5049_v32 }
  0x4f   :  { %5052 = vmatpush3.bf16.msra.mxu0 %v5049_v32 }
  0x50   :  { %5054 = vmatprep.subr.bf16.mxu0 %v5053_v35 }
  0x53   :  { %5056 = vmatpush3.bf16.msra.mxu0 %v5053_v35 }
  0x54   :  { %5058 = vmatprep.subr.bf16.mxu0 %v5057_v38 }
  0x57   :  { %5060 = vmatpush3.bf16.msra.mxu0 %v5057_v38 }
  0x58   :  { %5087 = vmatprep.subr.bf16.mxu0 %v5645_v45 }
  0xb7   :  { %v5826_v41 = vpop.permute.xlu0 %81 }
  0xb8   :  { %vm86_vm0 = vcmp.eq.s32.totalorder %v5826_v41, %v79_v40  ;;  %vm181_vm4 = vcmp.gt.s32.totalorder %v5826_v41, 0 }
  0xb9   :  { %4655 = vmatprep.mubr.msk.f32.mxu0 %vm86_vm0, %v5643_v42 }
  0xbb   :  { %v5829_v43 = vpop.permute.xlu0 %84 }
  0xbc   :  { %vm87_vm1 = vcmp.eq.s32.totalorder %v5829_v43, %v79_v40  ;;  %vm182_vm5 = vcmp.gt.s32.totalorder %v5829_v43, 0 }
  0xbd   :  { %4656 = vmatmul.mubr.msk.f32.vlgmr.msra.gmra.mrb[0].mxu0 %vm87_vm1, %v5643_v42 }
  0xbe   :  { %4699 = vmatprep.mubr.msk.f32.mxu0 %vm5646_vm2, %v5644_v44  ;;  %5089 = vmatpush3.bf16.msra.mxu0 %v5837_v48 }
  0xbf   :  { %5090 = vmatprep.subr.bf16.mxu0 %v5645_v45 }
  0xc2   :  { %5092 = vmatpush3.bf16.msra.mxu0 %v5841_v51 }
  0xc3   :  { %5099 = vmatprep.subr.bf16.mxu0 %v5645_v45 }
 0x190   :  { %v4657_v55 = vpop.f32.mrb[0].mxu0 }
 0x191   :  { %v172_v58 = vpop.f32.mrb[1].mxu0 }
 0x192   :  { %4368 = vmatmul.mubr.msk.f32.vlgmr.msra.gmra.mrb[0].mxu1 %vm211_vm3, %v172_v58 }
 0x193   :  { %5071 = vmatpush3.bf16.msra.mxu1 %v5845_v54  ;;  %288 = vmatprep.mubr.f32.mxu1 %v5644_v44 }
 0x194   :  { %5072 = vmatprep.subr.bf16.mxu1 %v5645_v45 }
 0x196   :  { %4369 = vmatmul.mubr.msk.f32.gmra.mrb[2].mxu1 %vm211_vm3, %v4657_v55 }
 0x197   :  { %5074 = vmatpush3.bf16.msra.mxu1 %v5850_v59  ;;  %4666 = vmatprep.mubr.msk.f32.mxu1 %vm5646_vm2, %v5644_v44 }
 0x198   :  { %5075 = vmatprep.subr.bf16.mxu1 %v5645_v45 }
 0x19a   :  { %4667 = vmatmul.mubr.f32.vlgmr.msra.gmra.mrb[4].mxu1 %v5644_v44 }
 0x19b   :  { %5077 = vmatpush3.bf16.msra.mxu1 %v5837_v48  ;;  %4677 = vmatprep.mubr.msk.f32.mxu1 %vm5646_vm2, %v5644_v44 }
 0x19c   :  { %5078 = vmatprep.subr.bf16.mxu1 %v5645_v45 }
 0x19f   :  { %5080 = vmatpush3.bf16.msra.mxu1 %v5841_v51 }
 0x1a0   :  { %5081 = vmatprep.subr.bf16.mxu1 %v5645_v45 }
 0x1a2   :  { %4678 = vmatmul.mubr.f32.vlgmr.msra.gmra.mrb[6].mxu1 %v5644_v44 }
 0x1a3   :  { %5083 = vmatpush3.bf16.msra.mxu1 %v5845_v54  ;;  %4688 = vmatprep.mubr.msk.f32.mxu1 %vm5646_vm2, %v5644_v44 }
 0x1a4   :  { %5084 = vmatprep.subr.bf16.mxu1 %v5645_v45 }
 0x1a7   :  { %5086 = vmatpush3.bf16.msra.mxu1 %v5850_v59 }
 0x1a8   :  { %5093 = vmatprep.subr.bf16.mxu1 %v5645_v45 }
 0x265   :  { %v284_v1 = vpop.f32.mrb[0].mxu1 }
 0x266   :  { %v286_v2 = vpop.f32.mrb[1].mxu1  ;;  %v5887_v8 = vadd.f32 %v284_v1, %v204_v4 }
 0x267   :  { %v5881_v3 = vadd.f32 %v286_v2, %v208_v63 }
 0x268   :  { %v516_v57 = vrot.slane %v5887_v8, 2 }
 0x269   :  { %v290_v5 = vpop.f32.mrb[2].mxu1 }
 0x26a   :  { %v5885_v6 = vadd.f32 %v290_v5, %v204_v4  ;;  %v292_v7 = vpop.f32.mrb[3].mxu1 }
 0x26b   :  { %v5890_v12 = vadd.f32 %v292_v7, %v208_v63 }
 0x26d   :  { %v364_v9 = vpop.f32.mrb[4].mxu1  ;;  %v369_v13 = vrot.slane %v5890_v12, 6  ;;  %v591_v58 = vrot.slane %v5890_v12, 4 }
 0x26e   :  { %v365_v10 = vadd.f32 %v364_v9, %v5887_v8  ;;  %v4668_v11 = vpop.f32.mrb[5].mxu1 }
 0x270   :  { %v4370_v20 = vmul.f32 -1.442695, %v365_v10 }
 0x275   :  { %v437_v14 = vpop.f32.mrb[6].mxu1 }
 0x276   :  { %v438_v15 = vadd.f32 %v437_v14, %v369_v13  ;;  %v4679_v16 = vpop.f32.mrb[7].mxu1 }
 0x278   :  { %5309 = vtanh.f32 %v438_v15  ;;  %v4371_v19 = vmul.f32 -1.442695, %v438_v15 }
 0x279   :  { %5311 = vtanh.f32 %v365_v10 }
 0x27a   :  { %5313 = vpow2.f32 %v4371_v19 }
 0x27b   :  { %5315 = vpow2.f32 %v4370_v20 }
 0x282   :  { %v5310_v17 = vpop.eup %5309 }
 0x283   :  { %476 = vrot.lane.b32.xlu1 %v5310_v17, %s5647_s4  ;;  %v5312_v18 = vpop.eup %5311 }
 0x284   :  { %v5314_v21 = vpop.eup %5313 }
 0x285   :  { %v470_v22 = vadd.f32 1.0, %v5314_v21  ;;  %v5316_v23 = vpop.eup %5315 }
 0x286   :  { %v444_v24 = vadd.f32 1.0, %v5316_v23 }
 0x287   :  { %450 = vrot.lane.b32.xlu1 %v5312_v18, %s5647_s4  ;;  %5317 = vrcp.f32 %v470_v22 }
 0x288   :  { %5319 = vrcp.f32 %v444_v24 }
 0x291   :  { %v5318_v25 = vpop.eup %5317 }
 0x292   :  { %v5320_v28 = vpop.eup %5319  ;;  %v474_v31 = vmul.f32 0.0, %v5318_v25 }
 0x293   :  { %v448_v34 = vmul.f32 0.0, %v5320_v28 }
 0x2f5   :  { %v477_v26 = vpop.permute.xlu1 %476 }
 0x2f6   :  { %v479_v27 = vmul.f32 %v5318_v25, %v477_v26 }
 0x2f8   :  { %481 = vrot.lane.b32.xlu0 %v479_v27, %s5647_s4 }
 0x2f9   :  { %v451_v29 = vpop.permute.xlu1 %450 }
 0x2fa   :  { %v453_v30 = vmul.f32 %v5320_v28, %v451_v29 }
 0x2fc   :  { %455 = vrot.lane.b32.xlu1 %v453_v30, %s5647_s4 }
 0x36a   :  { %v482_v32 = vpop.permute.xlu0 %481 }
 0x36b   :  { %v484_v33 = vadd.f32 %v482_v32, %v474_v31 }
 0x36d   :  { %5321 = vtanh.f32 %v484_v33  ;;  %v498_v49 = vrot.slane %v484_v33, 2 }
 0x36e   :  { %v456_v35 = vpop.permute.xlu1 %455 }
 0x36f   :  { %v5897_v36 = vadd.f32 %v456_v35, %v448_v34 }
 0x371   :  { %5323 = vtanh.f32 %v5897_v36  ;;  %v466_v27 = vsel %vm181_vm4, %v5897_v36, 0.0 }
 0x377   :  { %v5322_v37 = vpop.eup %5321 }
 0x378   :  { %487 = vrot.lane.b32.xlu0 %v5322_v37, %s5647_s4 }
 0x37b   :  { %v5324_v38 = vpop.eup %5323 }
 0x37c   :  { %461 = vrot.lane.b32.xlu1 %v5324_v38, %s5647_s4 }
 0x3ea   :  { %v488_v39 = vpop.permute.xlu0 %487 }
 0x3eb   :  { %v490_v40 = vmul.f32 %v5318_v25, %v488_v39 }
 0x3ed   :  { %v492_v42 = vrot.slane %v490_v40, 2 }
 0x3ee   :  { %v462_v46 = vpop.permute.xlu1 %461 }
 0x3ef   :  { %v464_v47 = vmul.f32 %v5320_v28, %v462_v46  ;;  %493 = vrot.lane.b32.xlu0 %v492_v42, %s5648_s17 }
 0x3f1   :  { %v5906_v50 = vsel %vm181_vm4, %v464_v47, 0.0 }
 0x3f2   :  { %504 = vrot.lane.b32.xlu1 %v5906_v50, %s5648_s17  ;;  %v694_v47 = vrot.slane %v5906_v50, 6 }
 0x3f3   :  { %499 = vrot.lane.b32.xlu0 %v498_v49, %s5649_s18  ;;  %v705_v49 = vrot.slane %v466_v27, 6 }
 0x461   :  { %v494_v52 = vpop.permute.xlu0 %493 }
 0x462   :  { %v5914_v53 = vsel %vm182_vm5, %v494_v52, 0.0 }
 0x463   :  { %v590_v55 = vrot.slane %v5914_v53, 6 }
 0x464   :  { %v505_v56 = vpop.permute.xlu1 %504 }
 0x465   :  { %508 = vst.msk [vmem:[#allocation2] sm:$0x3] %vm507_vm6, %v505_v56  ;;  %4700 = vmatmul.mubr.msk.f32.vlgmr.msra.gmra.mrb[2].mxu0 %vm211_vm3, %v590_v55  ;;  %4689 = vmatmul.mubr.msk.f32.vlgmr.msra.gmra.mrb[8].mxu1 %vm211_vm3, %v505_v56  ;;  %v500_v7 = vpop.permute.xlu0 %499  ;;  %v745_v55 = vrot.slane %v5914_v53, 2 }
 0x466   :  { %5101 = vmatpush3.bf16.msra.mxu0 %v5837_v48  ;;  %5095 = vmatpush3.bf16.msra.mxu1 %v5845_v54  ;;  %v5936_v11 = vsel %vm182_vm5, %v500_v7, 0.0 }
 0x467   :  { %5102 = vmatprep.subr.bf16.mxu0 %v5645_v45  ;;  %4721 = vmatprep.mubr.msk.f32.mxu0 %vm5646_vm2, %v5644_v44  ;;  %v719_v13 = vrot.slane %v5936_v11, 6 }
 0x468   :  { %5096 = vmatprep.subr.bf16.mxu1 %v5645_v45  ;;  %4710 = vmatprep.mubr.msk.f32.mxu1 %vm5646_vm2, %v5644_v44 }
 0x46a   :  { %5104 = vmatpush3.bf16.msra.mxu0 %v5841_v51  ;;  %5098 = vmatpush3.bf16.msra.mxu1 %v5850_v59 }
 0x46b   :  { %5111 = vmatprep.subr.bf16.mxu0 %v5645_v45  ;;  %5105 = vmatprep.subr.bf16.mxu1 %v5645_v45 }
 0x538   :  { %v586_v62 = vpop.f32.mrb[8].mxu1  ;;  %v661_v63 = vpop.f32.mrb[2].mxu0 }
 0x539   :  { %v587_v1 = vadd.f32 %v586_v62, %v516_v57  ;;  %v662_v2 = vadd.f32 %v661_v63, %v591_v58  ;;  %v4690_v4 = vpop.f32.mrb[9].mxu1  ;;  %v4701_v5 = vpop.f32.mrb[3].mxu0 }
 0x53a   :  { %v843_v4 = vrot.slane %v5890_v12, 2 }
 0x53b   :  { %5325 = vtanh.f32 %v587_v1  ;;  %v4374_v14 = vmul.f32 -1.442695, %v587_v1  ;;  %v4375_v15 = vmul.f32 -1.442695, %v662_v2 }
 0x53c   :  { %5327 = vtanh.f32 %v662_v2 }
 0x53d   :  { %5329 = vpow2.f32 %v4374_v14 }
 0x53e   :  { %5331 = vpow2.f32 %v4375_v15 }
 0x545   :  { %v5326_v9 = vpop.eup %5325 }
 0x546   :  { %v5328_v10 = vpop.eup %5327  ;;  %674 = vrot.lane.b32.xlu0 %v5326_v9, %s5647_s4 }
 0x547   :  { %725 = vrot.lane.b32.xlu1 %v5328_v10, %s5647_s4  ;;  %v5330_v16 = vpop.eup %5329  ;;  %v767_v10 = vrot.slane %v5887_v8, 4 }
 0x548   :  { %v5332_v17 = vpop.eup %5331  ;;  %v668_v18 = vadd.f32 1.0, %v5330_v16 }
 0x549   :  { %v714_v19 = vadd.f32 1.0, %v5332_v17  ;;  %v753_v17 = vrot.slane %v5936_v11, 2 }
 0x54a   :  { %5333 = vrcp.f32 %v668_v18 }
 0x54b   :  { %720 = vrot.lane.b32.xlu1 %v719_v13, %s5647_s4  ;;  %5335 = vrcp.f32 %v714_v19 }
 0x554   :  { %v5334_v20 = vpop.eup %5333 }
 0x555   :  { %v5336_v22 = vpop.eup %5335  ;;  %v672_v28 = vmul.f32 %v5334_v20, %v466_v27 }
 0x5b8   :  { %v675_v21 = vpop.permute.xlu0 %674 }
 0x5b9   :  { %v677_v23 = vmul.f32 %v5334_v20, %v675_v21  ;;  %v726_v24 = vpop.permute.xlu1 %725 }
 0x5ba   :  { %v728_v25 = vmul.f32 %v5336_v22, %v726_v24 }
 0x5bb   :  { %679 = vrot.lane.b32.xlu1 %v677_v23, %s5647_s4 }
 0x5bc   :  { %730 = vrot.lane.b32.xlu0 %v728_v25, %s5647_s4 }
 0x5bd   :  { %v721_v26 = vpop.permute.xlu1 %720 }
 0x5be   :  { %v723_v29 = vmul.f32 %v5336_v22, %v721_v26 }
 0x62d   :  { %v680_v30 = vpop.permute.xlu1 %679 }
 0x62e   :  { %v731_v31 = vpop.permute.xlu0 %730  ;;  %v682_v32 = vadd.f32 %v680_v30, %v672_v28 }
 0x62f   :  { %v733_v33 = vadd.f32 %v731_v31, %v723_v29 }
 0x630   :  { %5337 = vtanh.f32 %v682_v32  ;;  %v700_v52 = vrot.slane %v682_v32, 6 }
 0x631   :  { %5339 = vtanh.f32 %v733_v33  ;;  %v749_v46 = vrot.slane %v733_v33, 4 }
 0x63a   :  { %v5338_v34 = vpop.eup %5337 }
 0x63b   :  { %v5340_v35 = vpop.eup %5339  ;;  %685 = vrot.lane.b32.xlu1 %v5338_v34, %s5647_s4 }
 0x63c   :  { %736 = vrot.lane.b32.xlu0 %v5340_v35, %s5647_s4 }
 0x6ad   :  { %v686_v37 = vpop.permute.xlu1 %685 }
 0x6ae   :  { %v737_v38 = vpop.permute.xlu0 %736  ;;  %v688_v39 = vmul.f32 %v5334_v20, %v686_v37 }
 0x6af   :  { %v739_v40 = vmul.f32 %v5336_v22, %v737_v38 }
 0x6b0   :  { %v690_v42 = vrot.slane %v688_v39, 6 }
 0x6b1   :  { %v741_v36 = vrot.slane %v739_v40, 4 }
 0x6b2   :  { %691 = vrot.lane.b32.xlu1 %v690_v42, %s5648_s17 }
 0x6b3   :  { %742 = vrot.lane.b32.xlu0 %v741_v36, %s5648_s17 }
 0x6b6   :  { %750 = vrot.lane.b32.xlu1 %v749_v46, %s5649_s18 }
 0x6b7   :  { %695 = vrot.lane.b32.xlu0 %v694_v47, %s5648_s17 }
 0x6ba   :  { %706 = vrot.lane.b32.xlu1 %v705_v49, %s5649_s18 }
 0x6bb   :  { %701 = vrot.lane.b32.xlu0 %v700_v52, %s5649_s18 }
 0x724   :  { %v692_v56 = vpop.permute.xlu1 %691 }
 0x725   :  { %v5957_v57 = vpop.permute.xlu0 %742  ;;  %v710_v58 = vsel %vm181_vm4, %v692_v56, 0.0 }
 0x726   :  { %v5964_v50 = vsel %vm182_vm5, %v5957_v57, %v745_v55  ;;  %758 = vst.msk [vmem:[#allocation2] sm:$0xc] %vm757_vm7, %v710_v58 }
 0x727   :  { %v842_v62 = vrot.slane %v5964_v50, 4 }
 0x728   :  { %v751_v16 = vpop.permute.xlu1 %750 }
 0x729   :  { %4722 = vmatmul.mubr.msk.f32.vlgmr.msra.gmra.mrb[4].mxu0 %vm211_vm3, %v842_v62  ;;  %v696_v63 = vpop.permute.xlu0 %695  ;;  %v5992_v19 = vsel %vm182_vm5, %v751_v16, %v753_v17 }
 0x72a   :  { %v5971_v1 = vsel %vm181_vm4, %v692_v56, %v696_v63  ;;  %5113 = vmatpush3.bf16.msra.mxu0 %v5837_v48  ;;  %4743 = vmatprep.mubr.msk.f32.mxu0 %vm5646_vm2, %v5644_v44  ;;  %v971_v22 = vrot.slane %v5992_v19, 4 }
 0x72b   :  { %v766_v2 = vrot.slane %v5971_v1, 2  ;;  %5114 = vmatprep.subr.bf16.mxu0 %v5645_v45 }
 0x72c   :  { %v707_v20 = vpop.permute.xlu1 %706 }
 0x72d   :  { %4711 = vmatmul.mubr.msk.f32.vlgmr.msra.gmra.mrb[10].mxu1 %vm211_vm3, %v766_v2  ;;  %v702_v21 = vpop.permute.xlu0 %701 }
 0x72e   :  { %5107 = vmatpush3.bf16.msra.mxu1 %v5845_v54  ;;  %5116 = vmatpush3.bf16.msra.mxu0 %v5841_v51  ;;  %v5998_v24 = vsel %vm181_vm4, %v702_v21, %v707_v20 }
 0x72f   :  { %5108 = vmatprep.subr.bf16.mxu1 %v5645_v45  ;;  %4732 = vmatprep.mubr.msk.f32.mxu1 %vm5646_vm2, %v5644_v44  ;;  %v925_v11 = vrot.slane %v5998_v24, 2 }
 0x730   :  { %5123 = vmatprep.subr.bf16.mxu0 %v5645_v45 }
 0x732   :  { %5110 = vmatpush3.bf16.msra.mxu1 %v5850_v59 }
 0x733   :  { %5117 = vmatprep.subr.bf16.mxu1 %v5645_v45 }
 0x7fc   :  { %v913_v5 = vpop.f32.mrb[4].mxu0 }
 0x7fd   :  { %v914_v7 = vadd.f32 %v913_v5, %v843_v4  ;;  %v4723_v9 = vpop.f32.mrb[5].mxu0 }
 0x7fe   :  { %v997_v9 = vrot.slane %v5964_v50, 2 }
 0x7ff   :  { %5341 = vtanh.f32 %v914_v7  ;;  %v4379_v25 = vmul.f32 -1.442695, %v914_v7 }
 0x800   :  { %v837_v13 = vpop.f32.mrb[10].mxu1 }
 0x801   :  { %v838_v14 = vadd.f32 %v837_v13, %v767_v10  ;;  %v4712_v15 = vpop.f32.mrb[11].mxu1 }
 0x802   :  { %v951_v15 = vrot.slane %v5971_v1, 6 }
 0x803   :  { %5343 = vtanh.f32 %v838_v14  ;;  %v4378_v26 = vmul.f32 -1.442695, %v838_v14 }
 0x804   :  { %5345 = vpow2.f32 %v4379_v25 }
 0x805   :  { %5347 = vpow2.f32 %v4378_v26 }
 0x809   :  { %v5342_v18 = vpop.eup %5341 }
 0x80a   :  { %977 = vrot.lane.b32.xlu0 %v5342_v18, %s5647_s4 }
 0x80d   :  { %v5344_v23 = vpop.eup %5343 }
 0x80e   :  { %972 = vrot.lane.b32.xlu0 %v971_v22, %s5647_s4  ;;  %931 = vrot.lane.b32.xlu1 %v5344_v23, %s5647_s4  ;;  %v5346_v27 = vpop.eup %5345  ;;  %v1019_v22 = vrot.slane %v5887_v8, 6 }
 0x80f   :  { %v966_v28 = vadd.f32 1.0, %v5346_v27  ;;  %v5348_v29 = vpop.eup %5347  ;;  %v1005_v27 = vrot.slane %v5992_v19, 2 }
 0x810   :  { %v920_v30 = vadd.f32 1.0, %v5348_v29 }
 0x811   :  { %5349 = vrcp.f32 %v966_v28 }
 0x812   :  { %926 = vrot.lane.b32.xlu1 %v925_v11, %s5647_s4  ;;  %5351 = vrcp.f32 %v920_v30 }
 0x81b   :  { %v5350_v31 = vpop.eup %5349 }
 0x81c   :  { %v5352_v34 = vpop.eup %5351 }
 0x87c   :  { %v978_v32 = vpop.permute.xlu0 %977 }
 0x87d   :  { %v980_v33 = vmul.f32 %v5350_v31, %v978_v32 }
 0x87f   :  { %982 = vrot.lane.b32.xlu0 %v980_v33, %s5647_s4 }
 0x880   :  { %v932_v35 = vpop.permute.xlu1 %931  ;;  %v973_v38 = vpop.permute.xlu0 %972 }
 0x881   :  { %v934_v37 = vmul.f32 %v5352_v34, %v932_v35  ;;  %v975_v39 = vmul.f32 %v5350_v31, %v973_v38 }
 0x883   :  { %936 = vrot.lane.b32.xlu1 %v934_v37, %s5647_s4 }
 0x884   :  { %v927_v40 = vpop.permute.xlu1 %926 }
 0x885   :  { %v929_v46 = vmul.f32 %v5352_v34, %v927_v40 }
 0x8f1   :  { %v983_v42 = vpop.permute.xlu0 %982 }
 0x8f2   :  { %v985_v36 = vadd.f32 %v983_v42, %v975_v39 }
 0x8f4   :  { %5353 = vtanh.f32 %v985_v36  ;;  %v1001_v4 = vrot.slane %v985_v36, 6 }
 0x8f5   :  { %v937_v47 = vpop.permute.xlu1 %936 }
 0x8f6   :  { %v939_v49 = vadd.f32 %v937_v47, %v929_v46 }
 0x8f8   :  { %5355 = vtanh.f32 %v939_v49  ;;  %v955_v7 = vrot.slane %v939_v49, 4 }
 0x8fe   :  { %v5354_v52 = vpop.eup %5353 }
 0x8ff   :  { %988 = vrot.lane.b32.xlu0 %v5354_v52, %s5647_s4 }
 0x902   :  { %v5356_v55 = vpop.eup %5355 }
 0x903   :  { %942 = vrot.lane.b32.xlu1 %v5356_v55, %s5647_s4 }
 0x971   :  { %v989_v56 = vpop.permute.xlu0 %988 }
 0x972   :  { %v991_v58 = vmul.f32 %v5350_v31, %v989_v56 }
 0x974   :  { %v993_v62 = vrot.slane %v991_v58, 6 }
 0x975   :  { %v943_v63 = vpop.permute.xlu1 %942 }
 0x976   :  { %v945_v2 = vmul.f32 %v5352_v34, %v943_v63  ;;  %994 = vrot.lane.b32.xlu0 %v993_v62, %s5648_s17 }
 0x978   :  { %v947_v5 = vrot.slane %v945_v2, 4 }
 0x97a   :  { %948 = vrot.lane.b32.xlu1 %v947_v5, %s5648_s17  ;;  %1002 = vrot.lane.b32.xlu0 %v1001_v4, %s5649_s18 }
 0x97e   :  { %956 = vrot.lane.b32.xlu1 %v955_v7, %s5649_s18 }
 0x9e8   :  { %v6013_v10 = vpop.permute.xlu0 %994 }
 0x9e9   :  { %v6018_v13 = vsel %vm182_vm5, %v6013_v10, %v997_v9 }
 0x9ea   :  { %v1094_v14 = vrot.slane %v6018_v13, 2 }
 0x9ec   :  { %v949_v16 = vpop.permute.xlu1 %948  ;;  %4744 = vmatmul.mubr.msk.f32.vlgmr.msra.gmra.mrb[6].mxu0 %vm211_vm3, %v1094_v14  ;;  %v1003_v26 = vpop.permute.xlu0 %1002 }
 0x9ed   :  { %v6027_v50 = vsel %vm181_vm4, %v949_v16, %v951_v15  ;;  %v962_v17 = vsel %vm181_vm4, %v949_v16, 0.0  ;;  %5125 = vmatpush3.bf16.msra.mxu0 %v5837_v48  ;;  %4765 = vmatprep.mubr.msk.f32.mxu0 %vm5646_vm2, %v5644_v44  ;;  %v1007_v29 = vsel %vm182_vm5, %v1003_v26, %v1005_v27 }
 0x9ee   :  { %1010 = vst.msk [vmem:[#allocation2] sm:$0x30] %vm1009_vm8, %v962_v17  ;;  %v1018_v1 = vrot.slane %v6027_v50, 4  ;;  %5126 = vmatprep.subr.bf16.mxu0 %v5645_v45  ;;  %v1221_v31 = vrot.slane %v1007_v29, 2 }
 0x9f0   :  { %4733 = vmatmul.mubr.msk.f32.vlgmr.msra.gmra.mrb[12].mxu1 %vm211_vm3, %v1018_v1  ;;  %v957_v30 = vpop.permute.xlu1 %956 }
 0x9f1   :  { %5128 = vmatpush3.bf16.msra.mxu0 %v5841_v51  ;;  %5119 = vmatpush3.bf16.msra.mxu1 %v5845_v54 }
 0x9f2   :  { %5120 = vmatprep.subr.bf16.mxu1 %v5645_v45  ;;  %4754 = vmatprep.mubr.msk.f32.mxu1 %vm5646_vm2, %v5644_v44 }
 0x9f3   :  { %5135 = vmatprep.subr.bf16.mxu0 %v5645_v45 }
 0x9f5   :  { %5122 = vmatpush3.bf16.msra.mxu1 %v5850_v59 }
 0x9f6   :  { %5129 = vmatprep.subr.bf16.mxu1 %v5645_v45 }
 0xabf   :  { %v1163_v18 = vpop.f32.mrb[6].mxu0 }
 0xac0   :  { %v1164_v20 = vadd.f32 %v1163_v18, %v5890_v12  ;;  %v4745_v21 = vpop.f32.mrb[7].mxu0  ;;  %v959_v12 = vrot.slane %v5998_v24, 6 }
 0xac2   :  { %5357 = vtanh.f32 %v1164_v20  ;;  %v6055_v8 = vsel %vm181_vm4, %v957_v30, %v959_v12  ;;  %v4383_v33 = vmul.f32 -1.442695, %v1164_v20 }
 0xac3   :  { %v1089_v23 = vpop.f32.mrb[12].mxu1  ;;  %v1175_v19 = vrot.slane %v6055_v8, 4 }
 0xac4   :  { %v1090_v11 = vadd.f32 %v1089_v23, %v1019_v22  ;;  %v4734_v25 = vpop.f32.mrb[13].mxu1 }
 0xac6   :  { %5359 = vtanh.f32 %v1090_v11  ;;  %v4382_v34 = vmul.f32 -1.442695, %v1090_v11 }
 0xac7   :  { %5361 = vpow2.f32 %v4383_v33 }
 0xac8   :  { %5363 = vpow2.f32 %v4382_v34 }
 0xacc   :  { %v5358_v28 = vpop.eup %5357 }
 0xacd   :  { %1227 = vrot.lane.b32.xlu0 %v5358_v28, %s5647_s4 }
 0xad0   :  { %v5360_v32 = vpop.eup %5359 }
 0xad1   :  { %1181 = vrot.lane.b32.xlu1 %v5360_v32, %s5647_s4  ;;  %1222 = vrot.lane.b32.xlu0 %v1221_v31, %s5647_s4  ;;  %v5362_v35 = vpop.eup %5361  ;;  %v1209_v32 = vrot.slane %v6055_v8, 6 }
 0xad2   :  { %v1216_v24 = vadd.f32 1.0, %v5362_v35  ;;  %v5364_v37 = vpop.eup %5363 }
 0xad3   :  { %v1170_v38 = vadd.f32 1.0, %v5364_v37 }
 0xad4   :  { %5365 = vrcp.f32 %v1216_v24 }
 0xad5   :  { %1176 = vrot.lane.b32.xlu1 %v1175_v19, %s5647_s4  ;;  %5367 = vrcp.f32 %v1170_v38 }
 0xade   :  { %v5366_v39 = vpop.eup %5365 }
 0xadf   :  { %v5368_v36 = vpop.eup %5367 }
 0xb3f   :  { %v1228_v40 = vpop.permute.xlu0 %1227 }
 0xb40   :  { %v1230_v42 = vmul.f32 %v5366_v39, %v1228_v40 }
 0xb42   :  { %1232 = vrot.lane.b32.xlu0 %v1230_v42, %s5647_s4 }
 0xb43   :  { %v1182_v46 = vpop.permute.xlu1 %1181  ;;  %v6063_v49 = vpop.permute.xlu0 %1222 }
 0xb44   :  { %v1184_v47 = vmul.f32 %v5368_v36, %v1182_v46  ;;  %v1225_v52 = vmul.f32 %v5366_v39, %v6063_v49 }
 0xb46   :  { %1186 = vrot.lane.b32.xlu1 %v1184_v47, %s5647_s4 }
 0xb47   :  { %v1177_v55 = vpop.permute.xlu1 %1176 }
 0xb48   :  { %v1179_v62 = vmul.f32 %v5368_v36, %v1177_v55 }
 0xbb4   :  { %v1233_v56 = vpop.permute.xlu0 %1232 }
 0xbb5   :  { %v6066_v58 = vadd.f32 %v1233_v56, %v1225_v52 }
 0xbb7   :  { %5369 = vtanh.f32 %v6066_v58  ;;  %v1246_v55 = vsel %vm182_vm5, %v6066_v58, %v6063_v49 }
 0xbb8   :  { %v1187_v63 = vpop.permute.xlu1 %1186 }
 0xbb9   :  { %v1189_v2 = vadd.f32 %v1187_v63, %v1179_v62 }
 0xbbb   :  { %5371 = vtanh.f32 %v1189_v2  ;;  %v1205_v20 = vrot.slane %v1189_v2, 2 }
 0xbc1   :  { %v5370_v4 = vpop.eup %5369 }
 0xbc2   :  { %1238 = vrot.lane.b32.xlu0 %v5370_v4, %s5647_s4 }
 0xbc5   :  { %v5372_v5 = vpop.eup %5371 }
 0xbc6   :  { %1192 = vrot.lane.b32.xlu1 %v5372_v5, %s5647_s4  ;;  %1242 = vrot.lane.b32.xlu0 %v1094_v14, %s5648_s17  ;;  %v1201_v14 = vrot.slane %v6027_v50, 6  ;;  %v1334_v50 = vrot.slane %v5881_v3, 6 }
 0xc34   :  { %v1239_v7 = vpop.permute.xlu0 %1238 }
 0xc35   :  { %v6074_v9 = vmul.f32 %v5366_v39, %v1239_v7 }
 0xc38   :  { %v1193_v15 = vpop.permute.xlu1 %1192  ;;  %v1243_v16 = vpop.permute.xlu0 %1242 }
 0xc39   :  { %v1195_v17 = vmul.f32 %v5368_v36, %v1193_v15  ;;  %v6079_v1 = vsel %vm182_vm5, %v6074_v9, %v1243_v16 }
 0xc3a   :  { %1331 = vrot.lane.b32.xlu1 %v6079_v1, %s5648_s17  ;;  %v1472_v49 = vrot.slane %v6079_v1, 2 }
 0xc3b   :  { %v1197_v18 = vrot.slane %v1195_v17, 2 }
 0xc3d   :  { %1198 = vrot.lane.b32.xlu0 %v1197_v18, %s5648_s17 }
 0xc41   :  { %1206 = vrot.lane.b32.xlu0 %v1205_v20, %s5649_s18 }
 0xcac   :  { %v1332_v13 = vpop.permute.xlu1 %1331 }
 0xcad   :  { %4766 = vmatmul.mubr.msk.f32.vlgmr.msra.gmra.mrb[8].mxu0 %vm211_vm3, %v1332_v13 }
 0xcae   :  { %5137 = vmatpush3.bf16.msra.mxu0 %v5837_v48  ;;  %4787 = vmatprep.mubr.msk.f32.mxu0 %vm5646_vm2, %v5644_v44 }
 0xcaf   :  { %v1199_v21 = vpop.permute.xlu0 %1198  ;;  %5138 = vmatprep.subr.bf16.mxu0 %v5645_v45 }
 0xcb0   :  { %v1203_v22 = vsel %vm181_vm4, %v1199_v21, %v1201_v14  ;;  %v1212_v23 = vsel %vm181_vm4, %v1199_v21, 0.0 }
 0xcb1   :  { %1249 = vst.msk [vmem:[#allocation2] sm:$0xc0] %vm1248_vm9, %v1212_v23  ;;  %v1257_v11 = vrot.slane %v1203_v22, 6  ;;  %v1483_v22 = vrot.slane %v1246_v55, 2 }
 0xcb2   :  { %5140 = vmatpush3.bf16.msra.mxu0 %v5841_v51 }
 0xcb3   :  { %4755 = vmatmul.mubr.msk.f32.vlgmr.msra.gmra.mrb[14].mxu1 %vm211_vm3, %v1257_v11  ;;  %5147 = vmatprep.subr.bf16.mxu0 %v5645_v45  ;;  %v1207_v31 = vpop.permute.xlu0 %1206 }
 0xcb4   :  { %5131 = vmatpush3.bf16.msra.mxu1 %v5845_v54  ;;  %4776 = vmatprep.mubr.msk.f32.mxu1 %vm5646_vm2, %v5644_v44  ;;  %v1211_v33 = vsel %vm181_vm4, %v1207_v31, %v1209_v32 }
 0xcb5   :  { %5132 = vmatprep.subr.bf16.mxu1 %v5645_v45  ;;  %v1416_v34 = vrot.slane %v1211_v33, 6 }
 0xcb8   :  { %5134 = vmatpush3.bf16.msra.mxu1 %v5850_v59 }
 0xcb9   :  { %5141 = vmatprep.subr.bf16.mxu1 %v5645_v45 }
 0xd80   :  { %v1404_v25 = vpop.f32.mrb[8].mxu0 }
 0xd81   :  { %v1405_v26 = vadd.f32 %v1404_v25, %v1334_v50  ;;  %v4767_v27 = vpop.f32.mrb[9].mxu0 }
 0xd82   :  { %v1579_v27 = vrot.slane %v5881_v3, 4 }
 0xd83   :  { %5373 = vtanh.f32 %v1405_v26  ;;  %v4387_v35 = vmul.f32 -1.442695, %v1405_v26 }
 0xd86   :  { %v1326_v28 = vpop.f32.mrb[14].mxu1 }
 0xd87   :  { %v1327_v29 = vadd.f32 %v1326_v28, %v5885_v6  ;;  %v4756_v30 = vpop.f32.mrb[15].mxu1 }
 0xd89   :  { %5375 = vtanh.f32 %v1327_v29  ;;  %v4386_v24 = vmul.f32 -1.442695, %v1327_v29 }
 0xd8a   :  { %5377 = vpow2.f32 %v4387_v35 }
 0xd8b   :  { %5379 = vpow2.f32 %v4386_v24 }
 0xd8d   :  { %v5374_v12 = vpop.eup %5373 }
 0xd8e   :  { %1452 = vrot.lane.b32.xlu1 %v5374_v12, %s5647_s4  ;;  %v1503_v12 = vrot.slane %v5885_v6, 2 }
 0xd93   :  { %v5376_v19 = vpop.eup %5375 }
 0xd94   :  { %1422 = vrot.lane.b32.xlu1 %v5376_v19, %s5647_s4  ;;  %v5378_v37 = vpop.eup %5377 }
 0xd95   :  { %v1446_v38 = vadd.f32 1.0, %v5378_v37  ;;  %v5380_v39 = vpop.eup %5379 }
 0xd96   :  { %v1411_v40 = vadd.f32 1.0, %v5380_v39 }
 0xd97   :  { %5381 = vrcp.f32 %v1446_v38 }
 0xd98   :  { %1417 = vrot.lane.b32.xlu1 %v1416_v34, %s5647_s4  ;;  %5383 = vrcp.f32 %v1411_v40 }
 0xda1   :  { %v5382_v8 = vpop.eup %5381 }
 0xda2   :  { %v5384_v46 = vpop.eup %5383  ;;  %v1450_v56 = vmul.f32 %v5382_v8, %v1246_v55 }
 0xe00   :  { %v1453_v42 = vpop.permute.xlu1 %1452 }
 0xe01   :  { %v1455_v36 = vmul.f32 %v5382_v8, %v1453_v42 }
 0xe03   :  { %1457 = vrot.lane.b32.xlu0 %v1455_v36, %s5647_s4 }
 0xe06   :  { %v1423_v47 = vpop.permute.xlu1 %1422 }
 0xe07   :  { %v1425_v52 = vmul.f32 %v5384_v46, %v1423_v47 }
 0xe09   :  { %1427 = vrot.lane.b32.xlu0 %v1425_v52, %s5647_s4 }
 0xe0a   :  { %v6119_v2 = vpop.permute.xlu1 %1417 }
 0xe0b   :  { %v1420_v4 = vmul.f32 %v5384_v46, %v6119_v2 }
 0xe75   :  { %v1458_v62 = vpop.permute.xlu0 %1457 }
 0xe76   :  { %v1460_v63 = vadd.f32 %v1458_v62, %v1450_v56 }
 0xe78   :  { %5385 = vtanh.f32 %v1460_v63  ;;  %v1478_v58 = vrot.slane %v1460_v63, 2 }
 0xe7b   :  { %v1428_v5 = vpop.permute.xlu0 %1427 }
 0xe7c   :  { %v6122_v7 = vadd.f32 %v1428_v5, %v1420_v4 }
 0xe7e   :  { %5387 = vtanh.f32 %v6122_v7 }
 0xe82   :  { %v5386_v15 = vpop.eup %5385 }
 0xe83   :  { %1463 = vrot.lane.b32.xlu1 %v5386_v15, %s5647_s4 }
 0xe87   :  { %1437 = vrot.lane.b32.xlu1 %v1257_v11, %s5648_s17 }
 0xe88   :  { %v5388_v16 = vpop.eup %5387 }
 0xe89   :  { %1433 = vrot.lane.b32.xlu0 %v5388_v16, %s5647_s4 }
 0xe8b   :  { %1473 = vrot.lane.b32.xlu1 %v1472_v49, %s5648_s17  ;;  %v1441_v49 = vsel %vm182_vm5, %v6122_v7, %v6119_v2 }
 0xe8f   :  { %1479 = vrot.lane.b32.xlu1 %v1478_v58, %s5649_s18 }
 0xef5   :  { %v1464_v17 = vpop.permute.xlu1 %1463 }
 0xef6   :  { %v1466_v18 = vmul.f32 %v5382_v8, %v1464_v17 }
 0xef8   :  { %v1468_v20 = vrot.slane %v1466_v18, 2 }
 0xef9   :  { %v1438_v21 = vpop.permute.xlu1 %1437 }
 0xefa   :  { %1469 = vrot.lane.b32.xlu0 %v1468_v20, %s5648_s17 }
 0xefb   :  { %v1434_v13 = vpop.permute.xlu0 %1433 }
 0xefc   :  { %v6132_v14 = vmul.f32 %v5384_v46, %v1434_v13 }
 0xefd   :  { %v1474_v23 = vpop.permute.xlu1 %1473 }
 0xefe   :  { %v6137_v1 = vsel %vm182_vm5, %v6132_v14, %v1438_v21 }
 0xeff   :  { %1500 = vrot.lane.b32.xlu0 %v6137_v1, %s5648_s17  ;;  %v1682_v2 = vrot.slane %v6137_v1, 6 }
 0xf01   :  { %v1480_v34 = vpop.permute.xlu1 %1479 }
 0xf03   :  { %1484 = vrot.lane.b32.xlu0 %v1483_v22, %s5649_s18 }
 0xf6c   :  { %v6142_v11 = vpop.permute.xlu0 %1469 }
 0xf6d   :  { %v6147_v50 = vsel %vm181_vm4, %v6142_v11, %v1474_v23 }
 0xf6e   :  { %v1578_v25 = vrot.slane %v6147_v50, 6 }
 0xf70   :  { %4788 = vmatmul.mubr.msk.f32.vlgmr.msra.gmra.mrb[10].mxu0 %vm211_vm3, %v1578_v25 }
 0xf71   :  { %v1501_v26 = vpop.permute.xlu0 %1500  ;;  %5149 = vmatpush3.bf16.msra.mxu0 %v5837_v48  ;;  %4809 = vmatprep.mubr.msk.f32.mxu0 %vm5646_vm2, %v5644_v44 }
 0xf72   :  { %4777 = vmatmul.mubr.msk.f32.vlgmr.msra.gmra.mrb[16].mxu1 %vm211_vm3, %v1501_v26  ;;  %5150 = vmatprep.subr.bf16.mxu0 %v5645_v45 }
 0xf73   :  { %5143 = vmatpush3.bf16.msra.mxu1 %v5845_v54  ;;  %4798 = vmatprep.mubr.msk.f32.mxu1 %vm5646_vm2, %v5644_v44 }
 0xf74   :  { %5144 = vmatprep.subr.bf16.mxu1 %v5645_v45 }
 0xf75   :  { %5152 = vmatpush3.bf16.msra.mxu0 %v5841_v51  ;;  %v1485_v33 = vpop.permute.xlu0 %1484 }
 0xf76   :  { %5159 = vmatprep.subr.bf16.mxu0 %v5645_v45  ;;  %v6168_v24 = vsel %vm181_vm4, %v1480_v34, %v1485_v33 }
 0xf77   :  { %5146 = vmatpush3.bf16.msra.mxu1 %v5850_v59  ;;  %v1707_v38 = vrot.slane %v6168_v24, 6 }
 0xf78   :  { %5153 = vmatprep.subr.bf16.mxu1 %v5645_v45 }
0x1043   :  { %v1649_v28 = vpop.f32.mrb[10].mxu0 }
0x1044   :  { %v1650_v29 = vadd.f32 %v1649_v28, %v1579_v27  ;;  %v4789_v30 = vpop.f32.mrb[11].mxu0 }
0x1045   :  { %v1573_v31 = vpop.f32.mrb[16].mxu1  ;;  %v1733_v30 = vrot.slane %v6147_v50, 2 }
0x1046   :  { %5389 = vtanh.f32 %v1650_v29  ;;  %v1574_v32 = vadd.f32 %v1573_v31, %v1503_v12  ;;  %v4778_v19 = vpop.f32.mrb[17].mxu1  ;;  %v4391_v39 = vmul.f32 -1.442695, %v1650_v29  ;;  %v1693_v29 = vrot.slane %v1441_v49, 6 }
0x1048   :  { %5391 = vtanh.f32 %v1574_v32  ;;  %v4390_v40 = vmul.f32 -1.442695, %v1574_v32 }
0x1049   :  { %5393 = vpow2.f32 %v4391_v39 }
0x104a   :  { %5395 = vpow2.f32 %v4390_v40 }
0x1050   :  { %v5390_v35 = vpop.eup %5389 }
0x1051   :  { %1713 = vrot.lane.b32.xlu1 %v5390_v35, %s5647_s4 }
0x1052   :  { %v5392_v37 = vpop.eup %5391 }
0x1053   :  { %1662 = vrot.lane.b32.xlu0 %v5392_v37, %s5647_s4  ;;  %v5394_v8 = vpop.eup %5393 }
0x1054   :  { %v5396_v42 = vpop.eup %5395  ;;  %v1702_v36 = vadd.f32 1.0, %v5394_v8  ;;  %v1741_v8 = vrot.slane %v6168_v24, 2 }
0x1055   :  { %1708 = vrot.lane.b32.xlu1 %v1707_v38, %s5647_s4  ;;  %v1656_v46 = vadd.f32 1.0, %v5396_v42  ;;  %v1753_v38 = vrot.slane %v5885_v6, 4 }
0x1056   :  { %5397 = vrcp.f32 %v1702_v36 }
0x1057   :  { %5399 = vrcp.f32 %v1656_v46 }
0x1060   :  { %v5398_v47 = vpop.eup %5397 }
0x1061   :  { %v5400_v56 = vpop.eup %5399 }
0x1062   :  { %v1660_v58 = vmul.f32 %v5400_v56, %v1441_v49 }
0x10c3   :  { %v1714_v52 = vpop.permute.xlu1 %1713 }
0x10c4   :  { %v1716_v55 = vmul.f32 %v5398_v47, %v1714_v52 }
0x10c5   :  { %v1663_v62 = vpop.permute.xlu0 %1662 }
0x10c6   :  { %1718 = vrot.lane.b32.xlu0 %v1716_v55, %s5647_s4  ;;  %v1665_v63 = vmul.f32 %v5400_v56, %v1663_v62 }
0x10c7   :  { %v1709_v4 = vpop.permute.xlu1 %1708 }
0x10c8   :  { %1667 = vrot.lane.b32.xlu1 %v1665_v63, %s5647_s4  ;;  %v1711_v5 = vmul.f32 %v5398_v47, %v1709_v4 }
0x1138   :  { %v1719_v15 = vpop.permute.xlu0 %1718 }
0x1139   :  { %v1721_v16 = vadd.f32 %v1719_v15, %v1711_v5 }
0x113a   :  { %v1668_v17 = vpop.permute.xlu1 %1667 }
0x113b   :  { %5401 = vtanh.f32 %v1721_v16  ;;  %v1670_v18 = vadd.f32 %v1668_v17, %v1660_v58  ;;  %v1737_v7 = vrot.slane %v1721_v16, 4 }
0x113d   :  { %5403 = vtanh.f32 %v1670_v18  ;;  %v1688_v28 = vrot.slane %v1670_v18, 6 }
0x1145   :  { %v5402_v20 = vpop.eup %5401 }
0x1146   :  { %1724 = vrot.lane.b32.xlu0 %v5402_v20, %s5647_s4 }
0x1147   :  { %v5404_v13 = vpop.eup %5403 }
0x1148   :  { %1673 = vrot.lane.b32.xlu1 %v5404_v13, %s5647_s4 }
0x11b8   :  { %v1725_v21 = vpop.permute.xlu0 %1724 }
0x11b9   :  { %v1727_v22 = vmul.f32 %v5398_v47, %v1725_v21 }
0x11ba   :  { %v1674_v25 = vpop.permute.xlu1 %1673 }
0x11bb   :  { %v1729_v23 = vrot.slane %v1727_v22, 4  ;;  %v1676_v26 = vmul.f32 %v5400_v56, %v1674_v25 }
0x11bd   :  { %1730 = vrot.lane.b32.xlu0 %v1729_v23, %s5648_s17  ;;  %v1678_v27 = vrot.slane %v1676_v26, 6 }
0x11bf   :  { %1679 = vrot.lane.b32.xlu1 %v1678_v27, %s5648_s17 }
0x11c1   :  { %1683 = vrot.lane.b32.xlu0 %v1682_v2, %s5648_s17 }
0x11c3   :  { %1738 = vrot.lane.b32.xlu1 %v1737_v7, %s5649_s18 }
0x11c5   :  { %1689 = vrot.lane.b32.xlu0 %v1688_v28, %s5649_s18 }
0x11c7   :  { %1694 = vrot.lane.b32.xlu1 %v1693_v29, %s5649_s18 }
0x122f   :  { %v6190_v12 = vpop.permute.xlu0 %1730 }
0x1230   :  { %v6195_v1 = vsel %vm181_vm4, %v6190_v12, %v1733_v30 }
0x1231   :  { %v1828_v31 = vrot.slane %v6195_v1, 4  ;;  %v6198_v32 = vpop.permute.xlu1 %1679 }
0x1233   :  { %4810 = vmatmul.mubr.msk.f32.vlgmr.msra.gmra.mrb[12].mxu0 %vm211_vm3, %v1828_v31  ;;  %v1684_v19 = vpop.permute.xlu0 %1683 }
0x1234   :  { %v6204_v33 = vsel %vm182_vm5, %v6198_v32, %v1684_v19  ;;  %5161 = vmatpush3.bf16.msra.mxu0 %v5837_v48  ;;  %4831 = vmatprep.mubr.msk.f32.mxu0 %vm5646_vm2, %v5644_v44  ;;  %v1829_v48 = vrot.slane %v5881_v3, 2 }
0x1235   :  { %v1752_v50 = vrot.slane %v6204_v33, 2  ;;  %5162 = vmatprep.subr.bf16.mxu0 %v5645_v45  ;;  %v1739_v40 = vpop.permute.xlu1 %1738 }
0x1236   :  { %v6224_v36 = vsel %vm181_vm4, %v1739_v40, %v1741_v8 }
0x1237   :  { %4799 = vmatmul.mubr.msk.f32.vlgmr.msra.gmra.mrb[18].mxu1 %vm211_vm3, %v1752_v50  ;;  %v1957_v46 = vrot.slane %v6224_v36, 4  ;;  %v1690_v47 = vpop.permute.xlu0 %1689 }
0x1238   :  { %5155 = vmatpush3.bf16.msra.mxu1 %v5845_v54  ;;  %5164 = vmatpush3.bf16.msra.mxu0 %v5841_v51 }
0x1239   :  { %5156 = vmatprep.subr.bf16.mxu1 %v5645_v45  ;;  %4820 = vmatprep.mubr.msk.f32.mxu1 %vm5646_vm2, %v5644_v44 }
0x123a   :  { %5181 = vmatprep.subr.bf16.mxu0 %v5645_v45 }
0x123c   :  { %5158 = vmatpush3.bf16.msra.mxu1 %v5850_v59  ;;  %v1695_v59 = vpop.permute.xlu1 %1694 }
0x123d   :  { %v6230_v55 = vsel %vm182_vm5, %v1690_v47, %v1695_v59 }
0x123e   :  { %v1911_v24 = vrot.slane %v6230_v55, 2 }
0x1306   :  { %v1899_v34 = vpop.f32.mrb[12].mxu0 }
0x1307   :  { %v1900_v35 = vadd.f32 %v1899_v34, %v1829_v48  ;;  %v4811_v37 = vpop.f32.mrb[13].mxu0 }
0x1308   :  { %v1983_v37 = vrot.slane %v6195_v1, 2 }
0x1309   :  { %5405 = vtanh.f32 %v1900_v35  ;;  %v4395_v56 = vmul.f32 -1.442695, %v1900_v35 }
0x130a   :  { %v1823_v54 = vpop.f32.mrb[18].mxu1 }
0x130b   :  { %v1824_v39 = vadd.f32 %v1823_v54, %v1753_v38  ;;  %v4800_v51 = vpop.f32.mrb[19].mxu1 }
0x130c   :  { %v1937_v51 = vrot.slane %v6204_v33, 6 }
0x130d   :  { %5407 = vtanh.f32 %v1824_v39  ;;  %v4394_v62 = vmul.f32 -1.442695, %v1824_v39 }
0x130e   :  { %5409 = vpow2.f32 %v4395_v56 }
0x130f   :  { %5411 = vpow2.f32 %v4394_v62  ;;  %v1991_v62 = vrot.slane %v6224_v36, 2 }
0x1313   :  { %v5406_v42 = vpop.eup %5405 }
0x1314   :  { %1963 = vrot.lane.b32.xlu0 %v5406_v42, %s5647_s4 }
0x1317   :  { %v5408_v52 = vpop.eup %5407 }
0x1318   :  { %1958 = vrot.lane.b32.xlu0 %v1957_v46, %s5647_s4  ;;  %1917 = vrot.lane.b32.xlu1 %v5408_v52, %s5647_s4  ;;  %v5410_v63 = vpop.eup %5409  ;;  %v2003_v46 = vrot.slane %v5885_v6, 6 }
0x1319   :  { %v1952_v4 = vadd.f32 1.0, %v5410_v63  ;;  %v5412_v5 = vpop.eup %5411 }
0x131a   :  { %v1906_v15 = vadd.f32 1.0, %v5412_v5 }
0x131b   :  { %5413 = vrcp.f32 %v1952_v4 }
0x131c   :  { %1912 = vrot.lane.b32.xlu1 %v1911_v24, %s5647_s4  ;;  %5415 = vrcp.f32 %v1906_v15 }
0x1325   :  { %v5414_v16 = vpop.eup %5413 }
0x1326   :  { %v5416_v17 = vpop.eup %5415 }
0x1386   :  { %v1964_v49 = vpop.permute.xlu0 %1963 }
0x1387   :  { %v1966_v58 = vmul.f32 %v5414_v16, %v1964_v49 }
0x1389   :  { %1968 = vrot.lane.b32.xlu0 %v1966_v58, %s5647_s4 }
0x138a   :  { %v1918_v18 = vpop.permute.xlu1 %1917  ;;  %v1959_v13 = vpop.permute.xlu0 %1958 }
0x138b   :  { %v1920_v20 = vmul.f32 %v5416_v17, %v1918_v18  ;;  %v1961_v21 = vmul.f32 %v5414_v16, %v1959_v13 }
0x138d   :  { %1922 = vrot.lane.b32.xlu1 %v1920_v20, %s5647_s4 }
0x138e   :  { %v1913_v22 = vpop.permute.xlu1 %1912 }
0x138f   :  { %v1915_v26 = vmul.f32 %v5416_v17, %v1913_v22 }
0x13fb   :  { %v1969_v23 = vpop.permute.xlu0 %1968 }
0x13fc   :  { %v1971_v25 = vadd.f32 %v1969_v23, %v1961_v21 }
0x13fe   :  { %5417 = vtanh.f32 %v1971_v25  ;;  %v1987_v48 = vrot.slane %v1971_v25, 6 }
0x13ff   :  { %v1923_v27 = vpop.permute.xlu1 %1922 }
0x1400   :  { %v1925_v2 = vadd.f32 %v1923_v27, %v1915_v26 }
0x1402   :  { %5419 = vtanh.f32 %v1925_v2  ;;  %v1941_v35 = vrot.slane %v1925_v2, 4 }
0x1408   :  { %v5418_v7 = vpop.eup %5417 }
0x1409   :  { %1974 = vrot.lane.b32.xlu0 %v5418_v7, %s5647_s4 }
0x140c   :  { %v5420_v28 = vpop.eup %5419 }
0x140d   :  { %1928 = vrot.lane.b32.xlu1 %v5420_v28, %s5647_s4 }
0x147b   :  { %v1975_v29 = vpop.permute.xlu0 %1974 }
0x147c   :  { %v1977_v30 = vmul.f32 %v5414_v16, %v1975_v29 }
0x147e   :  { %v1979_v31 = vrot.slane %v1977_v30, 6 }
0x147f   :  { %v1929_v19 = vpop.permute.xlu1 %1928 }
0x1480   :  { %v1931_v50 = vmul.f32 %v5416_v17, %v1929_v19  ;;  %1980 = vrot.lane.b32.xlu0 %v1979_v31, %s5648_s17 }
0x1482   :  { %v1933_v34 = vrot.slane %v1931_v50, 4 }
0x1484   :  { %1934 = vrot.lane.b32.xlu1 %v1933_v34, %s5648_s17  ;;  %1988 = vrot.lane.b32.xlu0 %v1987_v48, %s5649_s18  ;;  %v1488_v34 = vsel %vm181_vm4, %v6142_v11, 0.0  ;;  %v2226_v11 = vld [vmem:[%s6886_s5 + $0x10] sm:$0xff] }
0x1488   :  { %1942 = vrot.lane.b32.xlu1 %v1941_v35, %s5649_s18  ;;  %v2225_v35 = vld [vmem:[%s6886_s5 + $0x8] sm:$0xff] }
0x14f2   :  { %v6245_v38 = vpop.permute.xlu0 %1980 }
0x14f3   :  { %v1985_v54 = vsel %vm181_vm4, %v6245_v38, %v1983_v37  ;;  %v2227_v37 = vld [vmem:[%s6886_s5 + $0x18] sm:$0xff] }
0x14f4   :  { %v2078_v39 = vrot.slane %v1985_v54, 2  ;;  %v5165_v54 = vpack.c.bf16 %v2227_v37, %v2225_v35  ;;  %v1698_v37 = vsel %vm182_vm5, %v6198_v32, 0.0 }
0x14f6   :  { %v6251_v40 = vpop.permute.xlu1 %1934  ;;  %4832 = vmatmul.mubr.msk.f32.vlgmr.msra.gmra.mrb[14].mxu0 %vm211_vm3, %v2078_v39  ;;  %v1989_v56 = vpop.permute.xlu0 %1988  ;;  %v2224_v39 = vld [vmem:[%s6886_s5] sm:$0xff]  ;;  %5166 = vmatprep.subr.bf16.mxu1 %v5165_v54 }
0x14f7   :  { %v1939_v8 = vsel %vm182_vm5, %v6251_v40, %v1937_v51  ;;  %4842 = vmatprep.mubr.msk.f32.mxu0 %vm5646_vm2, %v5644_v44  ;;  %v1993_v4 = vsel %vm181_vm4, %v1989_v56, %v1991_v62  ;;  %v2229_v51 = vld [vmem:[%s6886_s5 + $0x28] sm:$0xff] }
0x14f8   :  { %v2002_v1 = vrot.slane %v1939_v8, 4  ;;  %v2194_v15 = vrot.slane %v1993_v4, 2  ;;  %v5167_v8 = vpack.c.bf16 %v2226_v11, %v2224_v39  ;;  %v2242_v4 = vld [vmem:[#allocation5 + $0x10] sm:$0xff] }
0x14fa   :  { %4821 = vmatmul.mubr.msk.f32.vlgmr.msra.gmra.mrb[20].mxu1 %vm211_vm3, %v2002_v1  ;;  %v1943_v5 = vpop.permute.xlu1 %1942  ;;  %v2231_v1 = vld [vmem:[%s6886_s5 + $0x38] sm:$0xff] }
0x14fb   :  { %2331 = vmatprep.mubr.f32.mxu1 %v5644_v44  ;;  %5168 = vmatpush1.bf16.msra.mxu1 %v5167_v8 }
0x15c9   :  { %v2147_v42 = vpop.f32.mrb[14].mxu0 }
0x15ca   :  { %v2148_v59 = vadd.f32 %v2147_v42, %v5881_v3  ;;  %v4833_v33 = vpop.f32.mrb[15].mxu0  ;;  %v1945_v3 = vrot.slane %v6230_v55, 6  ;;  %v2228_v42 = vld [vmem:[%s6886_s5 + $0x20] sm:$0xff] }
0x15cb   :  { %v1744_v33 = vsel %vm181_vm4, %v6190_v12, 0.0  ;;  %v1247_v12 = vsel %vm182_vm5, %v6074_v9, 0.0  ;;  %v2232_v9 = vld [vmem:[%s6886_s5 + $0x40] sm:$0xff] }
0x15cc   :  { %5421 = vtanh.f32 %v2148_v59  ;;  %v1947_v6 = vsel %vm182_vm5, %v1943_v5, %v1945_v3  ;;  %v4399_v36 = vmul.f32 -1.442695, %v2148_v59  ;;  %v2230_v59 = vld [vmem:[%s6886_s5 + $0x30] sm:$0xff]  ;;  %v2237_v3 = vld [vmem:[%s6886_s5 + $0x68] sm:$0xff] }
0x15cd   :  { %v2073_v47 = vpop.f32.mrb[20].mxu1  ;;  %v2159_v49 = vrot.slane %v1947_v6, 4  ;;  %v2236_v6 = vld [vmem:[%s6886_s5 + $0x60] sm:$0xff] }
0x15ce   :  { %v2074_v52 = vadd.f32 %v2073_v47, %v2003_v46  ;;  %v4822_v24 = vpop.f32.mrb[21].mxu1  ;;  %v1994_v46 = vsel %vm181_vm4, %v6245_v38, 0.0  ;;  %v5169_v47 = vpack.c.bf16 %v2231_v1, %v2229_v51  ;;  %v1008_v38 = vsel %vm182_vm5, %v6013_v10, 0.0  ;;  %v2234_v10 = vld [vmem:[%s6886_s5 + $0x50] sm:$0xff] }
0x15cf   :  { %v756_v24 = vsel %vm182_vm5, %v5957_v57, 0.0  ;;  %v2233_v57 = vld [vmem:[%s6886_s5 + $0x48] sm:$0xff]  ;;  %v5175_v62 = vpack.c.bf16 %v2234_v10, %v2232_v9 }
0x15d0   :  { %5423 = vtanh.f32 %v2074_v52  ;;  %v4398_v58 = vmul.f32 -1.442695, %v2074_v52  ;;  %v5171_v52 = vpack.c.bf16 %v2230_v59, %v2228_v42  ;;  %5170 = vmatprep.subr.bf16.mxu1 %v5169_v47 }
0x15d1   :  { %5425 = vpow2.f32 %v4399_v36 }
0x15d2   :  { %5427 = vpow2.f32 %v4398_v58  ;;  %5172 = vmatpush1.bf16.msra.mxu1 %v5171_v52  ;;  %v2244_v58 = vld [vmem:[#allocation5 + $0x20] sm:$0xff] }
0x15d6   :  { %v5422_v63 = vpop.eup %5421 }
0x15d7   :  { %2200 = vrot.lane.b32.xlu0 %v5422_v63, %s5647_s4  ;;  %v2240_v63 = vld [vmem:[#allocation5] sm:$0xff] }
0x15d8   :  { %v6347_v5 = vpack.c.bf16 %v2242_v4, %v2240_v63 }
0x15da   :  { %v5424_v16 = vpop.eup %5423  ;;  %5183 = vmatpush3.bf16.msra.mxu0 %v6347_v5 }
0x15db   :  { %2165 = vrot.lane.b32.xlu1 %v5424_v16, %s5647_s4  ;;  %2195 = vrot.lane.b32.xlu0 %v2194_v15, %s5647_s4  ;;  %v5426_v17 = vpop.eup %5425  ;;  %v2239_v15 = vld [vmem:[%s6886_s5 + $0x78] sm:$0xff] }
0x15dc   :  { %v2189_v18 = vadd.f32 1.0, %v5426_v17  ;;  %v5428_v20 = vpop.eup %5427  ;;  %v5177_v16 = vpack.c.bf16 %v2239_v15, %v2237_v3  ;;  %5184 = vmatprep.subr.bf16.mxu0 %v5645_v45  ;;  %v2246_v17 = vld [vmem:[#allocation5 + $0x30] sm:$0xff] }
0x15dd   :  { %v2154_v55 = vadd.f32 1.0, %v5428_v20  ;;  %v2241_v20 = vld [vmem:[#allocation5 + $0x8] sm:$0xff] }
0x15de   :  { %5429 = vrcp.f32 %v2189_v18  ;;  %v6363_v18 = vpack.c.bf16 %v2246_v17, %v2244_v58 }
0x15df   :  { %2160 = vrot.lane.b32.xlu1 %v2159_v49, %s5647_s4  ;;  %5431 = vrcp.f32 %v2154_v55  ;;  %v2238_v49 = vld [vmem:[%s6886_s5 + $0x70] sm:$0xff]  ;;  %v2243_v55 = vld [vmem:[#allocation5 + $0x18] sm:$0xff] }
0x15e0   :  { %v5179_v36 = vpack.c.bf16 %v2238_v49, %v2236_v6  ;;  %5186 = vmatpush3.bf16.msra.mxu0 %v6363_v18 }
0x15e1   :  { %5187 = vmatprep.subr.bf16.mxu0 %v5645_v45 }
0x15e3   :  { %4843 = vmatmul.mubr.f32.vlgmr.msra.gmra.mrb[16].mxu0 %v5644_v44 }
0x15e4   :  { %4853 = vmatprep.mubr.msk.f32.mxu0 %vm5646_vm2, %v5644_v44 }
0x15e8   :  { %v6273_v13 = vpop.eup %5429 }
0x15e9   :  { %v6277_v23 = vpop.eup %5431 }
0x1649   :  { %v2201_v21 = vpop.permute.xlu0 %2200 }
0x164a   :  { %v2203_v22 = vmul.f32 %v6273_v13, %v2201_v21 }
0x164c   :  { %2205 = vrot.lane.b32.xlu0 %v2203_v22, %s5647_s4  ;;  %v6368_v22 = vpack.c.bf16 %v2243_v55, %v2241_v20 }
0x164d   :  { %v2166_v25 = vpop.permute.xlu1 %2165  ;;  %v2196_v27 = vpop.permute.xlu0 %2195 }
0x164e   :  { %v2168_v26 = vmul.f32 %v6277_v23, %v2166_v25  ;;  %v2198_v2 = vmul.f32 %v6273_v13, %v2196_v27  ;;  %5189 = vmatpush3.bf16.msra.mxu0 %v6368_v22 }
0x164f   :  { %5190 = vmatprep.subr.bf16.mxu0 %v5645_v45 }
0x1650   :  { %2170 = vrot.lane.b32.xlu1 %v2168_v26, %s5647_s4 }
0x1651   :  { %v2161_v7 = vpop.permute.xlu1 %2160 }
0x1652   :  { %v2163_v30 = vmul.f32 %v6277_v23, %v2161_v7  ;;  %v2245_v7 = vld [vmem:[#allocation5 + $0x28] sm:$0xff] }
0x16b6   :  { %v2410_v8 = vpop.f32.mrb[16].mxu0 }
0x16b7   :  { %v4844_v1 = vpop.f32.mrb[17].mxu0 }
0x16be   :  { %v2206_v28 = vpop.permute.xlu0 %2205 }
0x16bf   :  { %v2208_v29 = vadd.f32 %v2206_v28, %v2198_v2  ;;  %v2247_v28 = vld [vmem:[#allocation5 + $0x38] sm:$0xff] }
0x16c1   :  { %5433 = vtanh.f32 %v2208_v29  ;;  %v6381_v29 = vpack.c.bf16 %v2247_v28, %v2245_v7 }
0x16c2   :  { %v2171_v31 = vpop.permute.xlu1 %2170 }
0x16c3   :  { %v2173_v19 = vadd.f32 %v2171_v31, %v2163_v30  ;;  %v1442_v31 = vsel %vm182_vm5, %v6132_v14, 0.0  ;;  %5192 = vmatpush3.bf16.msra.mxu0 %v6381_v29 }
0x16c4   :  { %5199 = vmatprep.subr.bf16.mxu0 %v5645_v45 }
0x16c5   :  { %5435 = vtanh.f32 %v2173_v19 }
0x16c6   :  { %4854 = vmatmul.mubr.f32.vlgmr.msra.gmra.mrb[18].mxu0 %v5644_v44 }
0x16c7   :  { %5201 = vmatpush3.bf16.msra.mxu0 %v6368_v22  ;;  %4875 = vmatprep.mubr.msk.f32.mxu0 %vm5646_vm2, %v5644_v44 }
0x16c8   :  { %5202 = vmatprep.subr.bf16.mxu0 %v5645_v45 }
0x16cb   :  { %v5434_v50 = vpop.eup %5433  ;;  %5204 = vmatpush3.bf16.msra.mxu0 %v6381_v29 }
0x16cc   :  { %2211 = vrot.lane.b32.xlu0 %v5434_v50, %s5647_s4  ;;  %5211 = vmatprep.subr.bf16.mxu0 %v5645_v45 }
0x16cf   :  { %v5436_v48 = vpop.eup %5435 }
0x16d0   :  { %2176 = vrot.lane.b32.xlu1 %v5436_v48, %s5647_s4  ;;  %1495 = vrot.lane.b32.xlu0 %v1488_v34, %s5647_s4  ;;  %v1948_v48 = vsel %vm182_vm5, %v6251_v40, 0.0 }
0x16d4   :  { %1747 = vrot.lane.b32.xlu1 %v1744_v33, %s5647_s4  ;;  %1997 = vrot.lane.b32.xlu0 %v1994_v46, %s5647_s4  ;;  %v2248_v33 = vld [vmem:[%s6888_s7] sm:$0x3] }
0x16d5   :  { %v2253_v46 = vrot.slane %v2248_v33, %v203_v0  ;;  %v2257_v47 = vrot.slane %v2248_v33, %v207_v61 }
0x16d8   :  { %760 = vrot.lane.b32.xlu1 %v756_v24, %s5647_s4  ;;  %510 = vrot.lane.b32.xlu0 %v5914_v53, %s5647_s4  ;;  %v2235_v53 = vld [vmem:[%s6886_s5 + $0x58] sm:$0xff] }
0x16d9   :  { %v5173_v56 = vpack.c.bf16 %v2235_v53, %v2233_v57 }
0x16db   :  { %5174 = vmatprep.subr.bf16.mxu1 %v5173_v56 }
0x16dc   :  { %1251 = vrot.lane.b32.xlu1 %v1247_v12, %s5649_s18  ;;  %1012 = vrot.lane.b32.xlu0 %v1008_v38, %s5647_s4 }
0x16dd   :  { %5176 = vmatpush1.bf16.msra.mxu1 %v5175_v62 }
0x16de   :  { %5178 = vmatprep.subr.bf16.mxu1 %v5177_v16 }
0x16e1   :  { %5180 = vmatpush1.bf16.msra.mxu1 %v5179_v36 }
0x16e2   :  { %5193 = vmatprep.subr.bf16.mxu1 %v5645_v45 }
0x173e   :  { %v2212_v21 = vpop.permute.xlu0 %2211 }
0x173f   :  { %v2214_v25 = vmul.f32 %v6273_v13, %v2212_v21 }
0x1741   :  { %v2215_v26 = vsel %vm181_vm4, %v2214_v25, 0.0 }
0x1742   :  { %v2177_v27 = vpop.permute.xlu1 %2176  ;;  %2218 = vrot.lane.b32.xlu1 %v2215_v26, %s5649_s18  ;;  %v1496_v2 = vpop.permute.xlu0 %1495 }
0x1743   :  { %v2179_v13 = vmul.f32 %v6277_v23, %v2177_v27  ;;  %1498 = vst.msk [vmem:[#allocation2] sm:$0xc0] %vm513_vm10, %v1496_v2 }
0x1745   :  { %v2181_v30 = vrot.slane %v2179_v13, 2 }
0x1746   :  { %v1748_v19 = vpop.permute.xlu1 %1747  ;;  %1490 = vrot.lane.b32.xlu1 %v1442_v31, %s5648_s17  ;;  %v1998_v50 = vpop.permute.xlu0 %1997 }
0x1747   :  { %1750 = vst.msk [vmem:[#allocation2] sm:$0x30] %vm763_vm11, %v1748_v19  ;;  %2182 = vrot.lane.b32.xlu0 %v2181_v30, %s5648_s17 }
0x1748   :  { %2000 = vst.msk [vmem:[#allocation2] sm:$0xc] %vm1015_vm12, %v1998_v50 }
0x174a   :  { %v761_v14 = vpop.permute.xlu1 %760  ;;  %v511_v23 = vpop.permute.xlu0 %510 }
0x174b   :  { %764 = vst.msk [vmem:[#allocation2 + $0x8] sm:$0x30] %vm763_vm11, %v761_v14 }
0x174c   :  { %514 = vst.msk [vmem:[#allocation2 + $0x8] sm:$0xc0] %vm513_vm10, %v511_v23 }
0x174d   :  { %1995 = vst.msk [vmem:[#allocation2 + $0x8] sm:$0x30] %vm1009_vm8, %v1948_v48 }
0x174e   :  { %v1252_v34 = vpop.permute.xlu1 %1251  ;;  %v1013_v35 = vpop.permute.xlu0 %1012 }
0x174f   :  { %1255 = vst.msk [vmem:[#allocation2 + $0x8] sm:$0x3] %vm1254_vm13, %v1252_v34 }
0x1750   :  { %1016 = vst.msk [vmem:[#allocation2 + $0x8] sm:$0xc] %vm1015_vm12, %v1013_v35 }
0x1751   :  { %1745 = vst.msk [vmem:[#allocation2 + $0x8] sm:$0xc] %vm757_vm7, %v1698_v37 }
0x1799   :  { %v2483_v42 = vpop.f32.mrb[18].mxu0 }
0x179a   :  { %v4855_v59 = vpop.f32.mrb[19].mxu0 }
0x17b4   :  { %v2219_v40 = vpop.permute.xlu1 %2218 }
0x17b5   :  { %2221 = vst.msk [vmem:[#allocation2] sm:$0x3] %vm1254_vm13, %v2219_v40 }
0x17b8   :  { %v1491_v54 = vpop.permute.xlu1 %1490 }
0x17b9   :  { %1493 = vst.msk [vmem:[#allocation2 + $0x8] sm:$0x3] %vm507_vm6, %v1491_v54  ;;  %v2183_v39 = vpop.permute.xlu0 %2182 }
0x17ba   :  { %v2185_v11 = vsel %vm182_vm5, %v2183_v39, 0.0 }
0x17bb   :  { %2216 = vst.msk [vmem:[#allocation2 + $0x8] sm:$0xc0] %vm1248_vm9, %v2185_v11 }
0x17bc   :  { %v2222_v32 = vld [vmem:[#allocation2] sm:$0xff] }
0x17bd   :  { %4400 = vmatmul.mubr.msk.f32.vlgmr.msra.gmra.mrb[22].mxu1 %vm2260_vm14, %v2222_v32 }
0x17be   :  { %2337 = vmatprep.mubr.f32.mxu1 %v5644_v44  ;;  %5195 = vmatpush3.bf16.msra.mxu1 %v6347_v5 }
0x17bf   :  { %5196 = vmatprep.subr.bf16.mxu1 %v5645_v45 }
0x17c2   :  { %v2223_v51 = vld [vmem:[#allocation2 + $0x8] sm:$0xff]  ;;  %5198 = vmatpush3.bf16.msra.mxu1 %v6363_v18 }
0x17c3   :  { %4401 = vmatmul.mubr.msk.f32.gmra.mrb[24].mxu1 %vm2260_vm14, %v2223_v51  ;;  %5205 = vmatprep.subr.bf16.mxu1 %v5645_v45 }
0x17c4   :  { %4864 = vmatprep.mubr.msk.f32.mxu1 %vm5646_vm2, %v5644_v44 }
0x1890   :  { %v2333_v52 = vpop.f32.mrb[22].mxu1 }
0x1891   :  { %v6432_v24 = vadd.f32 %v2333_v52, %v2253_v46  ;;  %v2335_v12 = vpop.f32.mrb[23].mxu1 }
0x1892   :  { %v6434_v38 = vadd.f32 %v2335_v12, %v2257_v47 }
0x1893   :  { %v2411_v57 = vadd.f32 %v2410_v8, %v6432_v24  ;;  %v2560_v54 = vrot.slane %v6432_v24, 2 }
0x1895   :  { %5437 = vtanh.f32 %v2411_v57  ;;  %v4402_v63 = vmul.f32 -1.442695, %v2411_v57 }
0x1896   :  { %v2339_v53 = vpop.f32.mrb[24].mxu1 }
0x1897   :  { %v6437_v56 = vadd.f32 %v2339_v53, %v2253_v46  ;;  %v2341_v9 = vpop.f32.mrb[25].mxu1 }
0x1898   :  { %v6439_v10 = vadd.f32 %v2341_v9, %v2257_v47 }
0x189a   :  { %v2415_v0 = vrot.slane %v6439_v10, 6  ;;  %v2635_v8 = vrot.slane %v6439_v10, 4 }
0x189c   :  { %v2484_v62 = vadd.f32 %v2483_v42, %v2415_v0 }
0x189e   :  { %5439 = vtanh.f32 %v2484_v62  ;;  %v4403_v4 = vmul.f32 -1.442695, %v2484_v62 }
0x189f   :  { %v5438_v60 = vpop.eup %5437  ;;  %5441 = vpow2.f32 %v4402_v63 }
0x18a0   :  { %2496 = vrot.lane.b32.xlu1 %v5438_v60, %s5647_s4  ;;  %5443 = vpow2.f32 %v4403_v4 }
0x18a8   :  { %v5440_v61 = vpop.eup %5439 }
0x18a9   :  { %2522 = vrot.lane.b32.xlu0 %v5440_v61, %s5647_s4  ;;  %v5442_v3 = vpop.eup %5441 }
0x18aa   :  { %v2490_v15 = vadd.f32 1.0, %v5442_v3  ;;  %v5444_v16 = vpop.eup %5443 }
0x18ab   :  { %v2516_v6 = vadd.f32 1.0, %v5444_v16 }
0x18ac   :  { %5445 = vrcp.f32 %v2490_v15 }
0x18ad   :  { %5447 = vrcp.f32 %v2516_v6 }
0x18b6   :  { %v5446_v49 = vpop.eup %5445 }
0x18b7   :  { %v5448_v17 = vpop.eup %5447  ;;  %v2494_v21 = vmul.f32 0.0, %v5446_v49 }
0x18b8   :  { %v2520_v27 = vmul.f32 0.0, %v5448_v17 }
0x1912   :  { %v2497_v36 = vpop.permute.xlu1 %2496 }
0x1913   :  { %v2499_v58 = vmul.f32 %v5446_v49, %v2497_v36 }
0x1915   :  { %2501 = vrot.lane.b32.xlu1 %v2499_v58, %s5647_s4 }
0x191b   :  { %v2523_v20 = vpop.permute.xlu0 %2522 }
0x191c   :  { %v2525_v55 = vmul.f32 %v5448_v17, %v2523_v20 }
0x191e   :  { %2527 = vrot.lane.b32.xlu0 %v2525_v55, %s5647_s4 }
0x1987   :  { %v2502_v25 = vpop.permute.xlu1 %2501 }
0x1988   :  { %v6446_v26 = vadd.f32 %v2502_v25, %v2494_v21 }
0x198a   :  { %5449 = vtanh.f32 %v6446_v26  ;;  %v2512_v16 = vsel %vm181_vm4, %v6446_v26, 0.0 }
0x1990   :  { %v2528_v2 = vpop.permute.xlu0 %2527 }
0x1991   :  { %v2530_v7 = vadd.f32 %v2528_v2, %v2520_v27 }
0x1993   :  { %5451 = vtanh.f32 %v2530_v7  ;;  %v2544_v48 = vrot.slane %v2530_v7, 2 }
0x1994   :  { %v5450_v28 = vpop.eup %5449 }
0x1995   :  { %2507 = vrot.lane.b32.xlu1 %v5450_v28, %s5647_s4 }
0x199d   :  { %v5452_v13 = vpop.eup %5451 }
0x199e   :  { %2533 = vrot.lane.b32.xlu0 %v5452_v13, %s5647_s4 }
0x1a07   :  { %v2508_v30 = vpop.permute.xlu1 %2507 }
0x1a08   :  { %v2510_v31 = vmul.f32 %v5446_v49, %v2508_v30 }
0x1a0a   :  { %v6453_v19 = vsel %vm181_vm4, %v2510_v31, 0.0 }
0x1a0b   :  { %2550 = vrot.lane.b32.xlu1 %v6453_v19, %s5648_s17  ;;  %v2738_v27 = vrot.slane %v6453_v19, 6 }
0x1a10   :  { %v2534_v50 = vpop.permute.xlu0 %2533 }
0x1a11   :  { %v2536_v14 = vmul.f32 %v5448_v17, %v2534_v50 }
0x1a13   :  { %v2538_v23 = vrot.slane %v2536_v14, 2  ;;  %v2749_v14 = vrot.slane %v2512_v16, 6 }
0x1a15   :  { %2539 = vrot.lane.b32.xlu0 %v2538_v23, %s5648_s17 }
0x1a19   :  { %2545 = vrot.lane.b32.xlu0 %v2544_v48, %s5649_s18 }
0x1a7d   :  { %v2551_v34 = vpop.permute.xlu1 %2550 }
0x1a7e   :  { %2553 = vst.msk [vmem:[#allocation2] sm:$0x3] %vm507_vm6, %v2551_v34  ;;  %4865 = vmatmul.mubr.msk.f32.vlgmr.msra.gmra.mrb[26].mxu1 %vm211_vm3, %v2551_v34 }
0x1a7f   :  { %5207 = vmatpush3.bf16.msra.mxu1 %v6347_v5  ;;  %4886 = vmatprep.mubr.msk.f32.mxu1 %vm5646_vm2, %v5644_v44 }
0x1a80   :  { %5208 = vmatprep.subr.bf16.mxu1 %v5645_v45 }
0x1a83   :  { %5210 = vmatpush3.bf16.msra.mxu1 %v6363_v18 }
0x1a84   :  { %5217 = vmatprep.subr.bf16.mxu1 %v5645_v45 }
0x1a87   :  { %v2540_v35 = vpop.permute.xlu0 %2539 }
0x1a88   :  { %v6469_v37 = vsel %vm182_vm5, %v2540_v35, 0.0 }
0x1a89   :  { %v2634_v40 = vrot.slane %v6469_v37, 6 }
0x1a8b   :  { %4876 = vmatmul.mubr.msk.f32.vlgmr.msra.gmra.mrb[20].mxu0 %vm211_vm3, %v2634_v40  ;;  %v2546_v51 = vpop.permute.xlu0 %2545  ;;  %v2789_v40 = vrot.slane %v6469_v37, 2 }
0x1a8c   :  { %5213 = vmatpush3.bf16.msra.mxu0 %v6368_v22  ;;  %4897 = vmatprep.mubr.msk.f32.mxu0 %vm5646_vm2, %v5644_v44  ;;  %v6483_v42 = vsel %vm182_vm5, %v2546_v51, 0.0 }
0x1a8d   :  { %5214 = vmatprep.subr.bf16.mxu0 %v5645_v45  ;;  %v2763_v47 = vrot.slane %v6483_v42, 6 }
0x1a90   :  { %5216 = vmatpush3.bf16.msra.mxu0 %v6381_v29 }
0x1a91   :  { %5223 = vmatprep.subr.bf16.mxu0 %v5645_v45 }
0x1b51   :  { %v2630_v39 = vpop.f32.mrb[26].mxu1 }
0x1b52   :  { %v2631_v11 = vadd.f32 %v2630_v39, %v2560_v54  ;;  %v4866_v32 = vpop.f32.mrb[27].mxu1 }
0x1b53   :  { %v2809_v32 = vrot.slane %v6432_v24, 4 }
0x1b54   :  { %5453 = vtanh.f32 %v2631_v11  ;;  %v4406_v12 = vmul.f32 -1.442695, %v2631_v11 }
0x1b5e   :  { %v5454_v1 = vpop.eup %5453  ;;  %v2705_v59 = vpop.f32.mrb[20].mxu0 }
0x1b5f   :  { %v2706_v33 = vadd.f32 %v2705_v59, %v2635_v8  ;;  %2718 = vrot.lane.b32.xlu1 %v5454_v1, %s5647_s4  ;;  %v4877_v46 = vpop.f32.mrb[21].mxu0 }
0x1b60   :  { %v2885_v46 = vrot.slane %v6439_v10, 2 }
0x1b61   :  { %5455 = vtanh.f32 %v2706_v33  ;;  %v4407_v57 = vmul.f32 -1.442695, %v2706_v33 }
0x1b62   :  { %5457 = vpow2.f32 %v4406_v12 }
0x1b63   :  { %2764 = vrot.lane.b32.xlu1 %v2763_v47, %s5647_s4  ;;  %5459 = vpow2.f32 %v4407_v57 }
0x1b6b   :  { %v5456_v52 = vpop.eup %5455 }
0x1b6c   :  { %2769 = vrot.lane.b32.xlu0 %v5456_v52, %s5647_s4  ;;  %v5458_v53 = vpop.eup %5457 }
0x1b6d   :  { %v2712_v9 = vadd.f32 1.0, %v5458_v53  ;;  %v5460_v0 = vpop.eup %5459 }
0x1b6e   :  { %v2758_v62 = vadd.f32 1.0, %v5460_v0 }
0x1b6f   :  { %5461 = vrcp.f32 %v2712_v9 }
0x1b70   :  { %5463 = vrcp.f32 %v2758_v62  ;;  %v2797_v62 = vrot.slane %v6483_v42, 2 }
0x1b79   :  { %v5462_v60 = vpop.eup %5461 }
0x1b7a   :  { %v5464_v4 = vpop.eup %5463  ;;  %v2716_v6 = vmul.f32 %v5462_v60, %v2512_v16 }
0x1bd1   :  { %v2719_v61 = vpop.permute.xlu1 %2718 }
0x1bd2   :  { %v2721_v63 = vmul.f32 %v5462_v60, %v2719_v61 }
0x1bd4   :  { %2723 = vrot.lane.b32.xlu0 %v2721_v63, %s5647_s4 }
0x1bd5   :  { %v2765_v58 = vpop.permute.xlu1 %2764 }
0x1bd6   :  { %v2767_v17 = vmul.f32 %v5464_v4, %v2765_v58 }
0x1bde   :  { %v2770_v3 = vpop.permute.xlu0 %2769 }
0x1bdf   :  { %v2772_v15 = vmul.f32 %v5464_v4, %v2770_v3 }
0x1be1   :  { %2774 = vrot.lane.b32.xlu1 %v2772_v15, %s5647_s4 }
0x1c46   :  { %v2724_v49 = vpop.permute.xlu0 %2723 }
0x1c47   :  { %v2726_v36 = vadd.f32 %v2724_v49, %v2716_v6 }
0x1c49   :  { %5465 = vtanh.f32 %v2726_v36  ;;  %v2744_v26 = vrot.slane %v2726_v36, 6 }
0x1c53   :  { %v5466_v20 = vpop.eup %5465  ;;  %v2775_v55 = vpop.permute.xlu1 %2774 }
0x1c54   :  { %v2777_v21 = vadd.f32 %v2775_v55, %v2767_v17  ;;  %2729 = vrot.lane.b32.xlu0 %v5466_v20, %s5647_s4 }
0x1c56   :  { %5467 = vtanh.f32 %v2777_v21  ;;  %v2793_v2 = vrot.slane %v2777_v21, 4 }
0x1c60   :  { %v5468_v25 = vpop.eup %5467 }
0x1c61   :  { %2780 = vrot.lane.b32.xlu1 %v5468_v25, %s5647_s4 }
0x1c65   :  { %2739 = vrot.lane.b32.xlu1 %v2738_v27, %s5648_s17 }
0x1c69   :  { %2745 = vrot.lane.b32.xlu1 %v2744_v26, %s5649_s18 }
0x1c6d   :  { %2794 = vrot.lane.b32.xlu1 %v2793_v2, %s5649_s18 }
0x1cc6   :  { %v2730_v7 = vpop.permute.xlu0 %2729 }
0x1cc7   :  { %v2732_v28 = vmul.f32 %v5462_v60, %v2730_v7 }
0x1cc9   :  { %v2734_v13 = vrot.slane %v2732_v28, 6 }
0x1ccb   :  { %2735 = vrot.lane.b32.xlu0 %v2734_v13, %s5648_s17 }
0x1cd3   :  { %v2781_v30 = vpop.permute.xlu1 %2780 }
0x1cd4   :  { %v2783_v31 = vmul.f32 %v5464_v4, %v2781_v30 }
0x1cd6   :  { %v2785_v50 = vrot.slane %v2783_v31, 4 }
0x1cd7   :  { %v2740_v19 = vpop.permute.xlu1 %2739 }
0x1cd8   :  { %2786 = vrot.lane.b32.xlu0 %v2785_v50, %s5648_s17 }
0x1cdb   :  { %v2746_v33 = vpop.permute.xlu1 %2745 }
0x1cdc   :  { %2750 = vrot.lane.b32.xlu0 %v2749_v14, %s5649_s18 }
0x1cdf   :  { %v2795_v0 = vpop.permute.xlu1 %2794 }
0x1ce0   :  { %v6546_v61 = vsel %vm182_vm5, %v2795_v0, %v2797_v62 }
0x1ce1   :  { %v3013_v63 = vrot.slane %v6546_v61, 4 }
0x1d3d   :  { %v2736_v23 = vpop.permute.xlu0 %2735 }
0x1d3e   :  { %v6505_v48 = vsel %vm181_vm4, %v2736_v23, %v2740_v19  ;;  %v2754_v34 = vsel %vm181_vm4, %v2736_v23, 0.0 }
0x1d3f   :  { %2801 = vst.msk [vmem:[#allocation2] sm:$0xc] %vm757_vm7, %v2754_v34  ;;  %v2808_v35 = vrot.slane %v6505_v48, 2 }
0x1d41   :  { %4887 = vmatmul.mubr.msk.f32.vlgmr.msra.gmra.mrb[28].mxu1 %vm211_vm3, %v2808_v35 }
0x1d42   :  { %5219 = vmatpush3.bf16.msra.mxu1 %v6347_v5  ;;  %4908 = vmatprep.mubr.msk.f32.mxu1 %vm5646_vm2, %v5644_v44 }
0x1d43   :  { %5220 = vmatprep.subr.bf16.mxu1 %v5645_v45 }
0x1d46   :  { %5222 = vmatpush3.bf16.msra.mxu1 %v6363_v18 }
0x1d47   :  { %5229 = vmatprep.subr.bf16.mxu1 %v5645_v45 }
0x1d4a   :  { %v6519_v54 = vpop.permute.xlu0 %2786 }
0x1d4b   :  { %v6524_v39 = vsel %vm182_vm5, %v6519_v54, %v2789_v40 }
0x1d4c   :  { %v2884_v11 = vrot.slane %v6524_v39, 4 }
0x1d4e   :  { %4898 = vmatmul.mubr.msk.f32.vlgmr.msra.gmra.mrb[22].mxu0 %vm211_vm3, %v2884_v11  ;;  %v2751_v59 = vpop.permute.xlu0 %2750 }
0x1d4f   :  { %5225 = vmatpush3.bf16.msra.mxu0 %v6368_v22  ;;  %4919 = vmatprep.mubr.msk.f32.mxu0 %vm5646_vm2, %v5644_v44  ;;  %v6538_v52 = vsel %vm181_vm4, %v2746_v33, %v2751_v59 }
0x1d50   :  { %5226 = vmatprep.subr.bf16.mxu0 %v5645_v45  ;;  %v2967_v9 = vrot.slane %v6538_v52, 2  ;;  %v3001_v0 = vrot.slane %v6538_v52, 6 }
0x1d53   :  { %5228 = vmatpush3.bf16.msra.mxu0 %v6381_v29 }
0x1d54   :  { %5235 = vmatprep.subr.bf16.mxu0 %v5645_v45 }
0x1e14   :  { %v2879_v51 = vpop.f32.mrb[28].mxu1 }
0x1e15   :  { %v2880_v8 = vadd.f32 %v2879_v51, %v2809_v32  ;;  %v4888_v1 = vpop.f32.mrb[29].mxu1  ;;  %v2993_v32 = vrot.slane %v6505_v48, 6  ;;  %v3039_v48 = vrot.slane %v6524_v39, 2  ;;  %v3059_v39 = vrot.slane %v6432_v24, 6 }
0x1e17   :  { %5469 = vtanh.f32 %v2880_v8  ;;  %v4410_v4 = vmul.f32 -1.442695, %v2880_v8 }
0x1e21   :  { %v5470_v47 = vpop.eup %5469  ;;  %v2955_v12 = vpop.f32.mrb[22].mxu0 }
0x1e22   :  { %v2956_v57 = vadd.f32 %v2955_v12, %v2885_v46  ;;  %2973 = vrot.lane.b32.xlu0 %v5470_v47, %s5647_s4  ;;  %v4899_v53 = vpop.f32.mrb[23].mxu0 }
0x1e24   :  { %5471 = vtanh.f32 %v2956_v57  ;;  %v4411_v3 = vmul.f32 -1.442695, %v2956_v57 }
0x1e25   :  { %5473 = vpow2.f32 %v4410_v4 }
0x1e26   :  { %2968 = vrot.lane.b32.xlu0 %v2967_v9, %s5647_s4  ;;  %5475 = vpow2.f32 %v4411_v3 }
0x1e2e   :  { %v5472_v60 = vpop.eup %5471 }
0x1e2f   :  { %3019 = vrot.lane.b32.xlu1 %v5472_v60, %s5647_s4  ;;  %v5474_v15 = vpop.eup %5473 }
0x1e30   :  { %v2962_v16 = vadd.f32 1.0, %v5474_v15  ;;  %v5476_v6 = vpop.eup %5475 }
0x1e31   :  { %v3008_v42 = vadd.f32 1.0, %v5476_v6 }
0x1e32   :  { %5477 = vrcp.f32 %v2962_v16  ;;  %v3047_v16 = vrot.slane %v6546_v61, 2 }
0x1e33   :  { %3014 = vrot.lane.b32.xlu1 %v3013_v63, %s5647_s4  ;;  %5479 = vrcp.f32 %v3008_v42 }
0x1e3c   :  { %v5478_v49 = vpop.eup %5477 }
0x1e3d   :  { %v5480_v17 = vpop.eup %5479 }
0x1e94   :  { %v2974_v36 = vpop.permute.xlu0 %2973 }
0x1e95   :  { %v2976_v58 = vmul.f32 %v5478_v49, %v2974_v36 }
0x1e97   :  { %2978 = vrot.lane.b32.xlu0 %v2976_v58, %s5647_s4 }
0x1e98   :  { %v2969_v21 = vpop.permute.xlu0 %2968 }
0x1e99   :  { %v2971_v25 = vmul.f32 %v5478_v49, %v2969_v21 }
0x1ea1   :  { %v3020_v20 = vpop.permute.xlu1 %3019 }
0x1ea2   :  { %v3022_v55 = vmul.f32 %v5480_v17, %v3020_v20 }
0x1ea4   :  { %3024 = vrot.lane.b32.xlu1 %v3022_v55, %s5647_s4 }
0x1ea5   :  { %v3015_v2 = vpop.permute.xlu1 %3014 }
0x1ea6   :  { %v3017_v7 = vmul.f32 %v5480_v17, %v3015_v2 }
0x1f09   :  { %v2979_v27 = vpop.permute.xlu0 %2978 }
0x1f0a   :  { %v2981_v26 = vadd.f32 %v2979_v27, %v2971_v25 }
0x1f0c   :  { %5481 = vtanh.f32 %v2981_v26  ;;  %v2997_v23 = vrot.slane %v2981_v26, 4 }
0x1f16   :  { %v5482_v28 = vpop.eup %5481  ;;  %v3025_v13 = vpop.permute.xlu1 %3024 }
0x1f17   :  { %v3027_v30 = vadd.f32 %v3025_v13, %v3017_v7  ;;  %2984 = vrot.lane.b32.xlu0 %v5482_v28, %s5647_s4 }
0x1f19   :  { %5483 = vtanh.f32 %v3027_v30  ;;  %v3043_v11 = vrot.slane %v3027_v30, 6 }
0x1f23   :  { %v5484_v31 = vpop.eup %5483 }
0x1f24   :  { %3030 = vrot.lane.b32.xlu1 %v5484_v31, %s5647_s4 }
0x1f89   :  { %v2985_v50 = vpop.permute.xlu0 %2984 }
0x1f8a   :  { %v2987_v14 = vmul.f32 %v5478_v49, %v2985_v50 }
0x1f8c   :  { %v2989_v19 = vrot.slane %v2987_v14, 4 }
0x1f8e   :  { %2990 = vrot.lane.b32.xlu0 %v2989_v19, %s5648_s17 }
0x1f92   :  { %2998 = vrot.lane.b32.xlu0 %v2997_v23, %s5649_s18 }
0x1f96   :  { %v3031_v34 = vpop.permute.xlu1 %3030 }
0x1f97   :  { %v3033_v35 = vmul.f32 %v5480_v17, %v3031_v34 }
0x1f99   :  { %v3035_v40 = vrot.slane %v3033_v35, 6 }
0x1f9b   :  { %3036 = vrot.lane.b32.xlu1 %v3035_v40, %s5648_s17 }
0x1f9f   :  { %3044 = vrot.lane.b32.xlu1 %v3043_v11, %s5649_s18 }
0x2000   :  { %v2991_v51 = vpop.permute.xlu0 %2990 }
0x2001   :  { %v6562_v8 = vsel %vm181_vm4, %v2991_v51, %v2993_v32  ;;  %v3004_v1 = vsel %vm181_vm4, %v2991_v51, 0.0 }
0x2002   :  { %3051 = vst.msk [vmem:[#allocation2] sm:$0x30] %vm1009_vm8, %v3004_v1  ;;  %v3058_v59 = vrot.slane %v6562_v8, 4 }
0x2004   :  { %4909 = vmatmul.mubr.msk.f32.vlgmr.msra.gmra.mrb[30].mxu1 %vm211_vm3, %v3058_v59  ;;  %v2999_v9 = vpop.permute.xlu0 %2998 }
0x2005   :  { %5231 = vmatpush3.bf16.msra.mxu1 %v6347_v5  ;;  %4930 = vmatprep.mubr.msk.f32.mxu1 %vm5646_vm2, %v5644_v44  ;;  %v6592_v60 = vsel %vm181_vm4, %v2999_v9, %v3001_v0  ;;  %v3372_v0 = vrot.slane %v6434_v38, 6 }
0x2006   :  { %5232 = vmatprep.subr.bf16.mxu1 %v5645_v45  ;;  %v3215_v24 = vrot.slane %v6592_v60, 4 }
0x2009   :  { %5234 = vmatpush3.bf16.msra.mxu1 %v6363_v18 }
0x200a   :  { %5241 = vmatprep.subr.bf16.mxu1 %v5645_v45 }
0x200d   :  { %v6576_v33 = vpop.permute.xlu1 %3036 }
0x200e   :  { %v3041_v46 = vsel %vm182_vm5, %v6576_v33, %v3039_v48  ;;  %v3241_v48 = vrot.slane %v6562_v8, 6 }
0x200f   :  { %v3134_v47 = vrot.slane %v3041_v46, 2 }
0x2011   :  { %4920 = vmatmul.mubr.msk.f32.vlgmr.msra.gmra.mrb[24].mxu0 %vm211_vm3, %v3134_v47  ;;  %v3045_v15 = vpop.permute.xlu1 %3044 }
0x2012   :  { %5237 = vmatpush3.bf16.msra.mxu0 %v6368_v22  ;;  %4941 = vmatprep.mubr.msk.f32.mxu0 %vm5646_vm2, %v5644_v44  ;;  %v3049_v6 = vsel %vm182_vm5, %v3045_v15, %v3047_v16 }
0x2013   :  { %5238 = vmatprep.subr.bf16.mxu0 %v5645_v45  ;;  %v3261_v42 = vrot.slane %v3049_v6, 2 }
0x2016   :  { %5240 = vmatpush3.bf16.msra.mxu0 %v6381_v29 }
0x2017   :  { %5247 = vmatprep.subr.bf16.mxu0 %v5645_v45 }
0x20d7   :  { %v3129_v12 = vpop.f32.mrb[30].mxu1 }
0x20d8   :  { %v3130_v57 = vadd.f32 %v3129_v12, %v3059_v39  ;;  %v4910_v53 = vpop.f32.mrb[31].mxu1 }
0x20da   :  { %5485 = vtanh.f32 %v3130_v57 }
0x20e4   :  { %v5486_v62 = vpop.eup %5485  ;;  %v3203_v63 = vpop.f32.mrb[24].mxu0 }
0x20e5   :  { %v3204_v4 = vadd.f32 %v3203_v63, %v6439_v10  ;;  %v4921_v3 = vpop.f32.mrb[25].mxu0  ;;  %3221 = vrot.lane.b32.xlu0 %v5486_v62, %s5647_s4  ;;  %v4414_v10 = vmul.f32 -1.442695, %v3130_v57 }
0x20e7   :  { %5487 = vtanh.f32 %v3204_v4  ;;  %v4415_v49 = vmul.f32 -1.442695, %v3204_v4 }
0x20e8   :  { %5489 = vpow2.f32 %v4414_v10 }
0x20e9   :  { %3216 = vrot.lane.b32.xlu0 %v3215_v24, %s5647_s4  ;;  %5491 = vpow2.f32 %v4415_v49  ;;  %v3249_v24 = vrot.slane %v6592_v60, 6 }
0x20f1   :  { %v5488_v52 = vpop.eup %5487 }
0x20f2   :  { %3267 = vrot.lane.b32.xlu1 %v5488_v52, %s5647_s4  ;;  %v5490_v36 = vpop.eup %5489 }
0x20f3   :  { %v3210_v58 = vadd.f32 1.0, %v5490_v36  ;;  %v5492_v17 = vpop.eup %5491 }
0x20f4   :  { %v3256_v20 = vadd.f32 1.0, %v5492_v17 }
0x20f5   :  { %5493 = vrcp.f32 %v3210_v58 }
0x20f6   :  { %3262 = vrot.lane.b32.xlu1 %v3261_v42, %s5647_s4  ;;  %5495 = vrcp.f32 %v3256_v20 }
0x20ff   :  { %v5494_v55 = vpop.eup %5493 }
0x2100   :  { %v5496_v25 = vpop.eup %5495 }
0x2157   :  { %v3222_v61 = vpop.permute.xlu0 %3221 }
0x2158   :  { %v3224_v21 = vmul.f32 %v5494_v55, %v3222_v61 }
0x215a   :  { %3226 = vrot.lane.b32.xlu0 %v3224_v21, %s5647_s4 }
0x215b   :  { %v3217_v2 = vpop.permute.xlu0 %3216 }
0x215c   :  { %v3219_v7 = vmul.f32 %v5494_v55, %v3217_v2 }
0x2164   :  { %v3268_v27 = vpop.permute.xlu1 %3267 }
0x2165   :  { %v3270_v26 = vmul.f32 %v5496_v25, %v3268_v27 }
0x2167   :  { %3272 = vrot.lane.b32.xlu1 %v3270_v26, %s5647_s4 }
0x2168   :  { %v6605_v30 = vpop.permute.xlu1 %3262 }
0x2169   :  { %v3265_v31 = vmul.f32 %v5496_v25, %v6605_v30 }
0x21cc   :  { %v3227_v28 = vpop.permute.xlu0 %3226 }
0x21cd   :  { %v3229_v13 = vadd.f32 %v3227_v28, %v3219_v7 }
0x21cf   :  { %5497 = vtanh.f32 %v3229_v13  ;;  %v3245_v11 = vrot.slane %v3229_v13, 2 }
0x21d9   :  { %v5498_v50 = vpop.eup %5497  ;;  %v3273_v14 = vpop.permute.xlu1 %3272 }
0x21da   :  { %v6608_v19 = vadd.f32 %v3273_v14, %v3265_v31  ;;  %3232 = vrot.lane.b32.xlu0 %v5498_v50, %s5647_s4 }
0x21dc   :  { %5499 = vtanh.f32 %v6608_v19  ;;  %v3286_v27 = vsel %vm182_vm5, %v6608_v19, %v6605_v30 }
0x21de   :  { %3282 = vrot.lane.b32.xlu0 %v3134_v47, %s5648_s17 }
0x21e6   :  { %v5500_v23 = vpop.eup %5499 }
0x21e7   :  { %3278 = vrot.lane.b32.xlu1 %v5500_v23, %s5647_s4 }
0x224c   :  { %v3233_v34 = vpop.permute.xlu0 %3232 }
0x224d   :  { %v3235_v35 = vmul.f32 %v5494_v55, %v3233_v34 }
0x224f   :  { %v3237_v40 = vrot.slane %v3235_v35, 2 }
0x2250   :  { %v3283_v1 = vpop.permute.xlu0 %3282 }
0x2251   :  { %3238 = vrot.lane.b32.xlu1 %v3237_v40, %s5648_s17 }
0x2255   :  { %3246 = vrot.lane.b32.xlu1 %v3245_v11, %s5649_s18 }
0x2259   :  { %v3279_v32 = vpop.permute.xlu1 %3278 }
0x225a   :  { %v6616_v51 = vmul.f32 %v5496_v25, %v3279_v32 }
0x225c   :  { %v6621_v59 = vsel %vm182_vm5, %v6616_v51, %v3283_v1 }
0x225d   :  { %3369 = vrot.lane.b32.xlu0 %v6621_v59, %s5648_s17  ;;  %v3510_v30 = vrot.slane %v6621_v59, 2  ;;  %v3521_v59 = vrot.slane %v3286_v27, 2 }
0x22c3   :  { %v3239_v46 = vpop.permute.xlu1 %3238 }
0x22c4   :  { %v6628_v47 = vsel %vm181_vm4, %v3239_v46, %v3241_v48  ;;  %v3252_v39 = vsel %vm181_vm4, %v3239_v46, 0.0 }
0x22c5   :  { %3288 = vst.msk [vmem:[#allocation2] sm:$0xc0] %vm1248_vm9, %v3252_v39  ;;  %v3295_v12 = vrot.slane %v6628_v47, 6 }
0x22c7   :  { %4931 = vmatmul.mubr.msk.f32.vlgmr.msra.gmra.mrb[32].mxu1 %vm211_vm3, %v3295_v12  ;;  %v3247_v63 = vpop.permute.xlu1 %3246 }
0x22c8   :  { %5243 = vmatpush3.bf16.msra.mxu1 %v6347_v5  ;;  %4952 = vmatprep.mubr.msk.f32.mxu1 %vm5646_vm2, %v5644_v44  ;;  %v3251_v16 = vsel %vm181_vm4, %v3247_v63, %v3249_v24 }
0x22c9   :  { %5244 = vmatprep.subr.bf16.mxu1 %v5645_v45  ;;  %v3454_v52 = vrot.slane %v3251_v16, 6 }
0x22cc   :  { %5246 = vmatpush3.bf16.msra.mxu1 %v6363_v18 }
0x22cd   :  { %5253 = vmatprep.subr.bf16.mxu1 %v5645_v45 }
0x22cf   :  { %v3370_v8 = vpop.permute.xlu0 %3369 }
0x22d0   :  { %4942 = vmatmul.mubr.msk.f32.vlgmr.msra.gmra.mrb[26].mxu0 %vm211_vm3, %v3370_v8 }
0x22d1   :  { %5249 = vmatpush3.bf16.msra.mxu0 %v6368_v22  ;;  %4963 = vmatprep.mubr.msk.f32.mxu0 %vm5646_vm2, %v5644_v44 }
0x22d2   :  { %5250 = vmatprep.subr.bf16.mxu0 %v5645_v45 }
0x22d5   :  { %5252 = vmatpush3.bf16.msra.mxu0 %v6381_v29 }
0x22d6   :  { %5259 = vmatprep.subr.bf16.mxu0 %v5645_v45 }
0x239a   :  { %v3364_v57 = vpop.f32.mrb[32].mxu1 }
0x239b   :  { %v3365_v53 = vadd.f32 %v3364_v57, %v6437_v56  ;;  %v4932_v9 = vpop.f32.mrb[33].mxu1  ;;  %v3617_v57 = vrot.slane %v6434_v38, 4 }
0x239c   :  { %v3541_v9 = vrot.slane %v6437_v56, 2 }
0x239d   :  { %5501 = vtanh.f32 %v3365_v53  ;;  %v4418_v10 = vmul.f32 -1.442695, %v3365_v53 }
0x23a3   :  { %v3442_v62 = vpop.f32.mrb[26].mxu0 }
0x23a4   :  { %v3443_v4 = vadd.f32 %v3442_v62, %v3372_v0  ;;  %v4943_v3 = vpop.f32.mrb[27].mxu0 }
0x23a6   :  { %5503 = vtanh.f32 %v3443_v4  ;;  %v4419_v42 = vmul.f32 -1.442695, %v3443_v4 }
0x23a7   :  { %v5502_v15 = vpop.eup %5501 }
0x23a8   :  { %3460 = vrot.lane.b32.xlu1 %v5502_v15, %s5647_s4  ;;  %5505 = vpow2.f32 %v4419_v42 }
0x23a9   :  { %5507 = vpow2.f32 %v4418_v10 }
0x23ac   :  { %3455 = vrot.lane.b32.xlu1 %v3454_v52, %s5647_s4 }
0x23b0   :  { %v5504_v6 = vpop.eup %5503 }
0x23b1   :  { %3490 = vrot.lane.b32.xlu0 %v5504_v6, %s5647_s4 }
0x23b2   :  { %v5506_v49 = vpop.eup %5505 }
0x23b3   :  { %v3484_v36 = vadd.f32 1.0, %v5506_v49  ;;  %v5508_v60 = vpop.eup %5507 }
0x23b4   :  { %v3449_v58 = vadd.f32 1.0, %v5508_v60 }
0x23b5   :  { %5509 = vrcp.f32 %v3484_v36 }
0x23b6   :  { %5511 = vrcp.f32 %v3449_v58 }
0x23bf   :  { %v5510_v17 = vpop.eup %5509 }
0x23c0   :  { %v5512_v21 = vpop.eup %5511  ;;  %v3488_v26 = vmul.f32 %v5510_v17, %v3286_v27 }
0x241a   :  { %v3461_v61 = vpop.permute.xlu1 %3460 }
0x241b   :  { %v3463_v25 = vmul.f32 %v5512_v21, %v3461_v61 }
0x241e   :  { %v6662_v2 = vpop.permute.xlu1 %3455 }
0x241f   :  { %v3458_v13 = vmul.f32 %v5512_v21, %v6662_v2 }
0x2423   :  { %v3491_v20 = vpop.permute.xlu0 %3490 }
0x2424   :  { %v3493_v55 = vmul.f32 %v5510_v17, %v3491_v20 }
0x2426   :  { %3495 = vrot.lane.b32.xlu0 %v3493_v55, %s5647_s4 }
0x242a   :  { %3465 = vrot.lane.b32.xlu0 %v3463_v25, %s5647_s4 }
0x2498   :  { %v3496_v7 = vpop.permute.xlu0 %3495 }
0x2499   :  { %v3498_v28 = vadd.f32 %v3496_v7, %v3488_v26 }
0x249b   :  { %5513 = vtanh.f32 %v3498_v28  ;;  %v3516_v19 = vrot.slane %v3498_v28, 2 }
0x249c   :  { %v3466_v31 = vpop.permute.xlu0 %3465 }
0x249d   :  { %v6665_v50 = vadd.f32 %v3466_v31, %v3458_v13 }
0x249f   :  { %5515 = vtanh.f32 %v6665_v50  ;;  %v3479_v28 = vsel %vm182_vm5, %v6665_v50, %v6662_v2 }
0x24a5   :  { %v5514_v14 = vpop.eup %5513 }
0x24a6   :  { %3501 = vrot.lane.b32.xlu1 %v5514_v14, %s5647_s4 }
0x24a9   :  { %v5516_v23 = vpop.eup %5515 }
0x24aa   :  { %3475 = vrot.lane.b32.xlu1 %v3295_v12, %s5648_s17  ;;  %3471 = vrot.lane.b32.xlu0 %v5516_v23, %s5647_s4 }
0x24ae   :  { %3511 = vrot.lane.b32.xlu1 %v3510_v30, %s5648_s17 }
0x24b2   :  { %3517 = vrot.lane.b32.xlu1 %v3516_v19, %s5649_s18 }
0x2518   :  { %v3502_v34 = vpop.permute.xlu1 %3501 }
0x2519   :  { %v3504_v35 = vmul.f32 %v5510_v17, %v3502_v34 }
0x251b   :  { %v3506_v40 = vrot.slane %v3504_v35, 2 }
0x251c   :  { %v3472_v11 = vpop.permute.xlu0 %3471  ;;  %v3476_v1 = vpop.permute.xlu1 %3475 }
0x251d   :  { %v6674_v32 = vmul.f32 %v5512_v21, %v3472_v11  ;;  %3507 = vrot.lane.b32.xlu0 %v3506_v40, %s5648_s17 }
0x251f   :  { %v6680_v48 = vsel %vm182_vm5, %v6674_v32, %v3476_v1 }
0x2520   :  { %v3512_v46 = vpop.permute.xlu1 %3511  ;;  %v3720_v35 = vrot.slane %v6680_v48, 6 }
0x2521   :  { %3538 = vrot.lane.b32.xlu0 %v6680_v48, %s5648_s17 }
0x2524   :  { %v3518_v16 = vpop.permute.xlu1 %3517 }
0x2525   :  { %3522 = vrot.lane.b32.xlu0 %v3521_v59, %s5649_s18 }
0x258f   :  { %v6685_v47 = vpop.permute.xlu0 %3507 }
0x2590   :  { %v6690_v39 = vsel %vm181_vm4, %v6685_v47, %v3512_v46 }
0x2591   :  { %v3616_v12 = vrot.slane %v6690_v39, 6 }
0x2593   :  { %4964 = vmatmul.mubr.msk.f32.vlgmr.msra.gmra.mrb[28].mxu0 %vm211_vm3, %v3616_v12  ;;  %v3539_v8 = vpop.permute.xlu0 %3538 }
0x2594   :  { %4953 = vmatmul.mubr.msk.f32.vlgmr.msra.gmra.mrb[34].mxu1 %vm211_vm3, %v3539_v8  ;;  %5261 = vmatpush3.bf16.msra.mxu0 %v6368_v22  ;;  %v3731_v8 = vrot.slane %v3479_v28, 6 }
0x2595   :  { %5255 = vmatpush3.bf16.msra.mxu1 %v6347_v5  ;;  %4974 = vmatprep.mubr.msk.f32.mxu1 %vm5646_vm2, %v5644_v44 }
0x2596   :  { %5256 = vmatprep.subr.bf16.mxu1 %v5645_v45  ;;  %5262 = vmatprep.subr.bf16.mxu0 %v5645_v45 }
0x2597   :  { %4985 = vmatprep.mubr.msk.f32.mxu0 %vm5646_vm2, %v5644_v44  ;;  %v3523_v24 = vpop.permute.xlu0 %3522 }
0x2598   :  { %5264 = vmatpush3.bf16.msra.mxu0 %v6381_v29  ;;  %v6711_v6 = vsel %vm181_vm4, %v3518_v16, %v3523_v24 }
0x2599   :  { %5258 = vmatpush3.bf16.msra.mxu1 %v6363_v18  ;;  %5271 = vmatprep.subr.bf16.mxu0 %v5645_v45  ;;  %v3745_v42 = vrot.slane %v6711_v6, 6 }
0x259a   :  { %5265 = vmatprep.subr.bf16.mxu1 %v5645_v45 }
0x2666   :  { %v3687_v53 = vpop.f32.mrb[28].mxu0 }
0x2667   :  { %v3688_v0 = vadd.f32 %v3687_v53, %v3617_v57  ;;  %v3611_v62 = vpop.f32.mrb[34].mxu1  ;;  %v4965_v63 = vpop.f32.mrb[29].mxu0 }
0x2668   :  { %v3612_v4 = vadd.f32 %v3611_v62, %v3541_v9  ;;  %v4954_v3 = vpop.f32.mrb[35].mxu1 }
0x2669   :  { %5517 = vtanh.f32 %v3688_v0  ;;  %v4423_v10 = vmul.f32 -1.442695, %v3688_v0  ;;  %v3771_v0 = vrot.slane %v6690_v39, 2 }
0x266a   :  { %5519 = vtanh.f32 %v3612_v4  ;;  %v4422_v49 = vmul.f32 -1.442695, %v3612_v4 }
0x266b   :  { %5521 = vpow2.f32 %v4423_v10  ;;  %v3779_v10 = vrot.slane %v6711_v6, 2 }
0x266c   :  { %5523 = vpow2.f32 %v4422_v49 }
0x2673   :  { %v5518_v15 = vpop.eup %5517 }
0x2674   :  { %v5520_v52 = vpop.eup %5519  ;;  %3751 = vrot.lane.b32.xlu0 %v5518_v15, %s5647_s4  ;;  %v3867_v15 = vrot.slane %v6434_v38, 2 }
0x2675   :  { %3700 = vrot.lane.b32.xlu1 %v5520_v52, %s5647_s4  ;;  %v5522_v36 = vpop.eup %5521 }
0x2676   :  { %v5524_v60 = vpop.eup %5523  ;;  %v3740_v58 = vadd.f32 1.0, %v5522_v36 }
0x2677   :  { %v3694_v17 = vadd.f32 1.0, %v5524_v60 }
0x2678   :  { %5525 = vrcp.f32 %v3740_v58 }
0x2679   :  { %3746 = vrot.lane.b32.xlu1 %v3745_v42, %s5647_s4  ;;  %5527 = vrcp.f32 %v3694_v17 }
0x2682   :  { %v5526_v20 = vpop.eup %5525 }
0x2683   :  { %v5528_v61 = vpop.eup %5527 }
0x2684   :  { %v3698_v31 = vmul.f32 %v5528_v61, %v3479_v28 }
0x26e6   :  { %v3752_v55 = vpop.permute.xlu0 %3751 }
0x26e7   :  { %v3754_v21 = vmul.f32 %v5526_v20, %v3752_v55  ;;  %v3701_v25 = vpop.permute.xlu1 %3700 }
0x26e8   :  { %v3703_v27 = vmul.f32 %v5528_v61, %v3701_v25 }
0x26e9   :  { %3756 = vrot.lane.b32.xlu1 %v3754_v21, %s5647_s4 }
0x26ea   :  { %3705 = vrot.lane.b32.xlu0 %v3703_v27, %s5647_s4 }
0x26eb   :  { %v3747_v26 = vpop.permute.xlu1 %3746 }
0x26ec   :  { %v3749_v7 = vmul.f32 %v5526_v20, %v3747_v26 }
0x275b   :  { %v3757_v13 = vpop.permute.xlu1 %3756 }
0x275c   :  { %v3759_v14 = vadd.f32 %v3757_v13, %v3749_v7  ;;  %v3706_v23 = vpop.permute.xlu0 %3705 }
0x275d   :  { %v3708_v30 = vadd.f32 %v3706_v23, %v3698_v31 }
0x275e   :  { %5529 = vtanh.f32 %v3759_v14  ;;  %v3775_v2 = vrot.slane %v3759_v14, 4 }
0x275f   :  { %5531 = vtanh.f32 %v3708_v30  ;;  %v3726_v40 = vrot.slane %v3708_v30, 6 }
0x2768   :  { %v5530_v19 = vpop.eup %5529 }
0x2769   :  { %v5532_v34 = vpop.eup %5531  ;;  %3762 = vrot.lane.b32.xlu1 %v5530_v19, %s5647_s4 }
0x276a   :  { %3711 = vrot.lane.b32.xlu0 %v5532_v34, %s5647_s4 }
0x276d   :  { %3721 = vrot.lane.b32.xlu1 %v3720_v35, %s5648_s17 }
0x2771   :  { %3727 = vrot.lane.b32.xlu1 %v3726_v40, %s5649_s18 }
0x2775   :  { %3776 = vrot.lane.b32.xlu1 %v3775_v2, %s5649_s18 }
0x27db   :  { %v3763_v50 = vpop.permute.xlu1 %3762 }
0x27dc   :  { %v3712_v11 = vpop.permute.xlu0 %3711  ;;  %v3765_v59 = vmul.f32 %v5526_v20, %v3763_v50 }
0x27dd   :  { %v3714_v1 = vmul.f32 %v5528_v61, %v3712_v11 }
0x27de   :  { %v3767_v12 = vrot.slane %v3765_v59, 4 }
0x27df   :  { %v3716_v46 = vrot.slane %v3714_v1, 6  ;;  %v3722_v48 = vpop.permute.xlu1 %3721 }
0x27e1   :  { %3717 = vrot.lane.b32.xlu0 %v3716_v46, %s5648_s17 }
0x27e5   :  { %3768 = vrot.lane.b32.xlu0 %v3767_v12, %s5648_s17 }
0x27e9   :  { %3732 = vrot.lane.b32.xlu0 %v3731_v8, %s5649_s18 }
0x2853   :  { %v6732_v57 = vpop.permute.xlu0 %3717 }
0x2854   :  { %v6737_v53 = vsel %vm182_vm5, %v6732_v57, %v3722_v48 }
0x2855   :  { %v3790_v9 = vrot.slane %v6737_v53, 2 }
0x2857   :  { %4975 = vmatmul.mubr.msk.f32.vlgmr.msra.gmra.mrb[36].mxu1 %vm211_vm3, %v3790_v9  ;;  %v6742_v62 = vpop.permute.xlu0 %3768 }
0x2858   :  { %v6747_v63 = vsel %vm181_vm4, %v6742_v62, %v3771_v0  ;;  %5267 = vmatpush3.bf16.msra.mxu1 %v6347_v5  ;;  %4996 = vmatprep.mubr.msk.f32.mxu1 %vm5646_vm2, %v5644_v44  ;;  %v3791_v5 = vrot.slane %v6437_v56, 4  ;;  %v3975_v0 = vrot.slane %v6737_v53, 6  ;;  %v4041_v53 = vrot.slane %v6437_v56, 6 }
0x2859   :  { %v3866_v4 = vrot.slane %v6747_v63, 4  ;;  %5268 = vmatprep.subr.bf16.mxu1 %v5645_v45 }
0x285b   :  { %4986 = vmatmul.mubr.msk.f32.vlgmr.msra.gmra.mrb[30].mxu0 %vm211_vm3, %v3866_v4  ;;  %v3733_v42 = vpop.permute.xlu0 %3732 }
0x285c   :  { %5270 = vmatpush3.bf16.msra.mxu1 %v6363_v18  ;;  %5273 = vmatpush3.bf16.msra.mxu0 %v6368_v22  ;;  %v3728_v22 = vpop.permute.xlu1 %3727 }
0x285d   :  { %5274 = vmatprep.subr.bf16.mxu0 %v5645_v45  ;;  %5007 = vmatprep.mubr.msk.f32.mxu0 %vm5646_vm2, %v5644_v44  ;;  %v6765_v44 = vsel %vm182_vm5, %v3728_v22, %v3733_v42 }
0x285e   :  { %v3949_v49 = vrot.slane %v6765_v44, 2 }
0x2860   :  { %5276 = vmatpush3.bf16.msra.mxu0 %v6381_v29  ;;  %v3777_v29 = vpop.permute.xlu1 %3776 }
0x2861   :  { %v6772_v60 = vsel %vm181_vm4, %v3777_v29, %v3779_v10  ;;  %v3983_v10 = vrot.slane %v6765_v44, 6 }
0x2862   :  { %v3995_v58 = vrot.slane %v6772_v60, 4  ;;  %v4029_v56 = vrot.slane %v6772_v60, 2 }
0x292a   :  { %v3861_v39 = vpop.f32.mrb[36].mxu1 }
0x292b   :  { %v3862_v3 = vadd.f32 %v3861_v39, %v3791_v5  ;;  %v4976_v24 = vpop.f32.mrb[37].mxu1 }
0x292d   :  { %5533 = vtanh.f32 %v3862_v3  ;;  %v4426_v17 = vmul.f32 -1.442695, %v3862_v3  ;;  %v4021_v3 = vrot.slane %v6747_v63, 2 }
0x292e   :  { %v3937_v16 = vpop.f32.mrb[30].mxu0 }
0x292f   :  { %v3938_v52 = vadd.f32 %v3937_v16, %v3867_v15  ;;  %v4987_v18 = vpop.f32.mrb[31].mxu0 }
0x2931   :  { %5535 = vtanh.f32 %v3938_v52  ;;  %v4427_v20 = vmul.f32 -1.442695, %v3938_v52 }
0x2932   :  { %5537 = vpow2.f32 %v4426_v17 }
0x2933   :  { %5539 = vpow2.f32 %v4427_v20 }
0x2937   :  { %v5534_v45 = vpop.eup %5533 }
0x2938   :  { %3955 = vrot.lane.b32.xlu0 %v5534_v45, %s5647_s4 }
0x293b   :  { %v5536_v36 = vpop.eup %5535 }
0x293c   :  { %4001 = vrot.lane.b32.xlu1 %v5536_v36, %s5647_s4  ;;  %3950 = vrot.lane.b32.xlu0 %v3949_v49, %s5647_s4  ;;  %v5538_v6 = vpop.eup %5537 }
0x293d   :  { %v3944_v55 = vadd.f32 1.0, %v5538_v6  ;;  %v5540_v61 = vpop.eup %5539 }
0x293e   :  { %v3990_v21 = vadd.f32 1.0, %v5540_v61 }
0x293f   :  { %5541 = vrcp.f32 %v3944_v55 }
0x2940   :  { %3996 = vrot.lane.b32.xlu1 %v3995_v58, %s5647_s4  ;;  %5543 = vrcp.f32 %v3990_v21 }
0x2949   :  { %v5542_v25 = vpop.eup %5541 }
0x294a   :  { %v5544_v7 = vpop.eup %5543 }
0x29aa   :  { %v3956_v27 = vpop.permute.xlu0 %3955 }
0x29ab   :  { %v3958_v26 = vmul.f32 %v5542_v25, %v3956_v27 }
0x29ad   :  { %3960 = vrot.lane.b32.xlu0 %v3958_v26, %s5647_s4 }
0x29ae   :  { %v4002_v28 = vpop.permute.xlu1 %4001  ;;  %v3951_v31 = vpop.permute.xlu0 %3950 }
0x29af   :  { %v4004_v13 = vmul.f32 %v5544_v7, %v4002_v28  ;;  %v3953_v14 = vmul.f32 %v5542_v25, %v3951_v31 }
0x29b1   :  { %4006 = vrot.lane.b32.xlu1 %v4004_v13, %s5647_s4 }
0x29b2   :  { %v3997_v23 = vpop.permute.xlu1 %3996 }
0x29b3   :  { %v3999_v34 = vmul.f32 %v5544_v7, %v3997_v23 }
0x2a1f   :  { %v3961_v30 = vpop.permute.xlu0 %3960 }
0x2a20   :  { %v3963_v19 = vadd.f32 %v3961_v30, %v3953_v14 }
0x2a22   :  { %5545 = vtanh.f32 %v3963_v19  ;;  %v3979_v8 = vrot.slane %v3963_v19, 4 }
0x2a23   :  { %v4007_v35 = vpop.permute.xlu1 %4006 }
0x2a24   :  { %v4009_v40 = vadd.f32 %v4007_v35, %v3999_v34 }
0x2a26   :  { %5547 = vtanh.f32 %v4009_v40  ;;  %v4025_v9 = vrot.slane %v4009_v40, 6 }
0x2a2c   :  { %v5546_v2 = vpop.eup %5545 }
0x2a2d   :  { %3966 = vrot.lane.b32.xlu0 %v5546_v2, %s5647_s4 }
0x2a30   :  { %v5548_v50 = vpop.eup %5547 }
0x2a31   :  { %4012 = vrot.lane.b32.xlu1 %v5548_v50, %s5647_s4 }
0x2a9f   :  { %v3967_v11 = vpop.permute.xlu0 %3966 }
0x2aa0   :  { %v3969_v1 = vmul.f32 %v5542_v25, %v3967_v11 }
0x2aa2   :  { %v3971_v59 = vrot.slane %v3969_v1, 4  ;;  %v4262_v1 = vld [vmem:[#allocation7] sm:$0xff] }
0x2aa3   :  { %v4013_v46 = vpop.permute.xlu1 %4012 }
0x2aa4   :  { %v4015_v12 = vmul.f32 %v5544_v7, %v4013_v46  ;;  %3972 = vrot.lane.b32.xlu0 %v3971_v59, %s5648_s17  ;;  %v4263_v59 = vld [vmem:[#allocation7 + $0x8] sm:$0xff] }
0x2aa5   :  { %v5277_v46 = vpack.c.bf16 %v4263_v59, %v4262_v1 }
0x2aa6   :  { %v4017_v48 = vrot.slane %v4015_v12, 6  ;;  %v2800_v12 = vsel %vm182_vm5, %v6519_v54, 0.0  ;;  %v3782_v54 = vsel %vm181_vm4, %v6742_v62, 0.0 }
0x2aa7   :  { %5278 = vmatprep.subr.bf16.mxu1 %v5277_v46 }
0x2aa8   :  { %4018 = vrot.lane.b32.xlu1 %v4017_v48, %s5648_s17  ;;  %3980 = vrot.lane.b32.xlu0 %v3979_v8, %s5649_s18  ;;  %v3050_v8 = vsel %vm182_vm5, %v6576_v33, 0.0  ;;  %v3287_v48 = vsel %vm182_vm5, %v6616_v51, 0.0  ;;  %v4264_v51 = vld [vmem:[#allocation7 + $0x10] sm:$0xff] }
0x2aac   :  { %4026 = vrot.lane.b32.xlu1 %v4025_v9, %s5649_s18  ;;  %v4265_v9 = vld [vmem:[#allocation7 + $0x18] sm:$0xff] }
0x2b16   :  { %v6787_v4 = vpop.permute.xlu0 %3972 }
0x2b17   :  { %v3977_v5 = vsel %vm182_vm5, %v6787_v4, %v3975_v0  ;;  %v5281_v0 = vpack.c.bf16 %v4265_v9, %v4264_v51 }
0x2b18   :  { %v4040_v39 = vrot.slane %v3977_v5, 4  ;;  %v4267_v5 = vld [vmem:[#allocation7 + $0x28] sm:$0xff] }
0x2b1a   :  { %v6793_v24 = vpop.permute.xlu1 %4018  ;;  %4997 = vmatmul.mubr.msk.f32.vlgmr.msra.gmra.mrb[38].mxu1 %vm211_vm3, %v4040_v39  ;;  %v3981_v29 = vpop.permute.xlu0 %3980 }
0x2b1b   :  { %v4023_v15 = vsel %vm181_vm4, %v6793_v24, %v4021_v3  ;;  %v3985_v36 = vsel %vm182_vm5, %v3981_v29, %v3983_v10  ;;  %5280 = vmatpush3.bf16.msra.mxu1 %v5277_v46  ;;  %v4032_v33 = vsel %vm181_vm4, %v6793_v24, 0.0  ;;  %v4268_v3 = vld [vmem:[#allocation7 + $0x30] sm:$0xff]  ;;  %v3736_v10 = vsel %vm182_vm5, %v6732_v57, 0.0 }
0x2b1c   :  { %v4116_v16 = vrot.slane %v4023_v15, 2  ;;  %v4197_v17 = vrot.slane %v3985_v36, 4  ;;  %5282 = vmatprep.subr.bf16.mxu1 %v5281_v0  ;;  %v4269_v15 = vld [vmem:[#allocation7 + $0x38] sm:$0xff] }
0x2b1d   :  { %v5289_v62 = vpack.c.bf16 %v4269_v15, %v4268_v3 }
0x2b1e   :  { %5008 = vmatmul.mubr.msk.f32.vlgmr.msra.gmra.mrb[32].mxu0 %vm211_vm3, %v4116_v16  ;;  %v4027_v58 = vpop.permute.xlu1 %4026 }
0x2b1f   :  { %v4031_v6 = vsel %vm181_vm4, %v4027_v58, %v4029_v56  ;;  %5284 = vmatpush3.bf16.msra.mxu1 %v5281_v0 }
0x2bed   :  { %v4111_v52 = vpop.f32.mrb[38].mxu1 }
0x2bee   :  { %v4112_v18 = vadd.f32 %v4111_v52, %v4041_v53  ;;  %v4998_v22 = vpop.f32.mrb[39].mxu1 }
0x2bf0   :  { %5549 = vtanh.f32 %v4112_v18  ;;  %v4430_v44 = vmul.f32 -1.442695, %v4112_v18 }
0x2bf1   :  { %v4185_v42 = vpop.f32.mrb[32].mxu0 }
0x2bf2   :  { %v4186_v63 = vadd.f32 %v4185_v42, %v6434_v38  ;;  %v5009_v45 = vpop.f32.mrb[33].mxu0  ;;  %v4232_v38 = vrot.slane %v4031_v6, 2 }
0x2bf4   :  { %5551 = vtanh.f32 %v4186_v63  ;;  %v4431_v55 = vmul.f32 -1.442695, %v4186_v63  ;;  %v3480_v63 = vsel %vm182_vm5, %v6674_v32, 0.0 }
0x2bf5   :  { %5553 = vpow2.f32 %v4430_v44 }
0x2bf6   :  { %5555 = vpow2.f32 %v4431_v55 }
0x2bfa   :  { %v5550_v49 = vpop.eup %5549 }
0x2bfb   :  { %4203 = vrot.lane.b32.xlu0 %v5550_v49, %s5647_s4  ;;  %v3986_v49 = vsel %vm182_vm5, %v6787_v4, 0.0 }
0x2bfe   :  { %v5552_v20 = vpop.eup %5551 }
0x2bff   :  { %4238 = vrot.lane.b32.xlu1 %v5552_v20, %s5647_s4  ;;  %4198 = vrot.lane.b32.xlu0 %v4197_v17, %s5647_s4  ;;  %v5554_v61 = vpop.eup %5553 }
0x2c00   :  { %v4192_v21 = vadd.f32 1.0, %v5554_v61  ;;  %v5556_v25 = vpop.eup %5555 }
0x2c01   :  { %v4227_v60 = vadd.f32 1.0, %v5556_v25 }
0x2c02   :  { %5557 = vrcp.f32 %v4192_v21 }
0x2c03   :  { %4233 = vrot.lane.b32.xlu1 %v4232_v38, %s5647_s4  ;;  %5559 = vrcp.f32 %v4227_v60  ;;  %v4432_v38 = vld [vmem:[%s6890_s9] ss:$0 sm:$0xff] }
0x2c0c   :  { %v5558_v27 = vpop.eup %5557 }
0x2c0d   :  { %v5560_v28 = vpop.eup %5559 }
0x2c6d   :  { %v4204_v26 = vpop.permute.xlu0 %4203 }
0x2c6e   :  { %v4206_v7 = vmul.f32 %v5558_v27, %v4204_v26 }
0x2c70   :  { %4208 = vrot.lane.b32.xlu0 %v4206_v7, %s5647_s4 }
0x2c71   :  { %v4239_v13 = vpop.permute.xlu1 %4238  ;;  %v4199_v14 = vpop.permute.xlu0 %4198 }
0x2c72   :  { %v4241_v31 = vmul.f32 %v5560_v28, %v4239_v13  ;;  %v4201_v23 = vmul.f32 %v5558_v27, %v4199_v14 }
0x2c74   :  { %4243 = vrot.lane.b32.xlu1 %v4241_v31, %s5647_s4 }
0x2c75   :  { %v4234_v30 = vpop.permute.xlu1 %4233 }
0x2c76   :  { %v4236_v35 = vmul.f32 %v5560_v28, %v4234_v30 }
0x2ce2   :  { %v4209_v19 = vpop.permute.xlu0 %4208 }
0x2ce3   :  { %v4211_v34 = vadd.f32 %v4209_v19, %v4201_v23 }
0x2ce5   :  { %5561 = vtanh.f32 %v4211_v34 }
0x2ce6   :  { %v4244_v40 = vpop.permute.xlu1 %4243 }
0x2ce7   :  { %v4246_v2 = vadd.f32 %v4244_v40, %v4236_v35 }
0x2ce9   :  { %5563 = vtanh.f32 %v4246_v2 }
0x2cef   :  { %v5562_v50 = vpop.eup %5561 }
0x2cf0   :  { %4214 = vrot.lane.b32.xlu0 %v5562_v50, %s5647_s4 }
0x2cf3   :  { %v5564_v11 = vpop.eup %5563 }
0x2cf4   :  { %4249 = vrot.lane.b32.xlu1 %v5564_v11, %s5647_s4  ;;  %2555 = vrot.lane.b32.xlu0 %v6469_v37, %s5647_s4  ;;  %v3526_v37 = vsel %vm181_vm4, %v6685_v47, 0.0  ;;  %v4266_v47 = vld [vmem:[#allocation7 + $0x20] sm:$0xff] }
0x2cf5   :  { %v5285_v39 = vpack.c.bf16 %v4267_v5, %v4266_v47 }
0x2cf7   :  { %5286 = vmatprep.subr.bf16.mxu1 %v5285_v39 }
0x2cf8   :  { %2803 = vrot.lane.b32.xlu1 %v2800_v12, %s5647_s4  ;;  %3053 = vrot.lane.b32.xlu0 %v3050_v8, %s5647_s4 }
0x2cf9   :  { %5288 = vmatpush3.bf16.msra.mxu1 %v5285_v39 }
0x2cfa   :  { %5290 = vmatprep.subr.bf16.mxu1 %v5289_v62 }
0x2cfc   :  { %3290 = vrot.lane.b32.xlu1 %v3287_v48, %s5649_s18  ;;  %3533 = vrot.lane.b32.xlu0 %v3526_v37, %s5647_s4 }
0x2cfd   :  { %5292 = vmatpush3.bf16.msra.mxu1 %v5289_v62 }
0x2d00   :  { %3785 = vrot.lane.b32.xlu1 %v3782_v54, %s5647_s4  ;;  %4035 = vrot.lane.b32.xlu0 %v4032_v33, %s5647_s4 }
0x2d62   :  { %v4215_v16 = vpop.permute.xlu0 %4214 }
0x2d63   :  { %v4217_v24 = vmul.f32 %v5558_v27, %v4215_v16 }
0x2d65   :  { %v4219_v53 = vrot.slane %v4217_v24, 2 }
0x2d66   :  { %v4250_v52 = vpop.permute.xlu1 %4249  ;;  %v2556_v18 = vpop.permute.xlu0 %2555 }
0x2d67   :  { %v4252_v22 = vmul.f32 %v5560_v28, %v4250_v52  ;;  %2558 = vst.msk [vmem:[#allocation2 + $0x8] sm:$0xc0] %vm513_vm10, %v2556_v18  ;;  %4220 = vrot.lane.b32.xlu1 %v4219_v53, %s5648_s17 }
0x2d69   :  { %v4253_v42 = vsel %vm181_vm4, %v4252_v22, 0.0 }
0x2d6a   :  { %v2804_v45 = vpop.permute.xlu1 %2803  ;;  %4256 = vrot.lane.b32.xlu0 %v4253_v42, %s5649_s18  ;;  %v3054_v29 = vpop.permute.xlu0 %3053 }
0x2d6b   :  { %2806 = vst.msk [vmem:[#allocation2 + $0x8] sm:$0x30] %vm763_vm11, %v2804_v45  ;;  %3528 = vrot.lane.b32.xlu1 %v3480_v63, %s5648_s17 }
0x2d6c   :  { %3056 = vst.msk [vmem:[#allocation2 + $0x8] sm:$0xc] %vm1015_vm12, %v3054_v29 }
0x2d6d   :  { %4033 = vst.msk [vmem:[#allocation2 + $0x8] sm:$0x30] %vm1009_vm8, %v3986_v49 }
0x2d6e   :  { %3783 = vst.msk [vmem:[#allocation2 + $0x8] sm:$0xc] %vm757_vm7, %v3736_v10  ;;  %v3291_v41 = vpop.permute.xlu1 %3290  ;;  %v3534_v32 = vpop.permute.xlu0 %3533 }
0x2d6f   :  { %3293 = vst.msk [vmem:[#allocation2 + $0x8] sm:$0x3] %vm1254_vm13, %v3291_v41 }
0x2d70   :  { %3536 = vst.msk [vmem:[#allocation2] sm:$0xc0] %vm513_vm10, %v3534_v32 }
0x2d72   :  { %v3786_v57 = vpop.permute.xlu1 %3785  ;;  %v4036_v36 = vpop.permute.xlu0 %4035 }
0x2d73   :  { %3788 = vst.msk [vmem:[#allocation2] sm:$0x30] %vm763_vm11, %v3786_v57 }
0x2d74   :  { %4038 = vst.msk [vmem:[#allocation2] sm:$0xc] %vm1015_vm12, %v4036_v36 }
0x2dd9   :  { %v4221_v4 = vpop.permute.xlu1 %4220 }
0x2dda   :  { %v4223_v58 = vsel %vm182_vm5, %v4221_v4, 0.0 }
0x2ddb   :  { %4254 = vst.msk [vmem:[#allocation2 + $0x8] sm:$0xc0] %vm1248_vm9, %v4223_v58 }
0x2ddc   :  { %v4257_v56 = vpop.permute.xlu0 %4256 }
0x2ddd   :  { %4259 = vst.msk [vmem:[#allocation2] sm:$0x3] %vm1254_vm13, %v4257_v56  ;;  %v3529_v17 = vpop.permute.xlu1 %3528 }
0x2dde   :  { %3531 = vst.msk [vmem:[#allocation2 + $0x8] sm:$0x3] %vm507_vm6, %v3529_v17 }
0x2de4   :  { %v4260_v20 = vld [vmem:[#allocation2] sm:$0xff] }
0x2de5   :  { %5026 = vmatprep.mubr.msk.f32.mxu1 %vm2260_vm14, %v4260_v20  ;;  %v4261_v6 = vld [vmem:[#allocation2 + $0x8] sm:$0xff] }
0x2de6   :  { %5027 = vmatmul.mubr.msk.f32.vlgmr.msra.gmra.mrb[40].mxu1 %vm2260_vm14, %v4261_v6 }
0x2eb9   :  { %v5028_v43 = vpop.f32.mrb[40].mxu1 }
0x2eba   :  { %v4355_v44 = vadd.f32 %v5028_v43, %v4432_v38  ;;  %v4349_v55 = vpop.f32.mrb[41].mxu1 }
0x2ebb   :  { %v4350_v61 = vadd.f32 %v4432_v38, %v4349_v55 }
0x2ebc   :  { %4359 = vst [vmem:[%s6891_s10 + $0x8] sm:$0xff] %v4355_v44 }
0x2ebd   :  { %4358 = vst [vmem:[%s6891_s10] sm:$0xff] %v4350_v61 }
0x2ebe   :  { %4364 = vsyncpa [#allocation4], 1 }
0x2ebf   :  { %4365 = vsyncpa [#allocation6], 1 }

</bundles_post_ra>
